<compile_context>
chip_gen: v7x
topology: tpu7x:2x2x1
jax: 0.10.0
libtpu: 0.0.40
codegen_flags: <defaults>
</compile_context>

<pallas_src>
import functools

import jax
import jax.numpy as jnp
import numpy as np
from jax import lax
from jax.experimental import pallas as pl
from jax.experimental.pallas import tpu as pltpu


# Halo width (in lanes) of the shift scratch.  Must satisfy W + 1 <= _LANE_PAD
# so every tap's lane shift stays inside the scratch; 128 keeps stores aligned.
_LANE_PAD = 128


def _fcdisc_fused_kernel(x_ref, *rest, H, W, negative_slope):
    """All conv layers for one batch element; activations resident in VMEM.

    x_ref     : (1, Cin0, H*W)                  bf16 input (flat spatial on lanes)
    rest      : w1, b1, ..., wL, bL,            wi: (Couti_pad, 9*Cini) bf16
                                                bi: (Couti_pad, 1)      f32
                o_ref,                          (1, CoutL_pad, H*W)     f32
                shift_buf,                      (max_cin, H*W + 2*_LANE_PAD) bf16
                patch_buf                       (9*max_cin, H*W)        bf16
    """
    n_layers = (len(rest) - 3) // 2
    wb_refs = rest[: 2 * n_layers]
    o_ref = rest[2 * n_layers]
    shift_buf = rest[2 * n_layers + 1]
    patch_buf = rest[2 * n_layers + 2]

    HW = H * W
    max_cin = shift_buf.shape[0]

    # Zero ONLY the halo strips; the interior is fully overwritten per layer and
    # the halo is never written again.  Per-step (not program_id==0 gated) so it
    # is correct when a "parallel" grid is sharded across TensorCores.
    zeros_halo = jnp.zeros((max_cin, _LANE_PAD), jnp.bfloat16)
    shift_buf[:, 0:_LANE_PAD] = zeros_halo
    shift_buf[:, _LANE_PAD + HW:_LANE_PAD + HW + _LANE_PAD] = zeros_halo

    # Horizontal row-wrap masks only (the zero halo covers vertical overflow).
    px = lax.broadcasted_iota(jnp.int32, (1, HW), 1) % W
    mask_l = px >= 1          # valid lanes for dx = -1 taps
    mask_r = px <= (W - 2)    # valid lanes for dx = +1 taps

    # Tap geometry: flat lane shift + (optional) horizontal mask.
    taps = []
    for dy in (-1, 0, 1):
        for dx in (-1, 0, 1):
            mask = mask_l if dx == -1 else (mask_r if dx == 1 else None)
            taps.append((dy * W + dx, mask))

    a = x_ref[0]                                        # (Cin0, HW) bf16
    for li in range(n_layers):
        w_ref = wb_refs[2 * li]                         # (Cout_p, 9*Cin) bf16
        b_ref = wb_refs[2 * li + 1]                     # (Cout_p, 1)     f32
        cin = w_ref.shape[1] // 9

        a_bf = a.astype(jnp.bfloat16)
        # Lane-aligned store of the activation into the middle of the halo buffer.
        shift_buf[0:cin, _LANE_PAD:_LANE_PAD + HW] = a_bf

        # im2col straight into the patch scratch: one tap live at a time
        # (no 9-copy concatenate, no vreg spill churn).
        for t, (shift, mask) in enumerate(taps):
            row0 = t * cin
            if shift == 0:                              # center tap: reuse a_bf
                patch_buf[row0:row0 + cin, :] = a_bf
                continue
            lo = _LANE_PAD + shift
            shifted = shift_buf[0:cin, lo:lo + HW]      # (cin, HW) bf16
            if mask is not None:
                shifted = jnp.where(mask, shifted, jnp.zeros_like(shifted))
            patch_buf[row0:row0 + cin, :] = shifted

        # One K = 9*Cin MXU matmul per layer, f32 accumulation.
        acc = jnp.dot(w_ref[...], patch_buf[0:9 * cin, :],
                      preferred_element_type=jnp.float32)   # (Cout_p, HW) f32
        acc = acc + b_ref[...]                               # bias (f32)

        if li < n_layers - 1:
            a = jnp.where(acc >= 0, acc, negative_slope * acc)   # LeakyReLU(0.2)
        else:
            # Store all padded classifier rows (unmasked sublane-dense store);
            # the wrapper slices back to the true channel count for free.
            o_ref[0] = acc


def _prep_layer_params(params):
    """HWIO weights -> (Cout, 9*Cin) bf16 matmul layout (tap-major, channel-minor
    columns, matching the kernel's tap ordering) and (Cout, 1) f32 bias.  The
    final (classifier) Cout is zero-padded up to 8 sublanes."""
    n_layers = len(params)
    mats, bcols = [], []
    for i, (w, b) in enumerate(params):
        kh, kw, cin, cout = w.shape
        assert (kh, kw) == (3, 3) and cin % 8 == 0
        if i < n_layers - 1:
            assert cout % 8 == 0
        wmat = jnp.transpose(w, (3, 0, 1, 2)).reshape(cout, kh * kw * cin)
        bcol = b.reshape(cout, 1)
        if i == n_layers - 1 and cout % 8 != 0:
            pad = (-cout) % 8
            wmat = jnp.pad(wmat, ((0, pad), (0, 0)))
            bcol = jnp.pad(bcol, ((0, pad), (0, 0)))
        mats.append(wmat.astype(jnp.bfloat16))
        bcols.append(bcol.astype(jnp.float32))
    return mats, bcols


@jax.jit
def fc_discriminator_forward(x_nchw, params):
    """FCDiscriminator.forward: 5x (3x3, stride 1, pad 1) conv, LeakyReLU(0.2)
    after the first four.  NCHW in, NCHW out.  One fused pallas_call."""
    negative_slope = 0.2
    N, C0, H, W = x_nchw.shape
    HW = H * W
    out_c = params[-1][0].shape[3]                    # classifier channels (1)
    max_cin = max(w.shape[2] for w, _ in params)
    assert W + 1 <= _LANE_PAD                         # halo invariant

    # (N, C, H, W) -> (N, C, H*W): free row-major reshape; bf16 halves HBM reads.
    x_flat = x_nchw.reshape(N, C0, HW).astype(jnp.bfloat16)
    mats, biases = _prep_layer_params(params)
    out_c_pad = mats[-1].shape[0]                     # padded classifier rows (8)

    kernel = functools.partial(_fcdisc_fused_kernel, H=H, W=W,
                               negative_slope=negative_slope)

    in_specs = [pl.BlockSpec((1, C0, HW), lambda n: (n, 0, 0))]
    operands = [x_flat]
    for wmat, bcol in zip(mats, biases):
        # Constant index maps + single buffering: weights/biases are loaded once
        # and stay resident in VMEM (no double-buffer copy).
        in_specs.append(pl.BlockSpec(wmat.shape, lambda n: (0, 0),
                                     pipeline_mode=pl.Buffered(1)))
        in_specs.append(pl.BlockSpec(bcol.shape, lambda n: (0, 0),
                                     pipeline_mode=pl.Buffered(1)))
        operands.append(wmat)
        operands.append(bcol)

    # Explicit VMEM budget: scratch + single-buffered params + double-buffered
    # input/output blocks, plus generous headroom, capped well under v7x's 64 MiB.
    wb_bytes = sum(int(np.prod(m.shape)) * 2 for m in mats)
    wb_bytes += sum(int(np.prod(b.shape)) * 4 for b in biases)
    scratch_bytes = (max_cin * (HW + 2 * _LANE_PAD) + 9 * max_cin * HW) * 2
    io_bytes = 2 * C0 * HW * 2 + 2 * out_c_pad * HW * 4
    vmem_limit = int(min(wb_bytes + scratch_bytes + io_bytes + (32 << 20),
                         56 << 20))

    out = pl.pallas_call(
        kernel,
        out_shape=jax.ShapeDtypeStruct((N, out_c_pad, HW), jnp.float32),
        grid=(N,),
        in_specs=in_specs,
        out_specs=pl.BlockSpec((1, out_c_pad, HW), lambda n: (n, 0, 0)),
        scratch_shapes=[
            pltpu.VMEM((max_cin, HW + 2 * _LANE_PAD), jnp.bfloat16),  # halo/shift
            pltpu.VMEM((9 * max_cin, HW), jnp.bfloat16),              # im2col patch
        ],
        compiler_params=pltpu.CompilerParams(
            dimension_semantics=("parallel",),
            vmem_limit_bytes=vmem_limit),
    )(*operands)

    # Slice the padded classifier channels back to 1 (free in XLA) and restore NCHW.
    return out[:, :out_c, :].reshape(N, out_c, H, W)


def init_fc_discriminator_params(key, in_ch, ndf):
    """Deterministic synthetic parameters (HWIO weights, per-layer bias)."""
    chans = [in_ch, ndf, ndf * 2, ndf * 4, ndf * 8, 1]
    params = []
    for i in range(5):
        cin, cout = chans[i], chans[i + 1]
        key, kw, kb = jax.random.split(key, 3)
        fan_in = cin * 3 * 3
        bound = 1.0 / np.sqrt(fan_in)  # mimic PyTorch Conv2d default scale
        w = jax.random.uniform(kw, (3, 3, cin, cout), jnp.float32, -bound, bound)
        b = jax.random.uniform(kb, (cout,), jnp.float32, -bound, bound)
        params.append((w, b))
    return params


def _reference_forward(x_nchw, params, *, matmul_dtype, negative_slope=0.2):
    """Pure-JAX reference.  matmul_dtype=bf16 mirrors the kernel's precision
    policy exactly (bf16 operands, f32 accumulation); f32 is the original
    module's full-precision semantics."""
    act = x_nchw
    n_layers = len(params)
    for i, (w, b) in enumerate(params):
        out = lax.conv_general_dilated(
            act.astype(matmul_dtype), w.astype(matmul_dtype),
            window_strides=(1, 1), padding=((1, 1), (1, 1)),
            dimension_numbers=("NCHW", "HWIO", "NCHW"),
            preferred_element_type=jnp.float32)
        out = out + b.reshape(1, -1, 1, 1)
        if i < n_layers - 1:
            act = jnp.where(out >= 0, out, negative_slope * out)
        else:
            act = out
    return act


if __name__ == "__main__":
    # Scaled-down FCDiscriminator (original defaults: in_ch=2048, ndf=64).
    # Channel trajectory here: 32 -> 16 -> 32 -> 64 -> 128 -> 1.
    N, IN_CH, NDF, H, W = 2, 32, 16, 16, 16

    key = jax.random.PRNGKey(0)
    key, kx = jax.random.split(key)
    x = jax.random.normal(kx, (N, IN_CH, H, W), dtype=jnp.float32)
    params = init_fc_discriminator_params(key, IN_CH, NDF)

    out = jax.block_until_ready(fc_discriminator_forward(x, params))
    assert out.shape == (N, 1, H, W), out.shape

    # Tight check vs a reference with the identical precision policy
    # (bf16 MXU operands, f32 accumulation, f32 bias/LeakyReLU).
    ref_bf16 = jax.block_until_ready(
        _reference_forward(x, params, matmul_dtype=jnp.bfloat16))
    np.testing.assert_allclose(np.asarray(out), np.asarray(ref_bf16),
                               rtol=1e-3, atol=1e-3)

    # Looser check vs the full-f32 module semantics (bf16 quantization budget).
    ref_f32 = jax.block_until_ready(
        _reference_forward(x, params, matmul_dtype=jnp.float32))
    np.testing.assert_allclose(np.asarray(out), np.asarray(ref_f32),
                               rtol=5e-2, atol=5e-2)

    print("KERNEL_OK")
</pallas_src>

<mosaic_0001>
module attributes {stable_mosaic.version = 11 : i64} {
  func.func @_fcdisc_fused_kernel(%arg0: i32, %arg1: memref<1x32x256xbf16, #tpu.memory_space<vmem>>, %arg2: memref<16x288xbf16, #tpu.memory_space<vmem>>, %arg3: memref<16x1xf32, #tpu.memory_space<vmem>>, %arg4: memref<32x144xbf16, #tpu.memory_space<vmem>>, %arg5: memref<32x1xf32, #tpu.memory_space<vmem>>, %arg6: memref<64x288xbf16, #tpu.memory_space<vmem>>, %arg7: memref<64x1xf32, #tpu.memory_space<vmem>>, %arg8: memref<128x576xbf16, #tpu.memory_space<vmem>>, %arg9: memref<128x1xf32, #tpu.memory_space<vmem>>, %arg10: memref<8x1152xbf16, #tpu.memory_space<vmem>>, %arg11: memref<8x1xf32, #tpu.memory_space<vmem>>, %arg12: memref<1x8x256xf32, #tpu.memory_space<vmem>>, %arg13: memref<128x512xbf16, #tpu.memory_space<vmem>>, %arg14: memref<1152x256xbf16, #tpu.memory_space<vmem>>) attributes {dimension_semantics = [#tpu.dimension_semantics<parallel>], iteration_bounds = array<i64: 2>, scalar_prefetch = 0 : i64, scratch_operands = 2 : i64, tpu.core_type = #tpu.core_type<tc>, window_params = [{transform_indices = @transform_0, window_bounds = array<i64: 1, 32, 256>}, {pipeline_mode = #tpu.pipeline_mode<synchronous>, transform_indices = @transform_1, window_bounds = array<i64: 16, 288>}, {pipeline_mode = #tpu.pipeline_mode<synchronous>, transform_indices = @transform_2, window_bounds = array<i64: 16, 1>}, {pipeline_mode = #tpu.pipeline_mode<synchronous>, transform_indices = @transform_3, window_bounds = array<i64: 32, 144>}, {pipeline_mode = #tpu.pipeline_mode<synchronous>, transform_indices = @transform_4, window_bounds = array<i64: 32, 1>}, {pipeline_mode = #tpu.pipeline_mode<synchronous>, transform_indices = @transform_5, window_bounds = array<i64: 64, 288>}, {pipeline_mode = #tpu.pipeline_mode<synchronous>, transform_indices = @transform_6, window_bounds = array<i64: 64, 1>}, {pipeline_mode = #tpu.pipeline_mode<synchronous>, transform_indices = @transform_7, window_bounds = array<i64: 128, 576>}, {pipeline_mode = #tpu.pipeline_mode<synchronous>, transform_indices = @transform_8, window_bounds = array<i64: 128, 1>}, {pipeline_mode = #tpu.pipeline_mode<synchronous>, transform_indices = @transform_9, window_bounds = array<i64: 8, 1152>}, {pipeline_mode = #tpu.pipeline_mode<synchronous>, transform_indices = @transform_10, window_bounds = array<i64: 8, 1>}, {transform_indices = @transform_11, window_bounds = array<i64: 1, 8, 256>}]} {
    %cst = arith.constant 0.000000e+00 : bf16
    %0 = vector.broadcast %cst : bf16 to vector<128x128xbf16>
    %c0 = arith.constant 0 : index
    %c0_0 = arith.constant 0 : index
    %1 = vector.load %arg13[%c0, %c0_0] : memref<128x512xbf16, #tpu.memory_space<vmem>>, vector<128x128xbf16>
    tpu.vector_store %arg13[%c0, %c0_0], %0 {strides = array<i32>} : memref<128x512xbf16, #tpu.memory_space<vmem>>, vector<128x128xbf16>,
    %c0_1 = arith.constant 0 : index
    %c384 = arith.constant 384 : index
    %2 = vector.load %arg13[%c0_1, %c384] : memref<128x512xbf16, #tpu.memory_space<vmem>>, vector<128x128xbf16>
    tpu.vector_store %arg13[%c0_1, %c384], %0 {strides = array<i32>} : memref<128x512xbf16, #tpu.memory_space<vmem>>, vector<128x128xbf16>,
    %3 = tpu.iota {dimensions = array<i32: 1>} : vector<1x256xi32>
    %c16_i32 = arith.constant 16 : i32
    %c0_i32 = arith.constant 0 : i32
    %4 = arith.cmpi eq, %c16_i32, %c0_i32 : i32
    %c1_i32 = arith.constant 1 : i32
    %5 = arith.select %4, %c1_i32, %c16_i32 : i32
    %6 = vector.broadcast %5 : i32 to vector<1x256xi32>
    %7 = arith.remsi %3, %6 : vector<1x256xi32>
    %c0_i32_2 = arith.constant 0 : i32
    %8 = vector.broadcast %c0_i32_2 : i32 to vector<1x256xi32>
    %9 = arith.cmpi ne, %7, %8 : vector<1x256xi32>
    %c0_i32_3 = arith.constant 0 : i32
    %10 = vector.broadcast %c0_i32_3 : i32 to vector<1x256xi32>
    %11 = arith.cmpi slt, %7, %10 : vector<1x256xi32>
    %c0_i32_4 = arith.constant 0 : i32
    %12 = arith.cmpi slt, %5, %c0_i32_4 : i32
    %13 = vector.broadcast %12 : i1 to vector<1x256xi1>
    %14 = vector.broadcast %13 : vector<1x256xi1> to vector<1x256xi1>
    %15 = arith.xori %11, %14 : vector<1x256xi1>
    %16 = arith.andi %15, %9 : vector<1x256xi1>
    %17 = vector.broadcast %5 : i32 to vector<1x256xi32>
    %18 = arith.addi %7, %17 : vector<1x256xi32>
    %19 = arith.select %16, %18, %7 : vector<1x256xi1>, vector<1x256xi32>
    %c1_i32_5 = arith.constant 1 : i32
    %20 = vector.broadcast %c1_i32_5 : i32 to vector<1x256xi32>
    %21 = arith.cmpi sge, %19, %20 : vector<1x256xi32>
    %c14_i32 = arith.constant 14 : i32
    %22 = vector.broadcast %c14_i32 : i32 to vector<1x256xi32>
    %23 = arith.cmpi sle, %19, %22 : vector<1x256xi32>
    %c0_6 = arith.constant 0 : index
    %c0_7 = arith.constant 0 : index
    %c0_8 = arith.constant 0 : index
    %24 = vector.load %arg1[%c0_6, %c0_7, %c0_8] : memref<1x32x256xbf16, #tpu.memory_space<vmem>>, vector<1x32x256xbf16>
    %25 = vector.shape_cast %24 : vector<1x32x256xbf16> to vector<32x256xbf16>
    %c0_9 = arith.constant 0 : index
    %c128 = arith.constant 128 : index
    %26 = vector.load %arg13[%c0_9, %c128] : memref<128x512xbf16, #tpu.memory_space<vmem>>, vector<32x256xbf16>
    tpu.vector_store %arg13[%c0_9, %c128], %25 {strides = array<i32>} : memref<128x512xbf16, #tpu.memory_space<vmem>>, vector<32x256xbf16>,
    %c0_10 = arith.constant 0 : index
    %c111 = arith.constant 111 : index
    %27 = vector.load %arg13[%c0_10, %c111] : memref<128x512xbf16, #tpu.memory_space<vmem>>, vector<32x256xbf16>
    %cst_11 = arith.constant 0.000000e+00 : bf16
    %28 = vector.broadcast %cst_11 : bf16 to vector<32x256xbf16>
    %29 = vector.shape_cast %21 : vector<1x256xi1> to vector<1x256xi1>
    %30 = vector.broadcast %29 : vector<1x256xi1> to vector<32x256xi1>
    %31 = arith.select %30, %27, %28 : vector<32x256xi1>, vector<32x256xbf16>
    %c0_12 = arith.constant 0 : index
    %c0_13 = arith.constant 0 : index
    %32 = vector.load %arg14[%c0_12, %c0_13] : memref<1152x256xbf16, #tpu.memory_space<vmem>>, vector<32x256xbf16>
    tpu.vector_store %arg14[%c0_12, %c0_13], %31 {strides = array<i32>} : memref<1152x256xbf16, #tpu.memory_space<vmem>>, vector<32x256xbf16>,
    %c0_14 = arith.constant 0 : index
    %c112 = arith.constant 112 : index
    %33 = vector.load %arg13[%c0_14, %c112] : memref<128x512xbf16, #tpu.memory_space<vmem>>, vector<32x256xbf16>
    %c32 = arith.constant 32 : index
    %c0_15 = arith.constant 0 : index
    %34 = vector.load %arg14[%c32, %c0_15] : memref<1152x256xbf16, #tpu.memory_space<vmem>>, vector<32x256xbf16>
    tpu.vector_store %arg14[%c32, %c0_15], %33 {strides = array<i32>} : memref<1152x256xbf16, #tpu.memory_space<vmem>>, vector<32x256xbf16>,
    %c0_16 = arith.constant 0 : index
    %c113 = arith.constant 113 : index
    %35 = vector.load %arg13[%c0_16, %c113] : memref<128x512xbf16, #tpu.memory_space<vmem>>, vector<32x256xbf16>
    %cst_17 = arith.constant 0.000000e+00 : bf16
    %36 = vector.broadcast %cst_17 : bf16 to vector<32x256xbf16>
    %37 = vector.shape_cast %23 : vector<1x256xi1> to vector<1x256xi1>
    %38 = vector.broadcast %37 : vector<1x256xi1> to vector<32x256xi1>
    %39 = arith.select %38, %35, %36 : vector<32x256xi1>, vector<32x256xbf16>
    %c64 = arith.constant 64 : index
    %c0_18 = arith.constant 0 : index
    %40 = vector.load %arg14[%c64, %c0_18] : memref<1152x256xbf16, #tpu.memory_space<vmem>>, vector<32x256xbf16>
    tpu.vector_store %arg14[%c64, %c0_18], %39 {strides = array<i32>} : memref<1152x256xbf16, #tpu.memory_space<vmem>>, vector<32x256xbf16>,
    %c0_19 = arith.constant 0 : index
    %c127 = arith.constant 127 : index
    %41 = vector.load %arg13[%c0_19, %c127] : memref<128x512xbf16, #tpu.memory_space<vmem>>, vector<32x256xbf16>
    %cst_20 = arith.constant 0.000000e+00 : bf16
    %42 = vector.broadcast %cst_20 : bf16 to vector<32x256xbf16>
    %43 = vector.shape_cast %21 : vector<1x256xi1> to vector<1x256xi1>
    %44 = vector.broadcast %43 : vector<1x256xi1> to vector<32x256xi1>
    %45 = arith.select %44, %41, %42 : vector<32x256xi1>, vector<32x256xbf16>
    %c96 = arith.constant 96 : index
    %c0_21 = arith.constant 0 : index
    %46 = vector.load %arg14[%c96, %c0_21] : memref<1152x256xbf16, #tpu.memory_space<vmem>>, vector<32x256xbf16>
    tpu.vector_store %arg14[%c96, %c0_21], %45 {strides = array<i32>} : memref<1152x256xbf16, #tpu.memory_space<vmem>>, vector<32x256xbf16>,
    %c128_22 = arith.constant 128 : index
    %c0_23 = arith.constant 0 : index
    %47 = vector.load %arg14[%c128_22, %c0_23] : memref<1152x256xbf16, #tpu.memory_space<vmem>>, vector<32x256xbf16>
    tpu.vector_store %arg14[%c128_22, %c0_23], %25 {strides = array<i32>} : memref<1152x256xbf16, #tpu.memory_space<vmem>>, vector<32x256xbf16>,
    %c0_24 = arith.constant 0 : index
    %c129 = arith.constant 129 : index
    %48 = vector.load %arg13[%c0_24, %c129] : memref<128x512xbf16, #tpu.memory_space<vmem>>, vector<32x256xbf16>
    %cst_25 = arith.constant 0.000000e+00 : bf16
    %49 = vector.broadcast %cst_25 : bf16 to vector<32x256xbf16>
    %50 = vector.shape_cast %23 : vector<1x256xi1> to vector<1x256xi1>
    %51 = vector.broadcast %50 : vector<1x256xi1> to vector<32x256xi1>
    %52 = arith.select %51, %48, %49 : vector<32x256xi1>, vector<32x256xbf16>
    %c160 = arith.constant 160 : index
    %c0_26 = arith.constant 0 : index
    %53 = vector.load %arg14[%c160, %c0_26] : memref<1152x256xbf16, #tpu.memory_space<vmem>>, vector<32x256xbf16>
    tpu.vector_store %arg14[%c160, %c0_26], %52 {strides = array<i32>} : memref<1152x256xbf16, #tpu.memory_space<vmem>>, vector<32x256xbf16>,
    %c0_27 = arith.constant 0 : index
    %c143 = arith.constant 143 : index
    %54 = vector.load %arg13[%c0_27, %c143] : memref<128x512xbf16, #tpu.memory_space<vmem>>, vector<32x256xbf16>
    %cst_28 = arith.constant 0.000000e+00 : bf16
    %55 = vector.broadcast %cst_28 : bf16 to vector<32x256xbf16>
    %56 = vector.shape_cast %21 : vector<1x256xi1> to vector<1x256xi1>
    %57 = vector.broadcast %56 : vector<1x256xi1> to vector<32x256xi1>
    %58 = arith.select %57, %54, %55 : vector<32x256xi1>, vector<32x256xbf16>
    %c192 = arith.constant 192 : index
    %c0_29 = arith.constant 0 : index
    %59 = vector.load %arg14[%c192, %c0_29] : memref<1152x256xbf16, #tpu.memory_space<vmem>>, vector<32x256xbf16>
    tpu.vector_store %arg14[%c192, %c0_29], %58 {strides = array<i32>} : memref<1152x256xbf16, #tpu.memory_space<vmem>>, vector<32x256xbf16>,
    %c0_30 = arith.constant 0 : index
    %c144 = arith.constant 144 : index
    %60 = vector.load %arg13[%c0_30, %c144] : memref<128x512xbf16, #tpu.memory_space<vmem>>, vector<32x256xbf16>
    %c224 = arith.constant 224 : index
    %c0_31 = arith.constant 0 : index
    %61 = vector.load %arg14[%c224, %c0_31] : memref<1152x256xbf16, #tpu.memory_space<vmem>>, vector<32x256xbf16>
    tpu.vector_store %arg14[%c224, %c0_31], %60 {strides = array<i32>} : memref<1152x256xbf16, #tpu.memory_space<vmem>>, vector<32x256xbf16>,
    %c0_32 = arith.constant 0 : index
    %c145 = arith.constant 145 : index
    %62 = vector.load %arg13[%c0_32, %c145] : memref<128x512xbf16, #tpu.memory_space<vmem>>, vector<32x256xbf16>
    %cst_33 = arith.constant 0.000000e+00 : bf16
    %63 = vector.broadcast %cst_33 : bf16 to vector<32x256xbf16>
    %64 = vector.shape_cast %23 : vector<1x256xi1> to vector<1x256xi1>
    %65 = vector.broadcast %64 : vector<1x256xi1> to vector<32x256xi1>
    %66 = arith.select %65, %62, %63 : vector<32x256xi1>, vector<32x256xbf16>
    %c256 = arith.constant 256 : index
    %c0_34 = arith.constant 0 : index
    %67 = vector.load %arg14[%c256, %c0_34] : memref<1152x256xbf16, #tpu.memory_space<vmem>>, vector<32x256xbf16>
    tpu.vector_store %arg14[%c256, %c0_34], %66 {strides = array<i32>} : memref<1152x256xbf16, #tpu.memory_space<vmem>>, vector<32x256xbf16>,
    %c0_35 = arith.constant 0 : index
    %c0_36 = arith.constant 0 : index
    %68 = vector.load %arg2[%c0_35, %c0_36] : memref<16x288xbf16, #tpu.memory_space<vmem>>, vector<16x288xbf16>
    %c0_37 = arith.constant 0 : index
    %c0_38 = arith.constant 0 : index
    %69 = vector.load %arg14[%c0_37, %c0_38] : memref<1152x256xbf16, #tpu.memory_space<vmem>>, vector<288x256xbf16>
    %cst_39 = arith.constant dense<0.000000e+00> : vector<16x256xf32>
    %70 = tpu.matmul %68, %69, %cst_39 {dimension_numbers = #tpu.dot_dimension_numbers<[1], [0], [0], [1], [0, 0, 1, 1], [], []>} : vector<16x288xbf16>, vector<288x256xbf16>, vector<16x256xf32> -> vector<16x256xf32>
    %c0_40 = arith.constant 0 : index
    %c0_41 = arith.constant 0 : index
    %71 = vector.load %arg3[%c0_40, %c0_41] : memref<16x1xf32, #tpu.memory_space<vmem>>, vector<16x1xf32>
    %72 = vector.broadcast %71 : vector<16x1xf32> to vector<16x256xf32>
    %73 = arith.addf %70, %72 : vector<16x256xf32>
    %cst_42 = arith.constant 0.000000e+00 : f32
    %74 = vector.broadcast %cst_42 : f32 to vector<16x256xf32>
    %75 = arith.cmpf oge, %73, %74 : vector<16x256xf32>
    %cst_43 = arith.constant 2.000000e-01 : f32
    %76 = vector.broadcast %cst_43 : f32 to vector<16x256xf32>
    %77 = arith.mulf %76, %73 : vector<16x256xf32>
    %78 = arith.select %75, %73, %77 : vector<16x256xi1>, vector<16x256xf32>
    %79 = arith.truncf %78 : vector<16x256xf32> to vector<16x256xbf16>
    %c0_44 = arith.constant 0 : index
    %c128_45 = arith.constant 128 : index
    %80 = vector.load %arg13[%c0_44, %c128_45] : memref<128x512xbf16, #tpu.memory_space<vmem>>, vector<16x256xbf16>
    tpu.vector_store %arg13[%c0_44, %c128_45], %79 {strides = array<i32>} : memref<128x512xbf16, #tpu.memory_space<vmem>>, vector<16x256xbf16>,
    %c0_46 = arith.constant 0 : index
    %c111_47 = arith.constant 111 : index
    %81 = vector.load %arg13[%c0_46, %c111_47] : memref<128x512xbf16, #tpu.memory_space<vmem>>, vector<16x256xbf16>
    %cst_48 = arith.constant 0.000000e+00 : bf16
    %82 = vector.broadcast %cst_48 : bf16 to vector<16x256xbf16>
    %83 = vector.shape_cast %21 : vector<1x256xi1> to vector<1x256xi1>
    %84 = vector.broadcast %83 : vector<1x256xi1> to vector<16x256xi1>
    %85 = arith.select %84, %81, %82 : vector<16x256xi1>, vector<16x256xbf16>
    %c0_49 = arith.constant 0 : index
    %c0_50 = arith.constant 0 : index
    %86 = vector.load %arg14[%c0_49, %c0_50] : memref<1152x256xbf16, #tpu.memory_space<vmem>>, vector<16x256xbf16>
    tpu.vector_store %arg14[%c0_49, %c0_50], %85 {strides = array<i32>} : memref<1152x256xbf16, #tpu.memory_space<vmem>>, vector<16x256xbf16>,
    %c0_51 = arith.constant 0 : index
    %c112_52 = arith.constant 112 : index
    %87 = vector.load %arg13[%c0_51, %c112_52] : memref<128x512xbf16, #tpu.memory_space<vmem>>, vector<16x256xbf16>
    %c16 = arith.constant 16 : index
    %c0_53 = arith.constant 0 : index
    %88 = vector.load %arg14[%c16, %c0_53] : memref<1152x256xbf16, #tpu.memory_space<vmem>>, vector<16x256xbf16>
    tpu.vector_store %arg14[%c16, %c0_53], %87 {strides = array<i32>} : memref<1152x256xbf16, #tpu.memory_space<vmem>>, vector<16x256xbf16>,
    %c0_54 = arith.constant 0 : index
    %c113_55 = arith.constant 113 : index
    %89 = vector.load %arg13[%c0_54, %c113_55] : memref<128x512xbf16, #tpu.memory_space<vmem>>, vector<16x256xbf16>
    %cst_56 = arith.constant 0.000000e+00 : bf16
    %90 = vector.broadcast %cst_56 : bf16 to vector<16x256xbf16>
    %91 = vector.shape_cast %23 : vector<1x256xi1> to vector<1x256xi1>
    %92 = vector.broadcast %91 : vector<1x256xi1> to vector<16x256xi1>
    %93 = arith.select %92, %89, %90 : vector<16x256xi1>, vector<16x256xbf16>
    %c32_57 = arith.constant 32 : index
    %c0_58 = arith.constant 0 : index
    %94 = vector.load %arg14[%c32_57, %c0_58] : memref<1152x256xbf16, #tpu.memory_space<vmem>>, vector<16x256xbf16>
    tpu.vector_store %arg14[%c32_57, %c0_58], %93 {strides = array<i32>} : memref<1152x256xbf16, #tpu.memory_space<vmem>>, vector<16x256xbf16>,
    %c0_59 = arith.constant 0 : index
    %c127_60 = arith.constant 127 : index
    %95 = vector.load %arg13[%c0_59, %c127_60] : memref<128x512xbf16, #tpu.memory_space<vmem>>, vector<16x256xbf16>
    %cst_61 = arith.constant 0.000000e+00 : bf16
    %96 = vector.broadcast %cst_61 : bf16 to vector<16x256xbf16>
    %97 = vector.shape_cast %21 : vector<1x256xi1> to vector<1x256xi1>
    %98 = vector.broadcast %97 : vector<1x256xi1> to vector<16x256xi1>
    %99 = arith.select %98, %95, %96 : vector<16x256xi1>, vector<16x256xbf16>
    %c48 = arith.constant 48 : index
    %c0_62 = arith.constant 0 : index
    %100 = vector.load %arg14[%c48, %c0_62] : memref<1152x256xbf16, #tpu.memory_space<vmem>>, vector<16x256xbf16>
    tpu.vector_store %arg14[%c48, %c0_62], %99 {strides = array<i32>} : memref<1152x256xbf16, #tpu.memory_space<vmem>>, vector<16x256xbf16>,
    %c64_63 = arith.constant 64 : index
    %c0_64 = arith.constant 0 : index
    %101 = vector.load %arg14[%c64_63, %c0_64] : memref<1152x256xbf16, #tpu.memory_space<vmem>>, vector<16x256xbf16>
    tpu.vector_store %arg14[%c64_63, %c0_64], %79 {strides = array<i32>} : memref<1152x256xbf16, #tpu.memory_space<vmem>>, vector<16x256xbf16>,
    %c0_65 = arith.constant 0 : index
    %c129_66 = arith.constant 129 : index
    %102 = vector.load %arg13[%c0_65, %c129_66] : memref<128x512xbf16, #tpu.memory_space<vmem>>, vector<16x256xbf16>
    %cst_67 = arith.constant 0.000000e+00 : bf16
    %103 = vector.broadcast %cst_67 : bf16 to vector<16x256xbf16>
    %104 = vector.shape_cast %23 : vector<1x256xi1> to vector<1x256xi1>
    %105 = vector.broadcast %104 : vector<1x256xi1> to vector<16x256xi1>
    %106 = arith.select %105, %102, %103 : vector<16x256xi1>, vector<16x256xbf16>
    %c80 = arith.constant 80 : index
    %c0_68 = arith.constant 0 : index
    %107 = vector.load %arg14[%c80, %c0_68] : memref<1152x256xbf16, #tpu.memory_space<vmem>>, vector<16x256xbf16>
    tpu.vector_store %arg14[%c80, %c0_68], %106 {strides = array<i32>} : memref<1152x256xbf16, #tpu.memory_space<vmem>>, vector<16x256xbf16>,
    %c0_69 = arith.constant 0 : index
    %c143_70 = arith.constant 143 : index
    %108 = vector.load %arg13[%c0_69, %c143_70] : memref<128x512xbf16, #tpu.memory_space<vmem>>, vector<16x256xbf16>
    %cst_71 = arith.constant 0.000000e+00 : bf16
    %109 = vector.broadcast %cst_71 : bf16 to vector<16x256xbf16>
    %110 = vector.shape_cast %21 : vector<1x256xi1> to vector<1x256xi1>
    %111 = vector.broadcast %110 : vector<1x256xi1> to vector<16x256xi1>
    %112 = arith.select %111, %108, %109 : vector<16x256xi1>, vector<16x256xbf16>
    %c96_72 = arith.constant 96 : index
    %c0_73 = arith.constant 0 : index
    %113 = vector.load %arg14[%c96_72, %c0_73] : memref<1152x256xbf16, #tpu.memory_space<vmem>>, vector<16x256xbf16>
    tpu.vector_store %arg14[%c96_72, %c0_73], %112 {strides = array<i32>} : memref<1152x256xbf16, #tpu.memory_space<vmem>>, vector<16x256xbf16>,
    %c0_74 = arith.constant 0 : index
    %c144_75 = arith.constant 144 : index
    %114 = vector.load %arg13[%c0_74, %c144_75] : memref<128x512xbf16, #tpu.memory_space<vmem>>, vector<16x256xbf16>
    %c112_76 = arith.constant 112 : index
    %c0_77 = arith.constant 0 : index
    %115 = vector.load %arg14[%c112_76, %c0_77] : memref<1152x256xbf16, #tpu.memory_space<vmem>>, vector<16x256xbf16>
    tpu.vector_store %arg14[%c112_76, %c0_77], %114 {strides = array<i32>} : memref<1152x256xbf16, #tpu.memory_space<vmem>>, vector<16x256xbf16>,
    %c0_78 = arith.constant 0 : index
    %c145_79 = arith.constant 145 : index
    %116 = vector.load %arg13[%c0_78, %c145_79] : memref<128x512xbf16, #tpu.memory_space<vmem>>, vector<16x256xbf16>
    %cst_80 = arith.constant 0.000000e+00 : bf16
    %117 = vector.broadcast %cst_80 : bf16 to vector<16x256xbf16>
    %118 = vector.shape_cast %23 : vector<1x256xi1> to vector<1x256xi1>
    %119 = vector.broadcast %118 : vector<1x256xi1> to vector<16x256xi1>
    %120 = arith.select %119, %116, %117 : vector<16x256xi1>, vector<16x256xbf16>
    %c128_81 = arith.constant 128 : index
    %c0_82 = arith.constant 0 : index
    %121 = vector.load %arg14[%c128_81, %c0_82] : memref<1152x256xbf16, #tpu.memory_space<vmem>>, vector<16x256xbf16>
    tpu.vector_store %arg14[%c128_81, %c0_82], %120 {strides = array<i32>} : memref<1152x256xbf16, #tpu.memory_space<vmem>>, vector<16x256xbf16>,
    %c0_83 = arith.constant 0 : index
    %c0_84 = arith.constant 0 : index
    %122 = vector.load %arg4[%c0_83, %c0_84] : memref<32x144xbf16, #tpu.memory_space<vmem>>, vector<32x144xbf16>
    %c0_85 = arith.constant 0 : index
    %c0_86 = arith.constant 0 : index
    %123 = vector.load %arg14[%c0_85, %c0_86] : memref<1152x256xbf16, #tpu.memory_space<vmem>>, vector<144x256xbf16>
    %cst_87 = arith.constant dense<0.000000e+00> : vector<32x256xf32>
    %124 = tpu.matmul %122, %123, %cst_87 {dimension_numbers = #tpu.dot_dimension_numbers<[1], [0], [0], [1], [0, 0, 1, 1], [], []>} : vector<32x144xbf16>, vector<144x256xbf16>, vector<32x256xf32> -> vector<32x256xf32>
    %c0_88 = arith.constant 0 : index
    %c0_89 = arith.constant 0 : index
    %125 = vector.load %arg5[%c0_88, %c0_89] : memref<32x1xf32, #tpu.memory_space<vmem>>, vector<32x1xf32>
    %126 = vector.broadcast %125 : vector<32x1xf32> to vector<32x256xf32>
    %127 = arith.addf %124, %126 : vector<32x256xf32>
    %cst_90 = arith.constant 0.000000e+00 : f32
    %128 = vector.broadcast %cst_90 : f32 to vector<32x256xf32>
    %129 = arith.cmpf oge, %127, %128 : vector<32x256xf32>
    %cst_91 = arith.constant 2.000000e-01 : f32
    %130 = vector.broadcast %cst_91 : f32 to vector<32x256xf32>
    %131 = arith.mulf %130, %127 : vector<32x256xf32>
    %132 = arith.select %129, %127, %131 : vector<32x256xi1>, vector<32x256xf32>
    %133 = arith.truncf %132 : vector<32x256xf32> to vector<32x256xbf16>
    %c0_92 = arith.constant 0 : index
    %c128_93 = arith.constant 128 : index
    %134 = vector.load %arg13[%c0_92, %c128_93] : memref<128x512xbf16, #tpu.memory_space<vmem>>, vector<32x256xbf16>
    tpu.vector_store %arg13[%c0_92, %c128_93], %133 {strides = array<i32>} : memref<128x512xbf16, #tpu.memory_space<vmem>>, vector<32x256xbf16>,
    %c0_94 = arith.constant 0 : index
    %c111_95 = arith.constant 111 : index
    %135 = vector.load %arg13[%c0_94, %c111_95] : memref<128x512xbf16, #tpu.memory_space<vmem>>, vector<32x256xbf16>
    %cst_96 = arith.constant 0.000000e+00 : bf16
    %136 = vector.broadcast %cst_96 : bf16 to vector<32x256xbf16>
    %137 = vector.shape_cast %21 : vector<1x256xi1> to vector<1x256xi1>
    %138 = vector.broadcast %137 : vector<1x256xi1> to vector<32x256xi1>
    %139 = arith.select %138, %135, %136 : vector<32x256xi1>, vector<32x256xbf16>
    %c0_97 = arith.constant 0 : index
    %c0_98 = arith.constant 0 : index
    %140 = vector.load %arg14[%c0_97, %c0_98] : memref<1152x256xbf16, #tpu.memory_space<vmem>>, vector<32x256xbf16>
    tpu.vector_store %arg14[%c0_97, %c0_98], %139 {strides = array<i32>} : memref<1152x256xbf16, #tpu.memory_space<vmem>>, vector<32x256xbf16>,
    %c0_99 = arith.constant 0 : index
    %c112_100 = arith.constant 112 : index
    %141 = vector.load %arg13[%c0_99, %c112_100] : memref<128x512xbf16, #tpu.memory_space<vmem>>, vector<32x256xbf16>
    %c32_101 = arith.constant 32 : index
    %c0_102 = arith.constant 0 : index
    %142 = vector.load %arg14[%c32_101, %c0_102] : memref<1152x256xbf16, #tpu.memory_space<vmem>>, vector<32x256xbf16>
    tpu.vector_store %arg14[%c32_101, %c0_102], %141 {strides = array<i32>} : memref<1152x256xbf16, #tpu.memory_space<vmem>>, vector<32x256xbf16>,
    %c0_103 = arith.constant 0 : index
    %c113_104 = arith.constant 113 : index
    %143 = vector.load %arg13[%c0_103, %c113_104] : memref<128x512xbf16, #tpu.memory_space<vmem>>, vector<32x256xbf16>
    %cst_105 = arith.constant 0.000000e+00 : bf16
    %144 = vector.broadcast %cst_105 : bf16 to vector<32x256xbf16>
    %145 = vector.shape_cast %23 : vector<1x256xi1> to vector<1x256xi1>
    %146 = vector.broadcast %145 : vector<1x256xi1> to vector<32x256xi1>
    %147 = arith.select %146, %143, %144 : vector<32x256xi1>, vector<32x256xbf16>
    %c64_106 = arith.constant 64 : index
    %c0_107 = arith.constant 0 : index
    %148 = vector.load %arg14[%c64_106, %c0_107] : memref<1152x256xbf16, #tpu.memory_space<vmem>>, vector<32x256xbf16>
    tpu.vector_store %arg14[%c64_106, %c0_107], %147 {strides = array<i32>} : memref<1152x256xbf16, #tpu.memory_space<vmem>>, vector<32x256xbf16>,
    %c0_108 = arith.constant 0 : index
    %c127_109 = arith.constant 127 : index
    %149 = vector.load %arg13[%c0_108, %c127_109] : memref<128x512xbf16, #tpu.memory_space<vmem>>, vector<32x256xbf16>
    %cst_110 = arith.constant 0.000000e+00 : bf16
    %150 = vector.broadcast %cst_110 : bf16 to vector<32x256xbf16>
    %151 = vector.shape_cast %21 : vector<1x256xi1> to vector<1x256xi1>
    %152 = vector.broadcast %151 : vector<1x256xi1> to vector<32x256xi1>
    %153 = arith.select %152, %149, %150 : vector<32x256xi1>, vector<32x256xbf16>
    %c96_111 = arith.constant 96 : index
    %c0_112 = arith.constant 0 : index
    %154 = vector.load %arg14[%c96_111, %c0_112] : memref<1152x256xbf16, #tpu.memory_space<vmem>>, vector<32x256xbf16>
    tpu.vector_store %arg14[%c96_111, %c0_112], %153 {strides = array<i32>} : memref<1152x256xbf16, #tpu.memory_space<vmem>>, vector<32x256xbf16>,
    %c128_113 = arith.constant 128 : index
    %c0_114 = arith.constant 0 : index
    %155 = vector.load %arg14[%c128_113, %c0_114] : memref<1152x256xbf16, #tpu.memory_space<vmem>>, vector<32x256xbf16>
    tpu.vector_store %arg14[%c128_113, %c0_114], %133 {strides = array<i32>} : memref<1152x256xbf16, #tpu.memory_space<vmem>>, vector<32x256xbf16>,
    %c0_115 = arith.constant 0 : index
    %c129_116 = arith.constant 129 : index
    %156 = vector.load %arg13[%c0_115, %c129_116] : memref<128x512xbf16, #tpu.memory_space<vmem>>, vector<32x256xbf16>
    %cst_117 = arith.constant 0.000000e+00 : bf16
    %157 = vector.broadcast %cst_117 : bf16 to vector<32x256xbf16>
    %158 = vector.shape_cast %23 : vector<1x256xi1> to vector<1x256xi1>
    %159 = vector.broadcast %158 : vector<1x256xi1> to vector<32x256xi1>
    %160 = arith.select %159, %156, %157 : vector<32x256xi1>, vector<32x256xbf16>
    %c160_118 = arith.constant 160 : index
    %c0_119 = arith.constant 0 : index
    %161 = vector.load %arg14[%c160_118, %c0_119] : memref<1152x256xbf16, #tpu.memory_space<vmem>>, vector<32x256xbf16>
    tpu.vector_store %arg14[%c160_118, %c0_119], %160 {strides = array<i32>} : memref<1152x256xbf16, #tpu.memory_space<vmem>>, vector<32x256xbf16>,
    %c0_120 = arith.constant 0 : index
    %c143_121 = arith.constant 143 : index
    %162 = vector.load %arg13[%c0_120, %c143_121] : memref<128x512xbf16, #tpu.memory_space<vmem>>, vector<32x256xbf16>
    %cst_122 = arith.constant 0.000000e+00 : bf16
    %163 = vector.broadcast %cst_122 : bf16 to vector<32x256xbf16>
    %164 = vector.shape_cast %21 : vector<1x256xi1> to vector<1x256xi1>
    %165 = vector.broadcast %164 : vector<1x256xi1> to vector<32x256xi1>
    %166 = arith.select %165, %162, %163 : vector<32x256xi1>, vector<32x256xbf16>
    %c192_123 = arith.constant 192 : index
    %c0_124 = arith.constant 0 : index
    %167 = vector.load %arg14[%c192_123, %c0_124] : memref<1152x256xbf16, #tpu.memory_space<vmem>>, vector<32x256xbf16>
    tpu.vector_store %arg14[%c192_123, %c0_124], %166 {strides = array<i32>} : memref<1152x256xbf16, #tpu.memory_space<vmem>>, vector<32x256xbf16>,
    %c0_125 = arith.constant 0 : index
    %c144_126 = arith.constant 144 : index
    %168 = vector.load %arg13[%c0_125, %c144_126] : memref<128x512xbf16, #tpu.memory_space<vmem>>, vector<32x256xbf16>
    %c224_127 = arith.constant 224 : index
    %c0_128 = arith.constant 0 : index
    %169 = vector.load %arg14[%c224_127, %c0_128] : memref<1152x256xbf16, #tpu.memory_space<vmem>>, vector<32x256xbf16>
    tpu.vector_store %arg14[%c224_127, %c0_128], %168 {strides = array<i32>} : memref<1152x256xbf16, #tpu.memory_space<vmem>>, vector<32x256xbf16>,
    %c0_129 = arith.constant 0 : index
    %c145_130 = arith.constant 145 : index
    %170 = vector.load %arg13[%c0_129, %c145_130] : memref<128x512xbf16, #tpu.memory_space<vmem>>, vector<32x256xbf16>
    %cst_131 = arith.constant 0.000000e+00 : bf16
    %171 = vector.broadcast %cst_131 : bf16 to vector<32x256xbf16>
    %172 = vector.shape_cast %23 : vector<1x256xi1> to vector<1x256xi1>
    %173 = vector.broadcast %172 : vector<1x256xi1> to vector<32x256xi1>
    %174 = arith.select %173, %170, %171 : vector<32x256xi1>, vector<32x256xbf16>
    %c256_132 = arith.constant 256 : index
    %c0_133 = arith.constant 0 : index
    %175 = vector.load %arg14[%c256_132, %c0_133] : memref<1152x256xbf16, #tpu.memory_space<vmem>>, vector<32x256xbf16>
    tpu.vector_store %arg14[%c256_132, %c0_133], %174 {strides = array<i32>} : memref<1152x256xbf16, #tpu.memory_space<vmem>>, vector<32x256xbf16>,
    %c0_134 = arith.constant 0 : index
    %c0_135 = arith.constant 0 : index
    %176 = vector.load %arg6[%c0_134, %c0_135] : memref<64x288xbf16, #tpu.memory_space<vmem>>, vector<64x288xbf16>
    %c0_136 = arith.constant 0 : index
    %c0_137 = arith.constant 0 : index
    %177 = vector.load %arg14[%c0_136, %c0_137] : memref<1152x256xbf16, #tpu.memory_space<vmem>>, vector<288x256xbf16>
    %cst_138 = arith.constant dense<0.000000e+00> : vector<64x256xf32>
    %178 = tpu.matmul %176, %177, %cst_138 {dimension_numbers = #tpu.dot_dimension_numbers<[1], [0], [0], [1], [0, 0, 1, 1], [], []>} : vector<64x288xbf16>, vector<288x256xbf16>, vector<64x256xf32> -> vector<64x256xf32>
    %c0_139 = arith.constant 0 : index
    %c0_140 = arith.constant 0 : index
    %179 = vector.load %arg7[%c0_139, %c0_140] : memref<64x1xf32, #tpu.memory_space<vmem>>, vector<64x1xf32>
    %180 = vector.broadcast %179 : vector<64x1xf32> to vector<64x256xf32>
    %181 = arith.addf %178, %180 : vector<64x256xf32>
    %cst_141 = arith.constant 0.000000e+00 : f32
    %182 = vector.broadcast %cst_141 : f32 to vector<64x256xf32>
    %183 = arith.cmpf oge, %181, %182 : vector<64x256xf32>
    %cst_142 = arith.constant 2.000000e-01 : f32
    %184 = vector.broadcast %cst_142 : f32 to vector<64x256xf32>
    %185 = arith.mulf %184, %181 : vector<64x256xf32>
    %186 = arith.select %183, %181, %185 : vector<64x256xi1>, vector<64x256xf32>
    %187 = arith.truncf %186 : vector<64x256xf32> to vector<64x256xbf16>
    %c0_143 = arith.constant 0 : index
    %c128_144 = arith.constant 128 : index
    %188 = vector.load %arg13[%c0_143, %c128_144] : memref<128x512xbf16, #tpu.memory_space<vmem>>, vector<64x256xbf16>
    tpu.vector_store %arg13[%c0_143, %c128_144], %187 {strides = array<i32>} : memref<128x512xbf16, #tpu.memory_space<vmem>>, vector<64x256xbf16>,
    %c0_145 = arith.constant 0 : index
    %c111_146 = arith.constant 111 : index
    %189 = vector.load %arg13[%c0_145, %c111_146] : memref<128x512xbf16, #tpu.memory_space<vmem>>, vector<64x256xbf16>
    %cst_147 = arith.constant 0.000000e+00 : bf16
    %190 = vector.broadcast %cst_147 : bf16 to vector<64x256xbf16>
    %191 = vector.shape_cast %21 : vector<1x256xi1> to vector<1x256xi1>
    %192 = vector.broadcast %191 : vector<1x256xi1> to vector<64x256xi1>
    %193 = arith.select %192, %189, %190 : vector<64x256xi1>, vector<64x256xbf16>
    %c0_148 = arith.constant 0 : index
    %c0_149 = arith.constant 0 : index
    %194 = vector.load %arg14[%c0_148, %c0_149] : memref<1152x256xbf16, #tpu.memory_space<vmem>>, vector<64x256xbf16>
    tpu.vector_store %arg14[%c0_148, %c0_149], %193 {strides = array<i32>} : memref<1152x256xbf16, #tpu.memory_space<vmem>>, vector<64x256xbf16>,
    %c0_150 = arith.constant 0 : index
    %c112_151 = arith.constant 112 : index
    %195 = vector.load %arg13[%c0_150, %c112_151] : memref<128x512xbf16, #tpu.memory_space<vmem>>, vector<64x256xbf16>
    %c64_152 = arith.constant 64 : index
    %c0_153 = arith.constant 0 : index
    %196 = vector.load %arg14[%c64_152, %c0_153] : memref<1152x256xbf16, #tpu.memory_space<vmem>>, vector<64x256xbf16>
    tpu.vector_store %arg14[%c64_152, %c0_153], %195 {strides = array<i32>} : memref<1152x256xbf16, #tpu.memory_space<vmem>>, vector<64x256xbf16>,
    %c0_154 = arith.constant 0 : index
    %c113_155 = arith.constant 113 : index
    %197 = vector.load %arg13[%c0_154, %c113_155] : memref<128x512xbf16, #tpu.memory_space<vmem>>, vector<64x256xbf16>
    %cst_156 = arith.constant 0.000000e+00 : bf16
    %198 = vector.broadcast %cst_156 : bf16 to vector<64x256xbf16>
    %199 = vector.shape_cast %23 : vector<1x256xi1> to vector<1x256xi1>
    %200 = vector.broadcast %199 : vector<1x256xi1> to vector<64x256xi1>
    %201 = arith.select %200, %197, %198 : vector<64x256xi1>, vector<64x256xbf16>
    %c128_157 = arith.constant 128 : index
    %c0_158 = arith.constant 0 : index
    %202 = vector.load %arg14[%c128_157, %c0_158] : memref<1152x256xbf16, #tpu.memory_space<vmem>>, vector<64x256xbf16>
    tpu.vector_store %arg14[%c128_157, %c0_158], %201 {strides = array<i32>} : memref<1152x256xbf16, #tpu.memory_space<vmem>>, vector<64x256xbf16>,
    %c0_159 = arith.constant 0 : index
    %c127_160 = arith.constant 127 : index
    %203 = vector.load %arg13[%c0_159, %c127_160] : memref<128x512xbf16, #tpu.memory_space<vmem>>, vector<64x256xbf16>
    %cst_161 = arith.constant 0.000000e+00 : bf16
    %204 = vector.broadcast %cst_161 : bf16 to vector<64x256xbf16>
    %205 = vector.shape_cast %21 : vector<1x256xi1> to vector<1x256xi1>
    %206 = vector.broadcast %205 : vector<1x256xi1> to vector<64x256xi1>
    %207 = arith.select %206, %203, %204 : vector<64x256xi1>, vector<64x256xbf16>
    %c192_162 = arith.constant 192 : index
    %c0_163 = arith.constant 0 : index
    %208 = vector.load %arg14[%c192_162, %c0_163] : memref<1152x256xbf16, #tpu.memory_space<vmem>>, vector<64x256xbf16>
    tpu.vector_store %arg14[%c192_162, %c0_163], %207 {strides = array<i32>} : memref<1152x256xbf16, #tpu.memory_space<vmem>>, vector<64x256xbf16>,
    %c256_164 = arith.constant 256 : index
    %c0_165 = arith.constant 0 : index
    %209 = vector.load %arg14[%c256_164, %c0_165] : memref<1152x256xbf16, #tpu.memory_space<vmem>>, vector<64x256xbf16>
    tpu.vector_store %arg14[%c256_164, %c0_165], %187 {strides = array<i32>} : memref<1152x256xbf16, #tpu.memory_space<vmem>>, vector<64x256xbf16>,
    %c0_166 = arith.constant 0 : index
    %c129_167 = arith.constant 129 : index
    %210 = vector.load %arg13[%c0_166, %c129_167] : memref<128x512xbf16, #tpu.memory_space<vmem>>, vector<64x256xbf16>
    %cst_168 = arith.constant 0.000000e+00 : bf16
    %211 = vector.broadcast %cst_168 : bf16 to vector<64x256xbf16>
    %212 = vector.shape_cast %23 : vector<1x256xi1> to vector<1x256xi1>
    %213 = vector.broadcast %212 : vector<1x256xi1> to vector<64x256xi1>
    %214 = arith.select %213, %210, %211 : vector<64x256xi1>, vector<64x256xbf16>
    %c320 = arith.constant 320 : index
    %c0_169 = arith.constant 0 : index
    %215 = vector.load %arg14[%c320, %c0_169] : memref<1152x256xbf16, #tpu.memory_space<vmem>>, vector<64x256xbf16>
    tpu.vector_store %arg14[%c320, %c0_169], %214 {strides = array<i32>} : memref<1152x256xbf16, #tpu.memory_space<vmem>>, vector<64x256xbf16>,
    %c0_170 = arith.constant 0 : index
    %c143_171 = arith.constant 143 : index
    %216 = vector.load %arg13[%c0_170, %c143_171] : memref<128x512xbf16, #tpu.memory_space<vmem>>, vector<64x256xbf16>
    %cst_172 = arith.constant 0.000000e+00 : bf16
    %217 = vector.broadcast %cst_172 : bf16 to vector<64x256xbf16>
    %218 = vector.shape_cast %21 : vector<1x256xi1> to vector<1x256xi1>
    %219 = vector.broadcast %218 : vector<1x256xi1> to vector<64x256xi1>
    %220 = arith.select %219, %216, %217 : vector<64x256xi1>, vector<64x256xbf16>
    %c384_173 = arith.constant 384 : index
    %c0_174 = arith.constant 0 : index
    %221 = vector.load %arg14[%c384_173, %c0_174] : memref<1152x256xbf16, #tpu.memory_space<vmem>>, vector<64x256xbf16>
    tpu.vector_store %arg14[%c384_173, %c0_174], %220 {strides = array<i32>} : memref<1152x256xbf16, #tpu.memory_space<vmem>>, vector<64x256xbf16>,
    %c0_175 = arith.constant 0 : index
    %c144_176 = arith.constant 144 : index
    %222 = vector.load %arg13[%c0_175, %c144_176] : memref<128x512xbf16, #tpu.memory_space<vmem>>, vector<64x256xbf16>
    %c448 = arith.constant 448 : index
    %c0_177 = arith.constant 0 : index
    %223 = vector.load %arg14[%c448, %c0_177] : memref<1152x256xbf16, #tpu.memory_space<vmem>>, vector<64x256xbf16>
    tpu.vector_store %arg14[%c448, %c0_177], %222 {strides = array<i32>} : memref<1152x256xbf16, #tpu.memory_space<vmem>>, vector<64x256xbf16>,
    %c0_178 = arith.constant 0 : index
    %c145_179 = arith.constant 145 : index
    %224 = vector.load %arg13[%c0_178, %c145_179] : memref<128x512xbf16, #tpu.memory_space<vmem>>, vector<64x256xbf16>
    %cst_180 = arith.constant 0.000000e+00 : bf16
    %225 = vector.broadcast %cst_180 : bf16 to vector<64x256xbf16>
    %226 = vector.shape_cast %23 : vector<1x256xi1> to vector<1x256xi1>
    %227 = vector.broadcast %226 : vector<1x256xi1> to vector<64x256xi1>
    %228 = arith.select %227, %224, %225 : vector<64x256xi1>, vector<64x256xbf16>
    %c512 = arith.constant 512 : index
    %c0_181 = arith.constant 0 : index
    %229 = vector.load %arg14[%c512, %c0_181] : memref<1152x256xbf16, #tpu.memory_space<vmem>>, vector<64x256xbf16>
    tpu.vector_store %arg14[%c512, %c0_181], %228 {strides = array<i32>} : memref<1152x256xbf16, #tpu.memory_space<vmem>>, vector<64x256xbf16>,
    %c0_182 = arith.constant 0 : index
    %c0_183 = arith.constant 0 : index
    %230 = vector.load %arg8[%c0_182, %c0_183] : memref<128x576xbf16, #tpu.memory_space<vmem>>, vector<128x576xbf16>
    %c0_184 = arith.constant 0 : index
    %c0_185 = arith.constant 0 : index
    %231 = vector.load %arg14[%c0_184, %c0_185] : memref<1152x256xbf16, #tpu.memory_space<vmem>>, vector<576x256xbf16>
    %cst_186 = arith.constant dense<0.000000e+00> : vector<128x256xf32>
    %232 = tpu.matmul %230, %231, %cst_186 {dimension_numbers = #tpu.dot_dimension_numbers<[1], [0], [0], [1], [0, 0, 1, 1], [], []>} : vector<128x576xbf16>, vector<576x256xbf16>, vector<128x256xf32> -> vector<128x256xf32>
    %c0_187 = arith.constant 0 : index
    %c0_188 = arith.constant 0 : index
    %233 = vector.load %arg9[%c0_187, %c0_188] : memref<128x1xf32, #tpu.memory_space<vmem>>, vector<128x1xf32>
    %234 = vector.broadcast %233 : vector<128x1xf32> to vector<128x256xf32>
    %235 = arith.addf %232, %234 : vector<128x256xf32>
    %cst_189 = arith.constant 0.000000e+00 : f32
    %236 = vector.broadcast %cst_189 : f32 to vector<128x256xf32>
    %237 = arith.cmpf oge, %235, %236 : vector<128x256xf32>
    %cst_190 = arith.constant 2.000000e-01 : f32
    %238 = vector.broadcast %cst_190 : f32 to vector<128x256xf32>
    %239 = arith.mulf %238, %235 : vector<128x256xf32>
    %240 = arith.select %237, %235, %239 : vector<128x256xi1>, vector<128x256xf32>
    %241 = arith.truncf %240 : vector<128x256xf32> to vector<128x256xbf16>
    %c0_191 = arith.constant 0 : index
    %c128_192 = arith.constant 128 : index
    %242 = vector.load %arg13[%c0_191, %c128_192] : memref<128x512xbf16, #tpu.memory_space<vmem>>, vector<128x256xbf16>
    tpu.vector_store %arg13[%c0_191, %c128_192], %241 {strides = array<i32>} : memref<128x512xbf16, #tpu.memory_space<vmem>>, vector<128x256xbf16>,
    %c0_193 = arith.constant 0 : index
    %c111_194 = arith.constant 111 : index
    %243 = vector.load %arg13[%c0_193, %c111_194] : memref<128x512xbf16, #tpu.memory_space<vmem>>, vector<128x256xbf16>
    %cst_195 = arith.constant 0.000000e+00 : bf16
    %244 = vector.broadcast %cst_195 : bf16 to vector<128x256xbf16>
    %245 = vector.shape_cast %21 : vector<1x256xi1> to vector<1x256xi1>
    %246 = vector.broadcast %245 : vector<1x256xi1> to vector<128x256xi1>
    %247 = arith.select %246, %243, %244 : vector<128x256xi1>, vector<128x256xbf16>
    %c0_196 = arith.constant 0 : index
    %c0_197 = arith.constant 0 : index
    %248 = vector.load %arg14[%c0_196, %c0_197] : memref<1152x256xbf16, #tpu.memory_space<vmem>>, vector<128x256xbf16>
    tpu.vector_store %arg14[%c0_196, %c0_197], %247 {strides = array<i32>} : memref<1152x256xbf16, #tpu.memory_space<vmem>>, vector<128x256xbf16>,
    %c0_198 = arith.constant 0 : index
    %c112_199 = arith.constant 112 : index
    %249 = vector.load %arg13[%c0_198, %c112_199] : memref<128x512xbf16, #tpu.memory_space<vmem>>, vector<128x256xbf16>
    %c128_200 = arith.constant 128 : index
    %c0_201 = arith.constant 0 : index
    %250 = vector.load %arg14[%c128_200, %c0_201] : memref<1152x256xbf16, #tpu.memory_space<vmem>>, vector<128x256xbf16>
    tpu.vector_store %arg14[%c128_200, %c0_201], %249 {strides = array<i32>} : memref<1152x256xbf16, #tpu.memory_space<vmem>>, vector<128x256xbf16>,
    %c0_202 = arith.constant 0 : index
    %c113_203 = arith.constant 113 : index
    %251 = vector.load %arg13[%c0_202, %c113_203] : memref<128x512xbf16, #tpu.memory_space<vmem>>, vector<128x256xbf16>
    %cst_204 = arith.constant 0.000000e+00 : bf16
    %252 = vector.broadcast %cst_204 : bf16 to vector<128x256xbf16>
    %253 = vector.shape_cast %23 : vector<1x256xi1> to vector<1x256xi1>
    %254 = vector.broadcast %253 : vector<1x256xi1> to vector<128x256xi1>
    %255 = arith.select %254, %251, %252 : vector<128x256xi1>, vector<128x256xbf16>
    %c256_205 = arith.constant 256 : index
    %c0_206 = arith.constant 0 : index
    %256 = vector.load %arg14[%c256_205, %c0_206] : memref<1152x256xbf16, #tpu.memory_space<vmem>>, vector<128x256xbf16>
    tpu.vector_store %arg14[%c256_205, %c0_206], %255 {strides = array<i32>} : memref<1152x256xbf16, #tpu.memory_space<vmem>>, vector<128x256xbf16>,
    %c0_207 = arith.constant 0 : index
    %c127_208 = arith.constant 127 : index
    %257 = vector.load %arg13[%c0_207, %c127_208] : memref<128x512xbf16, #tpu.memory_space<vmem>>, vector<128x256xbf16>
    %cst_209 = arith.constant 0.000000e+00 : bf16
    %258 = vector.broadcast %cst_209 : bf16 to vector<128x256xbf16>
    %259 = vector.shape_cast %21 : vector<1x256xi1> to vector<1x256xi1>
    %260 = vector.broadcast %259 : vector<1x256xi1> to vector<128x256xi1>
    %261 = arith.select %260, %257, %258 : vector<128x256xi1>, vector<128x256xbf16>
    %c384_210 = arith.constant 384 : index
    %c0_211 = arith.constant 0 : index
    %262 = vector.load %arg14[%c384_210, %c0_211] : memref<1152x256xbf16, #tpu.memory_space<vmem>>, vector<128x256xbf16>
    tpu.vector_store %arg14[%c384_210, %c0_211], %261 {strides = array<i32>} : memref<1152x256xbf16, #tpu.memory_space<vmem>>, vector<128x256xbf16>,
    %c512_212 = arith.constant 512 : index
    %c0_213 = arith.constant 0 : index
    %263 = vector.load %arg14[%c512_212, %c0_213] : memref<1152x256xbf16, #tpu.memory_space<vmem>>, vector<128x256xbf16>
    tpu.vector_store %arg14[%c512_212, %c0_213], %241 {strides = array<i32>} : memref<1152x256xbf16, #tpu.memory_space<vmem>>, vector<128x256xbf16>,
    %c0_214 = arith.constant 0 : index
    %c129_215 = arith.constant 129 : index
    %264 = vector.load %arg13[%c0_214, %c129_215] : memref<128x512xbf16, #tpu.memory_space<vmem>>, vector<128x256xbf16>
    %cst_216 = arith.constant 0.000000e+00 : bf16
    %265 = vector.broadcast %cst_216 : bf16 to vector<128x256xbf16>
    %266 = vector.shape_cast %23 : vector<1x256xi1> to vector<1x256xi1>
    %267 = vector.broadcast %266 : vector<1x256xi1> to vector<128x256xi1>
    %268 = arith.select %267, %264, %265 : vector<128x256xi1>, vector<128x256xbf16>
    %c640 = arith.constant 640 : index
    %c0_217 = arith.constant 0 : index
    %269 = vector.load %arg14[%c640, %c0_217] : memref<1152x256xbf16, #tpu.memory_space<vmem>>, vector<128x256xbf16>
    tpu.vector_store %arg14[%c640, %c0_217], %268 {strides = array<i32>} : memref<1152x256xbf16, #tpu.memory_space<vmem>>, vector<128x256xbf16>,
    %c0_218 = arith.constant 0 : index
    %c143_219 = arith.constant 143 : index
    %270 = vector.load %arg13[%c0_218, %c143_219] : memref<128x512xbf16, #tpu.memory_space<vmem>>, vector<128x256xbf16>
    %cst_220 = arith.constant 0.000000e+00 : bf16
    %271 = vector.broadcast %cst_220 : bf16 to vector<128x256xbf16>
    %272 = vector.shape_cast %21 : vector<1x256xi1> to vector<1x256xi1>
    %273 = vector.broadcast %272 : vector<1x256xi1> to vector<128x256xi1>
    %274 = arith.select %273, %270, %271 : vector<128x256xi1>, vector<128x256xbf16>
    %c768 = arith.constant 768 : index
    %c0_221 = arith.constant 0 : index
    %275 = vector.load %arg14[%c768, %c0_221] : memref<1152x256xbf16, #tpu.memory_space<vmem>>, vector<128x256xbf16>
    tpu.vector_store %arg14[%c768, %c0_221], %274 {strides = array<i32>} : memref<1152x256xbf16, #tpu.memory_space<vmem>>, vector<128x256xbf16>,
    %c0_222 = arith.constant 0 : index
    %c144_223 = arith.constant 144 : index
    %276 = vector.load %arg13[%c0_222, %c144_223] : memref<128x512xbf16, #tpu.memory_space<vmem>>, vector<128x256xbf16>
    %c896 = arith.constant 896 : index
    %c0_224 = arith.constant 0 : index
    %277 = vector.load %arg14[%c896, %c0_224] : memref<1152x256xbf16, #tpu.memory_space<vmem>>, vector<128x256xbf16>
    tpu.vector_store %arg14[%c896, %c0_224], %276 {strides = array<i32>} : memref<1152x256xbf16, #tpu.memory_space<vmem>>, vector<128x256xbf16>,
    %c0_225 = arith.constant 0 : index
    %c145_226 = arith.constant 145 : index
    %278 = vector.load %arg13[%c0_225, %c145_226] : memref<128x512xbf16, #tpu.memory_space<vmem>>, vector<128x256xbf16>
    %cst_227 = arith.constant 0.000000e+00 : bf16
    %279 = vector.broadcast %cst_227 : bf16 to vector<128x256xbf16>
    %280 = vector.shape_cast %23 : vector<1x256xi1> to vector<1x256xi1>
    %281 = vector.broadcast %280 : vector<1x256xi1> to vector<128x256xi1>
    %282 = arith.select %281, %278, %279 : vector<128x256xi1>, vector<128x256xbf16>
    %c1024 = arith.constant 1024 : index
    %c0_228 = arith.constant 0 : index
    %283 = vector.load %arg14[%c1024, %c0_228] : memref<1152x256xbf16, #tpu.memory_space<vmem>>, vector<128x256xbf16>
    tpu.vector_store %arg14[%c1024, %c0_228], %282 {strides = array<i32>} : memref<1152x256xbf16, #tpu.memory_space<vmem>>, vector<128x256xbf16>,
    %c0_229 = arith.constant 0 : index
    %c0_230 = arith.constant 0 : index
    %284 = vector.load %arg10[%c0_229, %c0_230] : memref<8x1152xbf16, #tpu.memory_space<vmem>>, vector<8x1152xbf16>
    %c0_231 = arith.constant 0 : index
    %c0_232 = arith.constant 0 : index
    %285 = vector.load %arg14[%c0_231, %c0_232] : memref<1152x256xbf16, #tpu.memory_space<vmem>>, vector<1152x256xbf16>
    %cst_233 = arith.constant dense<0.000000e+00> : vector<8x256xf32>
    %286 = tpu.matmul %284, %285, %cst_233 {dimension_numbers = #tpu.dot_dimension_numbers<[1], [0], [0], [1], [0, 0, 1, 1], [], []>} : vector<8x1152xbf16>, vector<1152x256xbf16>, vector<8x256xf32> -> vector<8x256xf32>
    %c0_234 = arith.constant 0 : index
    %c0_235 = arith.constant 0 : index
    %287 = vector.load %arg11[%c0_234, %c0_235] : memref<8x1xf32, #tpu.memory_space<vmem>>, vector<8x1xf32>
    %288 = vector.broadcast %287 : vector<8x1xf32> to vector<8x256xf32>
    %289 = arith.addf %286, %288 : vector<8x256xf32>
    %c0_236 = arith.constant 0 : index
    %c0_237 = arith.constant 0 : index
    %c0_238 = arith.constant 0 : index
    %290 = vector.load %arg12[%c0_236, %c0_237, %c0_238] : memref<1x8x256xf32, #tpu.memory_space<vmem>>, vector<1x8x256xf32>
    %291 = vector.shape_cast %290 : vector<1x8x256xf32> to vector<8x256xf32>
    %292 = vector.shape_cast %289 : vector<8x256xf32> to vector<1x8x256xf32>
    tpu.vector_store %arg12[%c0_236, %c0_237, %c0_238], %292 {strides = array<i32>} : memref<1x8x256xf32, #tpu.memory_space<vmem>>, vector<1x8x256xf32>,
    return
  }
  func.func @transform_0(%arg0: i32) -> (i32, i32, i32) {
    %c0_i32 = arith.constant 0 : i32
    %c0_i32_0 = arith.constant 0 : i32
    %c0_i32_1 = arith.constant 0 : i32
    return %arg0, %c0_i32, %c0_i32_0 : i32, i32, i32
  }
  func.func @transform_1(%arg0: i32) -> (i32, i32) {
    %c0_i32 = arith.constant 0 : i32
    %c0_i32_0 = arith.constant 0 : i32
    %c0_i32_1 = arith.constant 0 : i32
    return %c0_i32, %c0_i32_0 : i32, i32
  }
  func.func @transform_2(%arg0: i32) -> (i32, i32) {
    %c0_i32 = arith.constant 0 : i32
    %c0_i32_0 = arith.constant 0 : i32
    %c0_i32_1 = arith.constant 0 : i32
    return %c0_i32, %c0_i32_0 : i32, i32
  }
  func.func @transform_3(%arg0: i32) -> (i32, i32) {
    %c0_i32 = arith.constant 0 : i32
    %c0_i32_0 = arith.constant 0 : i32
    %c0_i32_1 = arith.constant 0 : i32
    return %c0_i32, %c0_i32_0 : i32, i32
  }
  func.func @transform_4(%arg0: i32) -> (i32, i32) {
    %c0_i32 = arith.constant 0 : i32
    %c0_i32_0 = arith.constant 0 : i32
    %c0_i32_1 = arith.constant 0 : i32
    return %c0_i32, %c0_i32_0 : i32, i32
  }
  func.func @transform_5(%arg0: i32) -> (i32, i32) {
    %c0_i32 = arith.constant 0 : i32
    %c0_i32_0 = arith.constant 0 : i32
    %c0_i32_1 = arith.constant 0 : i32
    return %c0_i32, %c0_i32_0 : i32, i32
  }
  func.func @transform_6(%arg0: i32) -> (i32, i32) {
    %c0_i32 = arith.constant 0 : i32
    %c0_i32_0 = arith.constant 0 : i32
    %c0_i32_1 = arith.constant 0 : i32
    return %c0_i32, %c0_i32_0 : i32, i32
  }
  func.func @transform_7(%arg0: i32) -> (i32, i32) {
    %c0_i32 = arith.constant 0 : i32
    %c0_i32_0 = arith.constant 0 : i32
    %c0_i32_1 = arith.constant 0 : i32
    return %c0_i32, %c0_i32_0 : i32, i32
  }
  func.func @transform_8(%arg0: i32) -> (i32, i32) {
    %c0_i32 = arith.constant 0 : i32
    %c0_i32_0 = arith.constant 0 : i32
    %c0_i32_1 = arith.constant 0 : i32
    return %c0_i32, %c0_i32_0 : i32, i32
  }
  func.func @transform_9(%arg0: i32) -> (i32, i32) {
    %c0_i32 = arith.constant 0 : i32
    %c0_i32_0 = arith.constant 0 : i32
    %c0_i32_1 = arith.constant 0 : i32
    return %c0_i32, %c0_i32_0 : i32, i32
  }
  func.func @transform_10(%arg0: i32) -> (i32, i32) {
    %c0_i32 = arith.constant 0 : i32
    %c0_i32_0 = arith.constant 0 : i32
    %c0_i32_1 = arith.constant 0 : i32
    return %c0_i32, %c0_i32_0 : i32, i32
  }
  func.func @transform_11(%arg0: i32) -> (i32, i32, i32) {
    %c0_i32 = arith.constant 0 : i32
    %c0_i32_0 = arith.constant 0 : i32
    %c0_i32_1 = arith.constant 0 : i32
    return %arg0, %c0_i32, %c0_i32_0 : i32, i32, i32
  }
}

</mosaic_0001>

<bundles_post_ra>
// kernel: fc_discriminator_forward.1
= control target key start
LH: loop header
LB: loop body
LE: loop exit
PB: predicated region body
PF: predicated region fallthrough
CT: control target
= control target key end

     0   :  { %s6145_s17 = smov 0   ;;  %s8429_s0 = inlined_call_operand.vmem [shape: bf16[2,32,256], index: 0, kind: input, shape index: {}]   ;;  %s8430_s1 = inlined_call_operand.vmem [shape: bf16[16,288], index: 1, kind: input, shape index: {}]   ;;  %s8431_s2 = inlined_call_operand.vmem [shape: f32[16,1], index: 2, kind: input, shape index: {}]   ;;  %s8432_s3 = inlined_call_operand.vmem [shape: bf16[32,144], index: 3, kind: input, shape index: {}]   ;;  %s8433_s4 = inlined_call_operand.vmem [shape: f32[32,1], index: 4, kind: input, shape index: {}]   ;;  %s8434_s5 = inlined_call_operand.vmem [shape: bf16[64,288], index: 5, kind: input, shape index: {}]   ;;  %s8435_s6 = inlined_call_operand.vmem [shape: f32[64,1], index: 6, kind: input, shape index: {}]   ;;  %s8436_s7 = inlined_call_operand.vmem [shape: bf16[128,576], index: 7, kind: input, shape index: {}]   ;;  %s8437_s8 = inlined_call_operand.vmem [shape: f32[128,1], index: 8, kind: input, shape index: {}]   ;;  %s8438_s9 = inlined_call_operand.vmem [shape: bf16[8,1152], index: 9, kind: input, shape index: {}]   ;;  %s8439_s10 = inlined_call_operand.vmem [shape: f32[8,1], index: 10, kind: input, shape index: {}]   ;;  %s8440_s11 = inlined_call_operand.vmem [shape: f32[2,8,256], index: 11, kind: output, shape index: {}]  }
   0x1 LB: > { %s5405_s18 = sadd.s32 4294967295, %s6074_s17   ;;  %p5409_p0 = scmp.ge.s32.totalorder %s6074_s17, 1  ;;  %s6074_s17 = sphi %s6145_s17, %s21_s17  }
   0x2   : > { %p337_p1 = scmp.lt.s32.totalorder %s6074_s17, 3 }
   0x4   : > { %p338_p2 = pnand %p5409_p0, %p337_p1 }
   0x6   : > { %341 = sbr.rel (%p338_p2) target bundleno = 2528 (0x9e0), region = 64 }
   0xd   : > { %v406_v0 = vlaneseq  ;;  %v8457_v1 = vmov 0   ;;  %p377_p3 = scmp.lt.s32.totalorder %s5405_s18, 1  ;;  %s8452_s23 = smov 111   ;;  %vm8446_vm6 = vcmask 908288   ;;  %vm8445_vm10 = vcmask 924672   ;;  %v917_v61 = vld [vmem:[%s8431_s2] sm:$0xff] }
   0xe   : > { %1023 = vmatprep.mubr.bf16.mxu1 %v8457_v1  ;;  %5709 = vset.pattern.permute.xlu1 %v8457_v1  ;;  %s6078_s24 = smov 113   ;;  %s6079_s25 = smov 127   ;;  %vm8449_vm12 = vcmask 1039360   ;;  %v5979_v57 = vld [vmem:[%s8430_s1 + $0x4] ss:$12 sps:$4 sm:$0xff]   ;;  %v918_v63 = vld [vmem:[%s8431_s2 + $0x8] sm:$0xff] }
   0xf   : > { %v407_v2 = vand.u32 127, %v406_v0  ;;  %v478_v3 = vshrl.u32 %v406_v0, 7  ;;  %5710 = vset.pattern.permute.xlu0 %v8457_v1  ;;  %s8740_s18 = smov (!%p377_p3, %s5405_s18), 1  ;;  %s6080_s26 = smov 1   ;;  %980 = vmatprep.mubr.bf16.mxu0 %v5979_v57 }
  0x10   : > { %s5503_s19 = sshll.u32 %s8740_s18, 5  ;;  %s6081_s27 = smov 15  }
  0x11   : > { %v408_v4 = vadd.s32 128, %v407_v2  ;;  %v413_v5 = vand.u32 15, %v407_v2  ;;  %v479_v7 = vsub.s32 0, %v478_v3  ;;  %s6162_s22 = scalar_lea.vmem %s8429_s0, %s5503_s19  ;;  %v483_v8 = vsub.s32 4, %v478_v3  ;;  %s6082_s28 = smov 17  }
  0x12   : > { %v6179_v15 = vld [vmem:[%s6162_s22] ss:$8 sps:$4 sm:$0xff]   ;;  %v6184_v16 = vld [vmem:[%s6162_s22 + $0x4] ss:$8 sps:$4 sm:$0xff]   ;;  %s8454_s29 = smov 16   ;;  %s6084_s30 = smov 112  }
  0x13   : > { %v420_v6 = vand.u32 15, %v408_v4  ;;  %vm433_vm0 = vcmp.ge.s32.totalorder %v413_v5, 1  ;;  %vm435_vm1 = vcmp.le.s32.totalorder %v413_v5, 14  ;;  %v6191_v17 = vld [vmem:[%s6162_s22 + $0x10] ss:$8 sps:$4 sm:$0xff]   ;;  %s8529_s13 = smov 111  }
  0x14   : > { %v6196_v18 = vld [vmem:[%s6162_s22 + $0x14] ss:$8 sps:$4 sm:$0xff]   ;;  %s5504_s20 = sshll.u32 %s8740_s18, 4 }
  0x15   : > { %vm434_vm2 = vcmp.ge.s32.totalorder %v420_v6, 1  ;;  %vm436_vm3 = vcmp.le.s32.totalorder %v420_v6, 14  ;;  %s386_s22 = scalar_lea.vmem %s8440_s11, %s5504_s20 }
  0x16   : > { %vm475_vm4 = vmpackc.low %vm434_vm2, %vm433_vm0  ;;  %vm8450_vm2 = vcmask 121856  }
  0x17   : > { %v476_v9 = vsel %vm475_vm4, 65537, %v8457_v1  ;;  %vm578_vm5 = vmpackc.low %vm436_vm3, %vm435_vm1  ;;  %vm8444_vm1 = vcmask 7168  }
  0x18   : > { %v480_v10 = vrot.slane %v476_v9, %v479_v7  ;;  %v579_v11 = vsel %vm578_vm5, 65537, %v8457_v1  ;;  %v484_v13 = vrot.slane %v476_v9, %v483_v8 }
  0x19   : > { %v583_v12 = vrot.slane %v579_v11, %v479_v7  ;;  %v587_v14 = vrot.slane %v579_v11, %v483_v8 }
  0x1a   : > { %485 = vrot.lane.b32.xlu0 %v480_v10, %s8452_s23 }
  0x1b   : > { %588 = vrot.lane.b32.xlu1 %v583_v12, %s6078_s24 }
  0x1e   : > { %487 = vrot.lane.b32.xlu0 %v484_v13, %s8452_s23 }
  0x1f   : > { %590 = vrot.lane.b32.xlu1 %v587_v14, %s6078_s24 }
  0x22   : > { %640 = vrot.lane.b32.xlu0 %v480_v10, %s6079_s25 }
  0x23   : > { %642 = vrot.lane.b32.xlu1 %v484_v13, %s6079_s25 }
  0x26   : > { %696 = vrot.lane.b32.xlu0 %v583_v12, %s6080_s26 }
  0x27   : > { %698 = vrot.lane.b32.xlu1 %v587_v14, %s6080_s26 }
  0x2a   : > { %746 = vrot.lane.b32.xlu0 %v480_v10, %s6081_s27 }
  0x2b   : > { %748 = vrot.lane.b32.xlu1 %v484_v13, %s6081_s27 }
  0x2e   : > { %833 = vrot.lane.b32.xlu0 %v583_v12, %s6082_s28 }
  0x2f   : > { %835 = vrot.lane.b32.xlu1 %v587_v14, %s6082_s28 }
  0x32   : > { %5675 = vrot.lane.b32.xlu0 %v8457_v1, %s6082_s28 }
  0x33   : > { %545 = vrot.lane.b32.xlu1 %v6179_v15, %s8454_s29 }
  0x36   : > { %547 = vrot.lane.b32.xlu0 %v6184_v16, %s8454_s29 }
  0x37   : > { %5680 = vrot.lane.b32.xlu1 %v8457_v1, %s8454_s29 }
  0x3a   : > { %551 = vrot.lane.b32.xlu0 %v6191_v17, %s8454_s29 }
  0x3b   : > { %553 = vrot.lane.b32.xlu1 %v6196_v18, %s8454_s29 }
  0x8c   : > { %v486_v19 = vpop.permute.xlu0 %485 }
  0x8d   : > { %v589_v20 = vpop.permute.xlu1 %588 }
  0x90   : > { %v6202_v21 = vpop.permute.xlu0 %487 }
  0x91   : > { %v6206_v22 = vsel %vm8446_vm6, %v486_v19, %v6202_v21  ;;  %vm493_vm7 = vcmp.ne.s16.totalorder %v6202_v21, 0  ;;  %v6215_v25 = vpop.permute.xlu1 %590 }
  0x92   : > { %v499_v23 = vsel %vm493_vm7, %v6196_v18, 0  ;;  %v496_v24 = vsel %vm493_vm7, %v6184_v16, 0  ;;  %vm492_vm8 = vcmp.ne.s16.totalorder %v6206_v22, 0  ;;  %vm596_vm9 = vcmp.ne.s16.totalorder %v6215_v25, 0 }
  0x93   : > { %516 = vrot.lane.b32.xlu0 %v499_v23, %s6082_s28  ;;  %510 = vrot.lane.b32.xlu1 %v496_v24, %s6082_s28  ;;  %v498_v26 = vsel %vm492_vm8, %v6191_v17, 0  ;;  %v495_v27 = vsel %vm492_vm8, %v6179_v15, 0  ;;  %v599_v28 = vsel %vm596_vm9, %v6184_v16, 0  ;;  %v602_v30 = vsel %vm596_vm9, %v6196_v18, 0 }
  0x94   : > { %v641_v31 = vpop.permute.xlu0 %640  ;;  %v6246_v32 = vsel %vm8445_vm10, %v589_v20, %v6215_v25 }
  0x95   : > { %v6232_v29 = vpop.permute.xlu1 %642  ;;  %vm595_vm13 = vcmp.ne.s16.totalorder %v6246_v32, 0 }
  0x96   : > { %vm648_vm11 = vcmp.ne.s16.totalorder %v6232_v29, 0  ;;  %v6261_v36 = vsel %vm8449_vm12, %v641_v31, %v6232_v29  ;;  %v601_v37 = vsel %vm595_vm13, %v6191_v17, 0  ;;  %v598_v38 = vsel %vm595_vm13, %v6179_v15, 0 }
  0x97   : > { %514 = vrot.lane.b32.xlu1 %v498_v26, %s6082_s28  ;;  %508 = vrot.lane.b32.xlu0 %v495_v27, %s6082_s28  ;;  %v654_v33 = vsel %vm648_vm11, %v6196_v18, 0  ;;  %v651_v34 = vsel %vm648_vm11, %v6184_v16, 0  ;;  %vm647_vm15 = vcmp.ne.s16.totalorder %v6261_v36, 0 }
  0x98   : > { %v6254_v35 = vpop.permute.xlu0 %696  ;;  %v650_v40 = vsel %vm647_vm15, %v6179_v15, 0  ;;  %v653_v44 = vsel %vm647_vm15, %v6191_v17, 0 }
  0x99   : > { %vm701_vm14 = vcmp.ne.s16.totalorder %v6254_v35, 0  ;;  %v699_v46 = vpop.permute.xlu1 %698 }
  0x9a   : > { %v704_v39 = vsel %vm701_vm14, %v6179_v15, 0  ;;  %v707_v42 = vsel %vm701_vm14, %v6191_v17, 0  ;;  %v6306_v47 = vsel %vm8444_vm1, %v6254_v35, %v699_v46 }
  0x9b   : > { %613 = vrot.lane.b32.xlu1 %v599_v28, %s6081_s27  ;;  %5685 = vrot.lane.b32.xlu0 %v8457_v1, %s6081_s27  ;;  %vm8442_vm3 = vcmp.ne.s16.totalorder %v6306_v47, 0 }
  0x9c   : > { %v6279_v41 = vpop.permute.xlu0 %746  ;;  %v708_v50 = vsel %vm8442_vm3, %v6196_v18, 0  ;;  %v705_v51 = vsel %vm8442_vm3, %v6184_v16, 0 }
  0x9d   : > { %vm8441_vm0 = vcmp.ne.s16.totalorder %v6279_v41, 0  ;;  %v749_v48 = vpop.permute.xlu1 %748 }
  0x9e   : > { %v754_v43 = vsel %vm8441_vm0, %v6179_v15, 0  ;;  %v757_v45 = vsel %vm8441_vm0, %v6191_v17, 0  ;;  %v6315_v49 = vsel %vm8450_vm2, %v6279_v41, %v749_v48  ;;  %vm8451_vm0 = vcmask 138240  }
  0x9f   : > { %5690 = vrot.lane.b32.xlu1 %v8457_v1, %s6080_s26  ;;  %619 = vrot.lane.b32.xlu0 %v602_v30, %s6081_s27  ;;  %vm752_vm4 = vcmp.ne.s16.totalorder %v6315_v49, 0 }
  0xa0   : > { %v6323_v52 = vpop.permute.xlu0 %833  ;;  %v755_v53 = vsel %vm752_vm4, %v6184_v16, 0  ;;  %v758_v58 = vsel %vm752_vm4, %v6196_v18, 0 }
  0xa1   : > { %vm8443_vm5 = vcmp.ne.s16.totalorder %v6323_v52, 0  ;;  %v836_v55 = vpop.permute.xlu1 %835 }
  0xa2   : > { %v841_v54 = vsel %vm8443_vm5, %v6179_v15, 0  ;;  %v6343_v56 = vsel %vm8451_vm0, %v6323_v52, %v836_v55  ;;  %v844_v62 = vsel %vm8443_vm5, %v6191_v17, 0  ;;  %vm555_vm5 = vcmask 130048  }
  0xa3   : > { %671 = vrot.lane.b32.xlu1 %v654_v33, %s6080_s26  ;;  %665 = vrot.lane.b32.xlu0 %v651_v34, %s6080_s26  ;;  %vm839_vm3 = vcmp.ne.s16.totalorder %v6343_v56, 0 }
  0xa4   : > { %v842_v59 = vsel %vm839_vm3, %v6184_v16, 0  ;;  %v845_v60 = vsel %vm839_vm3, %v6196_v18, 0  ;;  %v5676_v0 = vpop.permute.xlu0 %5675 }
  0xa5   : > { %v546_v2 = vpop.permute.xlu1 %545  ;;  %v5677_v9 = vunpack.i.l.bf16 %v5676_v0  ;;  %v5678_v19 = vunpack.i.h.bf16 %v5676_v0 }
  0xa7   : > { %617 = vrot.lane.b32.xlu1 %v601_v37, %s6081_s27  ;;  %611 = vrot.lane.b32.xlu0 %v598_v38, %s6081_s27 }
  0xa8   : > { %v548_v3 = vpop.permute.xlu0 %547 }
  0xa9   : > { %v5681_v4 = vpop.permute.xlu1 %5680  ;;  %v557_v27 = vsel %vm555_vm5, %v546_v2, %v548_v3 }
  0xaa   : > { %v5682_v24 = vunpack.i.l.bf16 %v5681_v4  ;;  %v5683_v31 = vunpack.i.h.bf16 %v5681_v4 }
  0xab   : > { %663 = vrot.lane.b32.xlu1 %v650_v40, %s6080_s26  ;;  %716 = vrot.lane.b32.xlu0 %v704_v39, %s6079_s25 }
  0xac   : > { %v552_v5 = vpop.permute.xlu0 %551  ;;  %v556_v33 = vsel %vm555_vm5, %v5682_v24, %v546_v2 }
  0xad   : > { %v554_v6 = vpop.permute.xlu1 %553  ;;  %v558_v39 = vsel %vm555_vm5, %v5683_v31, %v552_v5 }
  0xae   : > { %v559_v34 = vsel %vm555_vm5, %v552_v5, %v554_v6 }
  0xaf   : > { %5695 = vrot.lane.b32.xlu1 %v8457_v1, %s6079_s25  ;;  %722 = vrot.lane.b32.xlu0 %v707_v42, %s6079_s25 }
  0xb3   : > { %766 = vrot.lane.b32.xlu1 %v754_v43, %s6078_s24  ;;  %669 = vrot.lane.b32.xlu0 %v653_v44, %s6080_s26 }
  0xb7   : > { %772 = vrot.lane.b32.xlu1 %v757_v45, %s6078_s24  ;;  %5700 = vrot.lane.b32.xlu0 %v8457_v1, %s6078_s24 }
  0xbb   : > { %5705 = vrot.lane.b32.xlu1 %v8457_v1, %s6084_s30  ;;  %804 = vrot.lane.b32.xlu0 %v6184_v16, %s6084_s30 }
  0xbf   : > { %724 = vrot.lane.b32.xlu1 %v708_v50, %s6079_s25  ;;  %718 = vrot.lane.b32.xlu0 %v705_v51, %s6079_s25 }
  0xc3   : > { %768 = vrot.lane.b32.xlu1 %v755_v53, %s6078_s24  ;;  %802 = vrot.lane.b32.xlu0 %v6179_v15, %s6084_s30 }
  0xc7   : > { %853 = vrot.lane.b32.xlu1 %v841_v54, %s8452_s23  ;;  %857 = vrot.lane.b32.xlu0 %v8457_v1, %s8452_s23 }
  0xcb   : > { %808 = vrot.lane.b32.xlu1 %v6191_v17, %s6084_s30  ;;  %774 = vrot.lane.b32.xlu0 %v758_v58, %s6078_s24 }
  0xcf   : > { %855 = vrot.lane.b32.xlu1 %v842_v59, %s8452_s23  ;;  %810 = vrot.lane.b32.xlu0 %v6196_v18, %s6084_s30 }
  0xd3   : > { %863 = vrot.lane.b32.xlu1 %v8457_v1, %s8452_s23  ;;  %861 = vrot.lane.b32.xlu0 %v845_v60, %s8452_s23 }
  0xd7   : > { %859 = vrot.lane.b32.xlu0 %v844_v62, %s8452_s23  ;;  %921 = vperm.xlu1 %5709, %v917_v61  }
  0xdb   : > { %926 = vperm.xlu0 %5710, %v918_v63   ;;  %1077 = vrot.lane.b32.xlu1 %v8457_v1, %s8454_s29 }
  0xdf   : > { %1059 = vrot.lane.b32.xlu0 %v8457_v1, %s6082_s28 }
  0xe3   : > { %1098 = vrot.lane.b32.xlu0 %v8457_v1, %s6081_s27 }
 0x105   : > { %v517_v7 = vpop.permute.xlu0 %516  ;;  %v511_v8 = vpop.permute.xlu1 %510 }
 0x109   : > { %v515_v10 = vpop.permute.xlu1 %514  ;;  %v509_v11 = vpop.permute.xlu0 %508 }
 0x10a   : > { %v520_v12 = vsel %vm8451_vm0, %v509_v11, %v511_v8  ;;  %v519_v13 = vsel %vm8451_vm0, %v5677_v9, %v509_v11  ;;  %v522_v14 = vsel %vm8451_vm0, %v515_v10, %v517_v7  ;;  %v521_v26 = vsel %vm8451_vm0, %v5678_v19, %v515_v10 }
 0x10b   : > { %948 = vmatprep.subr.bf16.mxu0 %v520_v12 }
 0x10c   : > { %949 = vmatpush1.bf16.msra.mxu0 %v519_v13 }
 0x10d   : > { %v614_v20 = vpop.permute.xlu1 %613  ;;  %950 = vmatprep.subr.bf16.mxu0 %v522_v14  ;;  %v5686_v23 = vpop.permute.xlu0 %5685 }
 0x10e   : > { %v5687_v40 = vunpack.i.l.bf16 %v5686_v23  ;;  %v5688_v48 = vunpack.i.h.bf16 %v5686_v23 }
 0x110   : > { %951 = vmatpush1.bf16.msra.mxu0 %v521_v26 }
 0x111   : > { %v5691_v28 = vpop.permute.xlu1 %5690  ;;  %952 = vmatprep.subr.bf16.mxu0 %v557_v27  ;;  %v620_v30 = vpop.permute.xlu0 %619 }
 0x112   : > { %v5692_v55 = vunpack.i.l.bf16 %v5691_v28  ;;  %v5693_v60 = vunpack.i.h.bf16 %v5691_v28 }
 0x114   : > { %953 = vmatpush1.bf16.msra.mxu0 %v556_v33 }
 0x115   : > { %v672_v37 = vpop.permute.xlu1 %671  ;;  %954 = vmatprep.subr.bf16.mxu0 %v559_v34  ;;  %v666_v38 = vpop.permute.xlu0 %665 }
 0x118   : > { %955 = vmatpush1.bf16.msra.mxu0 %v558_v39 }
 0x119   : > { %v618_v42 = vpop.permute.xlu1 %617  ;;  %v612_v43 = vpop.permute.xlu0 %611 }
 0x11a   : > { %v623_v44 = vsel %vm8450_vm2, %v612_v43, %v614_v20  ;;  %v622_v45 = vsel %vm8450_vm2, %v5687_v40, %v612_v43  ;;  %v625_v46 = vsel %vm8450_vm2, %v618_v42, %v620_v30  ;;  %v624_v53 = vsel %vm8450_vm2, %v5688_v48, %v618_v42  ;;  %v5977_v48 = vld [vmem:[%s8430_s1] ss:$12 sps:$4 sm:$0xff]  }
 0x11b   : > { %956 = vmatprep.subr.bf16.mxu0 %v623_v44 }
 0x11c   : > { %957 = vmatpush1.bf16.msra.mxu0 %v622_v45 }
 0x11d   : > { %v664_v50 = vpop.permute.xlu1 %663  ;;  %v717_v51 = vpop.permute.xlu0 %716  ;;  %958 = vmatprep.subr.bf16.mxu0 %v625_v46 }
 0x11e   : > { %v675_v54 = vsel %vm8444_vm1, %v664_v50, %v666_v38  ;;  %v674_v59 = vsel %vm8444_vm1, %v5692_v55, %v664_v50 }
 0x120   : > { %959 = vmatpush1.bf16.msra.mxu0 %v624_v53  ;;  %v5980_v53 = vld [vmem:[%s8430_s1 + $0x8] ss:$12 sps:$4 sm:$0xff]  }
 0x121   : > { %v5696_v57 = vpop.permute.xlu1 %5695  ;;  %v723_v58 = vpop.permute.xlu0 %722  ;;  %960 = vmatprep.subr.bf16.mxu0 %v675_v54 }
 0x122   : > { %v5697_v6 = vunpack.i.l.bf16 %v5696_v57  ;;  %v5698_v9 = vunpack.i.h.bf16 %v5696_v57 }
 0x124   : > { %961 = vmatpush1.bf16.msra.mxu0 %v674_v59 }
 0x125   : > { %v767_v61 = vpop.permute.xlu1 %766  ;;  %v670_v62 = vpop.permute.xlu0 %669 }
 0x126   : > { %v677_v63 = vsel %vm8444_vm1, %v670_v62, %v672_v37  ;;  %v676_v0 = vsel %vm8444_vm1, %v5693_v60, %v670_v62  ;;  %vm8448_vm1 = vcmask 916480  }
 0x127   : > { %962 = vmatprep.subr.bf16.mxu0 %v677_v63 }
 0x128   : > { %963 = vmatpush1.bf16.msra.mxu0 %v676_v0 }
 0x129   : > { %v773_v2 = vpop.permute.xlu1 %772  ;;  %v5701_v3 = vpop.permute.xlu0 %5700  ;;  %964 = vmatprep.subr.bf16.mxu0 %v6184_v16 }
 0x12a   : > { %v5702_v13 = vunpack.i.l.bf16 %v5701_v3  ;;  %v5703_v23 = vunpack.i.h.bf16 %v5701_v3 }
 0x12c   : > { %965 = vmatpush1.bf16.msra.mxu0 %v6179_v15 }
 0x12d   : > { %v5706_v4 = vpop.permute.xlu1 %5705  ;;  %v805_v5 = vpop.permute.xlu0 %804  ;;  %966 = vmatprep.subr.bf16.mxu0 %v6196_v18 }
 0x12e   : > { %v5707_v24 = vunpack.i.l.bf16 %v5706_v4  ;;  %v5708_v37 = vunpack.i.h.bf16 %v5706_v4 }
 0x130   : > { %967 = vmatpush1.bf16.msra.mxu0 %v6191_v17  ;;  %v816_v31 = vsel %vm8448_vm1, %v805_v5, %v5707_v24 }
 0x131   : > { %v725_v7 = vpop.permute.xlu1 %724  ;;  %v719_v8 = vpop.permute.xlu0 %718 }
 0x132   : > { %v729_v10 = vsel %vm8449_vm12, %v719_v8, %v5697_v6  ;;  %v728_v11 = vsel %vm8449_vm12, %v717_v51, %v719_v8  ;;  %v731_v16 = vsel %vm8449_vm12, %v725_v7, %v5698_v9  ;;  %v730_v18 = vsel %vm8449_vm12, %v723_v58, %v725_v7 }
 0x133   : > { %968 = vmatprep.subr.bf16.mxu0 %v729_v10 }
 0x134   : > { %969 = vmatpush1.bf16.msra.mxu0 %v728_v11 }
 0x135   : > { %v769_v12 = vpop.permute.xlu1 %768  ;;  %v803_v15 = vpop.permute.xlu0 %802  ;;  %970 = vmatprep.subr.bf16.mxu0 %v731_v16 }
 0x136   : > { %v779_v17 = vsel %vm8445_vm10, %v769_v12, %v5702_v13  ;;  %v778_v20 = vsel %vm8445_vm10, %v767_v61, %v769_v12  ;;  %v815_v40 = vsel %vm8448_vm1, %v803_v15, %v805_v5 }
 0x138   : > { %971 = vmatpush1.bf16.msra.mxu0 %v730_v18 }
 0x139   : > { %v854_v14 = vpop.permute.xlu1 %853  ;;  %v858_v19 = vpop.permute.xlu0 %857  ;;  %972 = vmatprep.subr.bf16.mxu0 %v779_v17 }
 0x13c   : > { %973 = vmatpush1.bf16.msra.mxu0 %v778_v20 }
 0x13d   : > { %v809_v26 = vpop.permute.xlu1 %808  ;;  %v775_v27 = vpop.permute.xlu0 %774 }
 0x13e   : > { %v781_v28 = vsel %vm8445_vm10, %v775_v27, %v5703_v23  ;;  %v780_v30 = vsel %vm8445_vm10, %v773_v2, %v775_v27  ;;  %vm8447_vm10 = vcmask 261120  }
 0x13f   : > { %974 = vmatprep.subr.bf16.mxu0 %v781_v28 }
 0x140   : > { %975 = vmatpush1.bf16.msra.mxu0 %v780_v30 }
 0x141   : > { %v856_v33 = vpop.permute.xlu1 %855  ;;  %v811_v34 = vpop.permute.xlu0 %810  ;;  %976 = vmatprep.subr.bf16.mxu0 %v816_v31 }
 0x142   : > { %v866_v38 = vsel %vm8446_vm6, %v856_v33, %v858_v19  ;;  %v865_v39 = vsel %vm8446_vm6, %v854_v14, %v856_v33  ;;  %v818_v42 = vsel %vm8448_vm1, %v811_v34, %v5708_v37  ;;  %v817_v46 = vsel %vm8448_vm1, %v809_v26, %v811_v34  ;;  %v5981_v37 = vld [vmem:[%s8432_s3 + $0x4] ss:$8 sps:$4 sm:$0xff]  }
 0x143   : > { %991 = vmatprep.subr.bf16.mxu1 %v866_v38  ;;  %v1236_v38 = vld [vmem:[%s8433_s4] sm:$0xff] }
 0x144   : > { %977 = vmatpush1.bf16.msra.mxu0 %v815_v40  ;;  %992 = vmatpush1.bf16.msra.mxu1 %v865_v39  ;;  %v1238_v39 = vld [vmem:[%s8433_s4 + $0x10] sm:$0xff] }
 0x145   : > { %v864_v43 = vpop.permute.xlu1 %863  ;;  %v862_v44 = vpop.permute.xlu0 %861  ;;  %978 = vmatprep.subr.bf16.mxu0 %v818_v42 }
 0x146   : > { %v868_v45 = vsel %vm8446_vm6, %v862_v44, %v864_v43  ;;  %v1237_v43 = vld [vmem:[%s8433_s4 + $0x8] sm:$0xff] }
 0x147   : > { %993 = vmatprep.subr.bf16.mxu1 %v868_v45 }
 0x148   : > { %979 = vmatpush1.bf16.msra.mxu0 %v817_v46 }
 0x149   : > { %v860_v50 = vpop.permute.xlu0 %859 }
 0x14a   : > { %v867_v51 = vsel %vm8446_vm6, %v860_v50, %v862_v44  ;;  %v1239_v44 = vld [vmem:[%s8433_s4 + $0x18] sm:$0xff] }
 0x14b   : > { %981 = vmatmul.mubr.bf16.vlgmr.msra.gmra.mrb[0].mxu0 %v5977_v48  ;;  %994 = vmatpush1.bf16.msra.mxu1 %v867_v51 }
 0x14c   : > { %1975 = vmatprep.mubr.bf16.mxu0 %v8457_v1 }
 0x14e   : > { %5421 = vmatmul.mubr.msk.bf16.vlgmr.msra.gmra.mrb[0].mxu1 %vm8447_vm10, %v5980_v53 }
 0x14f   : > { %5426 = vmatprep.mubr.msk.bf16.mxu1 %vm555_vm5, %v5981_v37 }
 0x156   : > { %v922_v54 = vpop.permute.xlu1 %921 }
 0x15a   : > { %v927_v57 = vpop.permute.xlu0 %926  ;;  %v1078_v46 = vpop.permute.xlu1 %1077 }
 0x15e   : > { %v1060_v45 = vpop.permute.xlu0 %1059 }
 0x162   : > { %v1099_v48 = vpop.permute.xlu0 %1098 }
 0x21e   : > { %v982_v55 = vpop.f32.mrb[0].mxu0 }
 0x21f   : > { %v984_v58 = vpop.f32.mrb[1].mxu0  ;;  %v983_v59 = vadd.f32 %v982_v55, %v922_v54 }
 0x220   : > { %v985_v60 = vadd.f32 %v984_v58, %v922_v54  ;;  %v986_v61 = vpop.f32.mrb[2].mxu0 }
 0x221   : > { %v987_v62 = vadd.f32 %v986_v61, %v927_v57  ;;  %v988_v63 = vpop.f32.mrb[3].mxu0  ;;  %v1025_v0 = vpop.f32.mrb[0].mxu1 }
 0x222   : > { %v989_v2 = vadd.f32 %v988_v63, %v927_v57  ;;  %v1026_v3 = vadd.f32 %v1025_v0, %v983_v59  ;;  %v1027_v4 = vpop.f32.mrb[1].mxu1 }
 0x223   : > { %v1028_v5 = vadd.f32 %v1027_v4, %v985_v60  ;;  %v1029_v6 = vpop.f32.mrb[2].mxu1 }
 0x224   : > { %v1038_v7 = vmul.f32 0.2, %v1026_v3  ;;  %v1030_v8 = vadd.f32 %v1029_v6, %v987_v62  ;;  %v1031_v9 = vpop.f32.mrb[3].mxu1  ;;  %vm1034_vm6 = vcmp.ge.f32.partialorder %v1026_v3, 0.0 }
 0x225   : > { %v1039_v10 = vmul.f32 0.2, %v1028_v5  ;;  %v1032_v11 = vadd.f32 %v1031_v9, %v989_v2  ;;  %vm1035_vm10 = vcmp.ge.f32.partialorder %v1028_v5, 0.0 }
 0x226   : > { %vm1036_vm1 = vcmp.ge.f32.partialorder %v1030_v8, 0.0  ;;  %v1040_v16 = vmul.f32 0.2, %v1030_v8  ;;  %v1042_v15 = vsel %vm1034_vm6, %v1026_v3, %v1038_v7  ;;  %vm8465_vm6 = vcmp.ne.s16.totalorder %v6306_v47, 0 }
 0x227   : > { %vm1037_vm12 = vcmp.ge.f32.partialorder %v1032_v11, 0.0  ;;  %v1041_v12 = vmul.f32 0.2, %v1032_v11  ;;  %v1043_v18 = vsel %vm1035_vm10, %v1028_v5, %v1039_v10  ;;  %vm8466_vm10 = vcmp.ne.s16.totalorder %v6279_v41, 0 }
 0x228   : > { %v1044_v13 = vsel %vm1036_vm1, %v1030_v8, %v1040_v16  ;;  %vm8468_vm1 = vcmask 7168  }
 0x229   : > { %v6427_v17 = vpack.c.bf16 %v1044_v13, %v1042_v15  ;;  %v1045_v14 = vsel %vm1037_vm12, %v1032_v11, %v1041_v12  ;;  %vm8467_vm12 = vcmp.ne.s16.totalorder %v6323_v52, 0 }
 0x22a   : > { %v6429_v19 = vpack.c.bf16 %v1045_v14, %v1043_v18 }
 0x22b   : > { %1079 = vrot.lane.b32.xlu1 %v6427_v17, %s8454_s29  ;;  %v1054_v20 = vsel %vm492_vm8, %v6427_v17, 0  ;;  %v1093_v23 = vsel %vm595_vm13, %v6427_v17, 0  ;;  %v1136_v26 = vsel %vm701_vm14, %v6427_v17, 0  ;;  %v1114_v27 = vsel %vm647_vm15, %v6427_v17, 0 }
 0x22c   : > { %1081 = vrot.lane.b32.xlu0 %v6429_v19, %s8454_s29  ;;  %v1055_v24 = vsel %vm493_vm7, %v6429_v19, 0  ;;  %v1115_v28 = vsel %vm648_vm11, %v6429_v19, 0  ;;  %v1094_v30 = vsel %vm596_vm9, %v6429_v19, 0  ;;  %v1137_v31 = vsel %vm8465_vm6, %v6429_v19, 0  ;;  %vm8469_vm6 = vmmov %vm8468_vm1 }
 0x22d   : > { %v1157_v33 = vsel %vm8466_vm10, %v6427_v17, 0  ;;  %v1158_v34 = vsel %vm752_vm4, %v6429_v19, 0  ;;  %v1197_v40 = vsel %vm839_vm3, %v6429_v19, 0  ;;  %v1196_v42 = vsel %vm8467_vm12, %v6427_v17, 0 }
 0x22e   : > { %vm8470_vm10 = vcmask 1039360  }
 0x22f   : > { %1061 = vrot.lane.b32.xlu1 %v1054_v20, %s6082_s28  ;;  %vm8471_vm12 = vmmov %vm8470_vm10 }
 0x230   : > { %1100 = vrot.lane.b32.xlu0 %v1093_v23, %s6081_s27 }
 0x233   : > { %1063 = vrot.lane.b32.xlu1 %v1055_v24, %s6082_s28 }
 0x234   : > { %1142 = vrot.lane.b32.xlu0 %v1136_v26, %s6079_s25 }
 0x237   : > { %1121 = vrot.lane.b32.xlu1 %v1114_v27, %s6080_s26 }
 0x238   : > { %1123 = vrot.lane.b32.xlu0 %v1115_v28, %s6080_s26 }
 0x23b   : > { %1102 = vrot.lane.b32.xlu1 %v1094_v30, %s6081_s27  ;;  %v5983_v30 = vld [vmem:[%s8432_s3] ss:$8 sps:$4 sm:$0xff]  }
 0x23c   : > { %1167 = vrot.lane.b32.xlu0 %v8457_v1, %s6078_s24 }
 0x23f   : > { %1119 = vrot.lane.b32.xlu1 %v8457_v1, %s6080_s26 }
 0x240   : > { %1144 = vrot.lane.b32.xlu0 %v1137_v31, %s6079_s25  ;;  %v5984_v31 = vld [vmem:[%s8432_s3 + $0x14] ss:$8 sps:$4 sm:$0xff]  }
 0x243   : > { %1146 = vrot.lane.b32.xlu1 %v8457_v1, %s6079_s25 }
 0x244   : > { %1183 = vrot.lane.b32.xlu0 %v6429_v19, %s6084_s30 }
 0x247   : > { %1163 = vrot.lane.b32.xlu1 %v1157_v33, %s6078_s24  ;;  %v5986_v33 = vld [vmem:[%s8432_s3 + $0x10] ss:$8 sps:$4 sm:$0xff]  }
 0x248   : > { %1181 = vrot.lane.b32.xlu0 %v6427_v17, %s6084_s30 }
 0x24b   : > { %1165 = vrot.lane.b32.xlu1 %v1158_v34, %s6078_s24 }
 0x24c   : > { %1206 = vrot.lane.b32.xlu0 %v8457_v1, %s8452_s23 }
 0x24f   : > { %1185 = vrot.lane.b32.xlu1 %v8457_v1, %s6084_s30 }
 0x250   : > { %1242 = vperm.xlu0 %5710, %v1236_v38  }
 0x253   : > { %1204 = vrot.lane.b32.xlu1 %v1197_v40, %s8452_s23 }
 0x254   : > { %1252 = vperm.xlu0 %5710, %v1238_v39  }
 0x257   : > { %1202 = vrot.lane.b32.xlu1 %v1196_v42, %s8452_s23 }
 0x258   : > { %5712 = vrot.lane.b32.xlu0 %v8457_v1, %s6082_s28 }
 0x25b   : > { %1247 = vperm.xlu1 %5709, %v1237_v43  }
 0x25f   : > { %1257 = vperm.xlu1 %5709, %v1239_v44  }
 0x263   : > { %5717 = vrot.lane.b32.xlu1 %v8457_v1, %s8454_s29 }
 0x29d   : > { %v1080_v50 = vpop.permute.xlu1 %1079 }
 0x29e   : > { %v1082_v51 = vpop.permute.xlu0 %1081  ;;  %v1083_v63 = vsel %vm555_vm5, %v1078_v46, %v1080_v50 }
 0x29f   : > { %v1084_v60 = vsel %vm555_vm5, %v1080_v50, %v1082_v51 }
 0x2a1   : > { %v1062_v53 = vpop.permute.xlu1 %1061 }
 0x2a2   : > { %v1101_v54 = vpop.permute.xlu0 %1100  ;;  %v1065_v59 = vsel %vm8451_vm0, %v1060_v45, %v1062_v53 }
 0x2a3   : > { %v1104_v4 = vsel %vm8450_vm2, %v1099_v48, %v1101_v54 }
 0x2a5   : > { %v1064_v55 = vpop.permute.xlu1 %1063 }
 0x2a6   : > { %v1143_v57 = vpop.permute.xlu0 %1142  ;;  %v1066_v58 = vsel %vm8451_vm0, %v1062_v53, %v1064_v55 }
 0x2a7   : > { %1285 = vmatprep.subr.bf16.mxu1 %v1066_v58 }
 0x2a8   : > { %1286 = vmatpush1.bf16.msra.mxu1 %v1065_v59 }
 0x2a9   : > { %1287 = vmatprep.subr.bf16.mxu1 %v1084_v60  ;;  %v1122_v61 = vpop.permute.xlu1 %1121 }
 0x2aa   : > { %v1124_v62 = vpop.permute.xlu0 %1123 }
 0x2ab   : > { %v1126_v5 = vsel %vm8468_vm1, %v1122_v61, %v1124_v62  ;;  %vm8472_vm1 = vcmask 924672  }
 0x2ac   : > { %1288 = vmatpush1.bf16.msra.mxu1 %v1083_v63 }
 0x2ad   : > { %v1103_v0 = vpop.permute.xlu1 %1102 }
 0x2ae   : > { %v1168_v2 = vpop.permute.xlu0 %1167  ;;  %v1105_v3 = vsel %vm8450_vm2, %v1101_v54, %v1103_v0  ;;  %vm8473_vm2 = vmmov %vm8472_vm1 }
 0x2af   : > { %1289 = vmatprep.subr.bf16.mxu1 %v1105_v3 }
 0x2b0   : > { %1290 = vmatpush1.bf16.msra.mxu1 %v1104_v4 }
 0x2b1   : > { %1291 = vmatprep.subr.bf16.mxu1 %v1126_v5  ;;  %v1120_v6 = vpop.permute.xlu1 %1119 }
 0x2b2   : > { %v1125_v7 = vsel %vm8469_vm6, %v1120_v6, %v1122_v61  ;;  %v1145_v8 = vpop.permute.xlu0 %1144  ;;  %vm8474_vm6 = vcmask 916480  }
 0x2b3   : > { %v1148_v12 = vsel %vm8471_vm12, %v1143_v57, %v1145_v8  ;;  %vm8475_vm0 = vmmov %vm8474_vm6 }
 0x2b4   : > { %1292 = vmatpush1.bf16.msra.mxu1 %v1125_v7 }
 0x2b5   : > { %1293 = vmatprep.subr.bf16.mxu1 %v6429_v19  ;;  %v1147_v9 = vpop.permute.xlu1 %1146 }
 0x2b6   : > { %v1149_v10 = vsel %vm8470_vm10, %v1145_v8, %v1147_v9  ;;  %v1184_v11 = vpop.permute.xlu0 %1183  ;;  %vm8476_vm10 = vcmask 908288  }
 0x2b7   : > { %vm8477_vm12 = vmmov %vm8476_vm10 }
 0x2b8   : > { %1294 = vmatpush1.bf16.msra.mxu1 %v6427_v17 }
 0x2b9   : > { %1295 = vmatprep.subr.bf16.mxu1 %v1149_v10  ;;  %v1164_v16 = vpop.permute.xlu1 %1163 }
 0x2ba   : > { %v1182_v14 = vpop.permute.xlu0 %1181 }
 0x2bb   : > { %v1187_v17 = vsel %vm8475_vm0, %v1182_v14, %v1184_v11 }
 0x2bc   : > { %1296 = vmatpush1.bf16.msra.mxu1 %v1148_v12 }
 0x2bd   : > { %v1166_v15 = vpop.permute.xlu1 %1165 }
 0x2be   : > { %v1170_v13 = vsel %vm8472_vm1, %v1166_v15, %v1168_v2  ;;  %v1169_v18 = vsel %vm8473_vm2, %v1164_v16, %v1166_v15  ;;  %v1207_v23 = vpop.permute.xlu0 %1206 }
 0x2bf   : > { %1297 = vmatprep.subr.bf16.mxu1 %v1170_v13 }
 0x2c0   : > { %1298 = vmatpush1.bf16.msra.mxu1 %v1169_v18 }
 0x2c1   : > { %v1186_v19 = vpop.permute.xlu1 %1185 }
 0x2c2   : > { %v1188_v20 = vsel %vm8474_vm6, %v1184_v11, %v1186_v19 }
 0x2c3   : > { %1299 = vmatprep.subr.bf16.mxu1 %v1188_v20 }
 0x2c4   : > { %1300 = vmatpush1.bf16.msra.mxu1 %v1187_v17 }
 0x2c5   : > { %v1205_v24 = vpop.permute.xlu1 %1204 }
 0x2c6   : > { %v1209_v26 = vsel %vm8476_vm10, %v1205_v24, %v1207_v23 }
 0x2c7   : > { %1301 = vmatprep.subr.bf16.mxu1 %v1209_v26 }
 0x2c9   : > { %v1203_v27 = vpop.permute.xlu1 %1202 }
 0x2ca   : > { %v1208_v28 = vsel %vm8477_vm12, %v1203_v27, %v1205_v24 }
 0x2cb   : > { %1302 = vmatpush1.bf16.msra.mxu1 %v1208_v28 }
 0x2ce   : > { %1318 = vmatmul.mubr.bf16.vlgmr.msra.gmra.mrb[4].mxu1 %v5983_v30 }
 0x2cf   : > { %5427 = vmatprep.mubr.msk.bf16.mxu1 %vm555_vm5, %v5984_v31  ;;  %v1243_v34 = vpop.permute.xlu0 %1242 }
 0x2d3   : > { %v1253_v57 = vpop.permute.xlu0 %1252 }
 0x2d6   : > { %1328 = vmatmul.mubr.bf16.gmra.mrb[8].mxu1 %v5986_v33 }
 0x2da   : > { %v1248_v40 = vpop.permute.xlu1 %1247 }
 0x2de   : > { %v1258_v2 = vpop.permute.xlu1 %1257 }
 0x3a1   : > { %v1319_v37 = vpop.f32.mrb[4].mxu1 }
 0x3a2   : > { %v1320_v38 = vadd.f32 %v1319_v37, %v1243_v34  ;;  %v1321_v39 = vpop.f32.mrb[5].mxu1 }
 0x3a3   : > { %v1322_v42 = vadd.f32 %v1321_v39, %v1243_v34  ;;  %v1323_v43 = vpop.f32.mrb[6].mxu1 }
 0x3a4   : > { %v1346_v44 = vmul.f32 0.2, %v1320_v38  ;;  %v1324_v45 = vadd.f32 %v1323_v43, %v1248_v40  ;;  %v1325_v46 = vpop.f32.mrb[7].mxu1  ;;  %vm1338_vm0 = vcmp.ge.f32.partialorder %v1320_v38, 0.0 }
 0x3a5   : > { %v1347_v48 = vmul.f32 0.2, %v1322_v42  ;;  %v1326_v50 = vadd.f32 %v1325_v46, %v1248_v40  ;;  %vm1339_vm2 = vcmp.ge.f32.partialorder %v1322_v42, 0.0 }
 0x3a6   : > { %vm1340_vm1 = vcmp.ge.f32.partialorder %v1324_v45, 0.0  ;;  %v1348_v51 = vmul.f32 0.2, %v1324_v45  ;;  %v1354_v54 = vsel %vm1338_vm0, %v1320_v38, %v1346_v44 }
 0x3a7   : > { %vm1341_vm6 = vcmp.ge.f32.partialorder %v1326_v50, 0.0  ;;  %v1349_v53 = vmul.f32 0.2, %v1326_v50  ;;  %v1355_v58 = vsel %vm1339_vm2, %v1322_v42, %v1347_v48 }
 0x3a8   : > { %v1356_v55 = vsel %vm1340_vm1, %v1324_v45, %v1348_v51  ;;  %vm8478_vm1 = vcmp.ne.s16.totalorder %v6306_v47, 0 }
 0x3a9   : > { %v6545_v59 = vpack.c.bf16 %v1356_v55, %v1354_v54  ;;  %v1357_v60 = vsel %vm1341_vm6, %v1326_v50, %v1349_v53  ;;  %v1329_v61 = vpop.f32.mrb[8].mxu1  ;;  %vm8479_vm6 = vcmp.ne.s16.totalorder %v6279_v41, 0  ;;  %v5989_v50 = vld [vmem:[%s8434_s5 + $0x4] ss:$12 sps:$4 sm:$0xff]  }
 0x3aa   : > { %v6547_v62 = vpack.c.bf16 %v1357_v60, %v1355_v58  ;;  %v1330_v63 = vadd.f32 %v1329_v61, %v1253_v57  ;;  %v1331_v0 = vpop.f32.mrb[9].mxu1  ;;  %1902 = vmatprep.mubr.bf16.mxu1 %v5989_v50  ;;  %v1750_v53 = vld [vmem:[%s8435_s6] sm:$0xff]  ;;  %v1752_v55 = vld [vmem:[%s8435_s6 + $0x10] sm:$0xff]  ;;  %v1753_v60 = vld [vmem:[%s8435_s6 + $0x18] sm:$0xff] }
 0x3ab   : > { %v1332_v3 = vadd.f32 %v1331_v0, %v1253_v57  ;;  %v1333_v4 = vpop.f32.mrb[10].mxu1  ;;  %1426 = vrot.lane.b32.xlu1 %v6545_v59, %s8454_s29  ;;  %v1377_v5 = vsel %vm492_vm8, %v6545_v59, 0  ;;  %v1455_v23 = vsel %vm595_vm13, %v6545_v59, 0  ;;  %v1497_v28 = vsel %vm647_vm15, %v6545_v59, 0  ;;  %v1751_v57 = vld [vmem:[%s8435_s6 + $0x8] sm:$0xff]  ;;  %v1754_v58 = vld [vmem:[%s8435_s6 + $0x20] sm:$0xff] }
 0x3ac   : > { %v1350_v6 = vmul.f32 0.2, %v1330_v63  ;;  %v1334_v7 = vadd.f32 %v1333_v4, %v1258_v2  ;;  %v1335_v8 = vpop.f32.mrb[11].mxu1  ;;  %1390 = vrot.lane.b32.xlu0 %v1377_v5, %s6082_s28  ;;  %vm1342_vm10 = vcmp.ge.f32.partialorder %v1330_v63, 0.0  ;;  %v1378_v16 = vsel %vm493_vm7, %v6547_v62, 0  ;;  %v1756_v61 = vld [vmem:[%s8435_s6 + $0x30] sm:$0xff] }
 0x3ad   : > { %v1351_v9 = vmul.f32 0.2, %v1332_v3  ;;  %v1336_v10 = vadd.f32 %v1335_v8, %v1258_v2  ;;  %vm1343_vm12 = vcmp.ge.f32.partialorder %v1332_v3, 0.0  ;;  %v1456_v17 = vsel %vm596_vm9, %v6547_v62, 0  ;;  %v1757_v0 = vld [vmem:[%s8435_s6 + $0x38] sm:$0xff]  ;;  %v5718_v2 = vpop.permute.xlu1 %5717 }
 0x3ae   : > { %vm1344_vm0 = vcmp.ge.f32.partialorder %v1334_v7, 0.0  ;;  %v1352_v11 = vmul.f32 0.2, %v1334_v7  ;;  %v1358_v15 = vsel %vm1342_vm10, %v1330_v63, %v1350_v6  ;;  %v1498_v30 = vsel %vm648_vm11, %v6547_v62, 0  ;;  %vm8480_vm10 = vmmov %vm8479_vm6  ;;  %v1755_v63 = vld [vmem:[%s8435_s6 + $0x28] sm:$0xff] }
 0x3af   : > { %vm1345_vm2 = vcmp.ge.f32.partialorder %v1336_v10, 0.0  ;;  %v1353_v12 = vmul.f32 0.2, %v1336_v10  ;;  %1392 = vrot.lane.b32.xlu1 %v1378_v16, %s6082_s28  ;;  %v1359_v18 = vsel %vm1343_vm12, %v1332_v3, %v1351_v9  ;;  %v1543_v37 = vsel %vm8478_vm1, %v6547_v62, 0  ;;  %vm8481_vm12 = vmmov %vm8478_vm1  ;;  %v5713_v3 = vpop.permute.xlu0 %5712 }
 0x3b0   : > { %v1360_v13 = vsel %vm1344_vm0, %v1334_v7, %v1352_v11  ;;  %1428 = vrot.lane.b32.xlu0 %v6547_v62, %s8454_s29  ;;  %v1585_v38 = vsel %vm752_vm4, %v6547_v62, 0  ;;  %v1542_v39 = vsel %vm701_vm14, %v6545_v59, 0  ;;  %v1584_v40 = vsel %vm8479_vm6, %v6545_v59, 0 }
 0x3b1   : > { %v6561_v14 = vpack.c.bf16 %v1360_v13, %v1358_v15  ;;  %v1361_v19 = vsel %vm1345_vm2, %v1336_v10, %v1353_v12  ;;  %v1663_v45 = vsel %vm839_vm3, %v6547_v62, 0  ;;  %vm8482_vm0 = vcmp.ne.s16.totalorder %v6323_v52, 0 }
 0x3b2   : > { %v6563_v20 = vpack.c.bf16 %v1361_v19, %v1359_v18  ;;  %v1662_v46 = vsel %vm8482_vm0, %v6545_v59, 0  ;;  %vm8483_vm2 = vmmov %vm8482_vm0  ;;  %v5714_v6 = vunpack.i.l.bf16 %v5713_v3  ;;  %vm8484_vm1 = vcmask 138240  }
 0x3b3   : > { %1470 = vrot.lane.b32.xlu1 %v1456_v17, %s6081_s27  ;;  %v1380_v24 = vsel %vm492_vm8, %v6561_v14, 0  ;;  %v1458_v27 = vsel %vm595_vm13, %v6561_v14, 0  ;;  %v1500_v31 = vsel %vm647_vm15, %v6561_v14, 0  ;;  %v1545_v42 = vsel %vm701_vm14, %v6561_v14, 0  ;;  %vm8485_vm6 = vmmov %vm8484_vm1 }
 0x3b4   : > { %1468 = vrot.lane.b32.xlu0 %v1455_v23, %s6081_s27  ;;  %v1381_v26 = vsel %vm493_vm7, %v6563_v20, 0  ;;  %v1459_v33 = vsel %vm596_vm9, %v6563_v20, 0  ;;  %v1501_v34 = vsel %vm648_vm11, %v6563_v20, 0  ;;  %v1587_v43 = vsel %vm8480_vm10, %v6561_v14, 0  ;;  %vm8486_vm10 = vmmov %vm8484_vm1 }
 0x3b5   : > { %v1546_v44 = vsel %vm8481_vm12, %v6563_v20, 0  ;;  %v1588_v48 = vsel %vm752_vm4, %v6563_v20, 0  ;;  %v1666_v51 = vsel %vm839_vm3, %v6563_v20, 0  ;;  %v1665_v54 = vsel %vm8483_vm2, %v6561_v14, 0  ;;  %vm8487_vm12 = vmmov %vm8484_vm1 }
 0x3b6   : > { %v5715_v18 = vunpack.i.h.bf16 %v5713_v3  ;;  %v5719_v23 = vunpack.i.l.bf16 %v5718_v2  ;;  %vm8488_vm0 = vcmask 121856  }
 0x3b7   : > { %1396 = vrot.lane.b32.xlu1 %v1380_v24, %s6082_s28  ;;  %vm8489_vm2 = vmmov %vm8488_vm0 }
 0x3b8   : > { %1432 = vrot.lane.b32.xlu0 %v6561_v14, %s8454_s29 }
 0x3bb   : > { %1434 = vrot.lane.b32.xlu1 %v6563_v20, %s8454_s29 }
 0x3bc   : > { %1398 = vrot.lane.b32.xlu0 %v1381_v26, %s6082_s28 }
 0x3bf   : > { %1474 = vrot.lane.b32.xlu1 %v1458_v27, %s6081_s27 }
 0x3c0   : > { %5722 = vrot.lane.b32.xlu0 %v8457_v1, %s6081_s27 }
 0x3c3   : > { %1510 = vrot.lane.b32.xlu1 %v1497_v28, %s6080_s26 }
 0x3c4   : > { %1512 = vrot.lane.b32.xlu0 %v1498_v30, %s6080_s26 }
 0x3c7   : > { %5727 = vrot.lane.b32.xlu1 %v8457_v1, %s6080_s26 }
 0x3c8   : > { %1516 = vrot.lane.b32.xlu0 %v1500_v31, %s6080_s26 }
 0x3cb   : > { %5732 = vrot.lane.b32.xlu1 %v8457_v1, %s6079_s25 }
 0x3cc   : > { %1476 = vrot.lane.b32.xlu0 %v1459_v33, %s6081_s27 }
 0x3cf   : > { %1518 = vrot.lane.b32.xlu1 %v1501_v34, %s6080_s26  ;;  %v5720_v34 = vunpack.i.h.bf16 %v5718_v2 }
 0x3d0   : > { %1556 = vrot.lane.b32.xlu0 %v1543_v37, %s6079_s25 }
 0x3d3   : > { %1598 = vrot.lane.b32.xlu1 %v1585_v38, %s6078_s24 }
 0x3d4   : > { %1554 = vrot.lane.b32.xlu0 %v1542_v39, %s6079_s25 }
 0x3d7   : > { %1596 = vrot.lane.b32.xlu1 %v1584_v40, %s6078_s24 }
 0x3d8   : > { %1560 = vrot.lane.b32.xlu0 %v1545_v42, %s6079_s25 }
 0x3db   : > { %1602 = vrot.lane.b32.xlu1 %v1587_v43, %s6078_s24 }
 0x3dc   : > { %5737 = vrot.lane.b32.xlu0 %v8457_v1, %s6078_s24 }
 0x3df   : > { %1562 = vrot.lane.b32.xlu1 %v1546_v44, %s6079_s25 }
 0x3e0   : > { %1634 = vrot.lane.b32.xlu0 %v6547_v62, %s6084_s30 }
 0x3e3   : > { %5742 = vrot.lane.b32.xlu1 %v8457_v1, %s6084_s30 }
 0x3e4   : > { %1632 = vrot.lane.b32.xlu0 %v6545_v59, %s6084_s30 }
 0x3e7   : > { %1676 = vrot.lane.b32.xlu1 %v1663_v45, %s8452_s23 }
 0x3e8   : > { %1678 = vrot.lane.b32.xlu0 %v8457_v1, %s8452_s23 }
 0x3eb   : > { %1674 = vrot.lane.b32.xlu1 %v1662_v46, %s8452_s23 }
 0x3ec   : > { %1604 = vrot.lane.b32.xlu0 %v1588_v48, %s6078_s24 }
 0x3ef   : > { %1638 = vrot.lane.b32.xlu1 %v6561_v14, %s6084_s30 }
 0x3f0   : > { %1640 = vrot.lane.b32.xlu0 %v6563_v20, %s6084_s30 }
 0x3f3   : > { %1684 = vrot.lane.b32.xlu1 %v8457_v1, %s8452_s23 }
 0x3f4   : > { %1682 = vrot.lane.b32.xlu0 %v1666_v51, %s8452_s23 }
 0x3f7   : > { %1760 = vperm.xlu1 %5709, %v1750_v53  }
 0x3f8   : > { %1680 = vrot.lane.b32.xlu0 %v1665_v54, %s8452_s23 }
 0x3fb   : > { %1770 = vperm.xlu1 %5709, %v1752_v55  }
 0x3fc   : > { %1765 = vperm.xlu0 %5710, %v1751_v57  }
 0x3ff   : > { %1780 = vperm.xlu1 %5709, %v1754_v58  }
 0x400   : > { %1775 = vperm.xlu0 %5710, %v1753_v60  }
 0x403   : > { %1790 = vperm.xlu1 %5709, %v1756_v61  }
 0x404   : > { %1785 = vperm.xlu0 %5710, %v1755_v63  }
 0x407   : > { %5747 = vrot.lane.b32.xlu1 %v8457_v1, %s6082_s28 }
 0x408   : > { %1795 = vperm.xlu0 %5710, %v1757_v0  }
 0x40b   : > { %5757 = vrot.lane.b32.xlu1 %v8457_v1, %s8454_s29 }
 0x40c   : > { %5752 = vrot.lane.b32.xlu0 %v8457_v1, %s6082_s28 }
 0x41d   : > { %v1427_v4 = vpop.permute.xlu1 %1426 }
 0x41e   : > { %v1391_v5 = vpop.permute.xlu0 %1390  ;;  %v1436_v30 = vsel %vm555_vm5, %v5719_v23, %v1427_v4 }
 0x41f   : > { %v1400_v10 = vsel %vm8485_vm6, %v5714_v6, %v1391_v5  ;;  %vm8491_vm6 = vmmov %vm8488_vm0 }
 0x421   : > { %v1393_v7 = vpop.permute.xlu1 %1392 }
 0x422   : > { %v1429_v8 = vpop.permute.xlu0 %1428  ;;  %v1401_v9 = vsel %vm8484_vm1, %v1391_v5, %v1393_v7  ;;  %vm8490_vm1 = vmmov %vm8488_vm0 }
 0x423   : > { %1870 = vmatprep.subr.bf16.mxu1 %v1401_v9  ;;  %v1437_v27 = vsel %vm555_vm5, %v1427_v4, %v1429_v8 }
 0x424   : > { %1871 = vmatpush1.bf16.msra.mxu1 %v1400_v10 }
 0x425   : > { %v1471_v11 = vpop.permute.xlu1 %1470 }
 0x426   : > { %v1469_v16 = vpop.permute.xlu0 %1468 }
 0x427   : > { %v1479_v42 = vsel %vm8488_vm0, %v1469_v16, %v1471_v11 }
 0x429   : > { %v1397_v12 = vpop.permute.xlu1 %1396 }
 0x42a   : > { %v1433_v15 = vpop.permute.xlu0 %1432  ;;  %v1402_v24 = vsel %vm8487_vm12, %v5715_v18, %v1397_v12 }
 0x42b   : > { %v1438_v39 = vsel %vm555_vm5, %v5720_v34, %v1433_v15 }
 0x42d   : > { %v1435_v13 = vpop.permute.xlu1 %1434 }
 0x42e   : > { %v1399_v19 = vpop.permute.xlu0 %1398  ;;  %v1439_v33 = vsel %vm555_vm5, %v1433_v15, %v1435_v13 }
 0x42f   : > { %v1403_v17 = vsel %vm8486_vm10, %v1397_v12, %v1399_v19  ;;  %vm8492_vm10 = vcmask 7168  }
 0x430   : > { %1872 = vmatprep.subr.bf16.mxu1 %v1403_v17  ;;  %vm8493_vm12 = vmmov %vm8492_vm10 }
 0x431   : > { %1873 = vmatpush1.bf16.msra.mxu1 %v1402_v24  ;;  %v1475_v26 = vpop.permute.xlu1 %1474  ;;  %vm8494_vm0 = vmmov %vm8492_vm10 }
 0x432   : > { %v5723_v28 = vpop.permute.xlu0 %5722  ;;  %1874 = vmatprep.subr.bf16.mxu1 %v1437_v27 }
 0x433   : > { %v5724_v38 = vunpack.i.l.bf16 %v5723_v28  ;;  %v5725_v44 = vunpack.i.h.bf16 %v5723_v28 }
 0x435   : > { %v1511_v31 = vpop.permute.xlu1 %1510  ;;  %1875 = vmatpush1.bf16.msra.mxu1 %v1436_v30  ;;  %v1478_v45 = vsel %vm8489_vm2, %v5724_v38, %v1469_v16  ;;  %v1480_v53 = vsel %vm8491_vm6, %v5725_v44, %v1475_v26  ;;  %vm8495_vm2 = vmmov %vm8494_vm0 }
 0x436   : > { %v1513_v37 = vpop.permute.xlu0 %1512  ;;  %1876 = vmatprep.subr.bf16.mxu1 %v1439_v33 }
 0x437   : > { %v1521_v55 = vsel %vm8492_vm10, %v1511_v31, %v1513_v37 }
 0x439   : > { %v5728_v40 = vpop.permute.xlu1 %5727  ;;  %1877 = vmatpush1.bf16.msra.mxu1 %v1438_v39 }
 0x43a   : > { %v1517_v43 = vpop.permute.xlu0 %1516  ;;  %1878 = vmatprep.subr.bf16.mxu1 %v1479_v42  ;;  %v5729_v51 = vunpack.i.l.bf16 %v5728_v40  ;;  %v5730_v58 = vunpack.i.h.bf16 %v5728_v40 }
 0x43c   : > { %v1520_v60 = vsel %vm8493_vm12, %v5729_v51, %v1511_v31  ;;  %v1522_v2 = vsel %vm8495_vm2, %v5730_v58, %v1517_v43  ;;  %vm8501_vm2 = vcmask 908288   ;;  %v5997_v58 = vld [vmem:[%s8434_s5 + $0x30] ss:$12 sps:$4 sm:$0xff]  }
 0x43d   : > { %v5733_v46 = vpop.permute.xlu1 %5732  ;;  %1879 = vmatpush1.bf16.msra.mxu1 %v1478_v45 }
 0x43e   : > { %v1477_v48 = vpop.permute.xlu0 %1476  ;;  %v5734_v5 = vunpack.i.l.bf16 %v5733_v46  ;;  %v5735_v11 = vunpack.i.h.bf16 %v5733_v46  ;;  %v5987_v46 = vld [vmem:[%s8434_s5] ss:$12 sps:$4 sm:$0xff]  }
 0x43f   : > { %v1481_v50 = vsel %vm8490_vm1, %v1475_v26, %v1477_v48  ;;  %vm8496_vm1 = vcmask 1039360   ;;  %v5991_v48 = vld [vmem:[%s8434_s5 + $0x1c] ss:$12 sps:$4 sm:$0xff]  }
 0x440   : > { %1880 = vmatprep.subr.bf16.mxu1 %v1481_v50  ;;  %vm8497_vm6 = vmmov %vm8496_vm1 }
 0x441   : > { %v1519_v54 = vpop.permute.xlu1 %1518  ;;  %1881 = vmatpush1.bf16.msra.mxu1 %v1480_v53  ;;  %vm8498_vm10 = vmmov %vm8496_vm1  ;;  %v5990_v53 = vld [vmem:[%s8434_s5 + $0x8] ss:$12 sps:$4 sm:$0xff]  }
 0x442   : > { %v1557_v57 = vpop.permute.xlu0 %1556  ;;  %1882 = vmatprep.subr.bf16.mxu1 %v1521_v55  ;;  %v1523_v63 = vsel %vm8494_vm0, %v1517_v43, %v1519_v54  ;;  %vm8499_vm12 = vmmov %vm8496_vm1  ;;  %vm8500_vm0 = vcmask 924672   ;;  %v5993_v54 = vld [vmem:[%s8434_s5 + $0x18] ss:$12 sps:$4 sm:$0xff]   ;;  %v5995_v55 = vld [vmem:[%s8434_s5 + $0x34] ss:$12 sps:$4 sm:$0xff]  }
 0x443   : > { %v1567_v9 = vsel %vm8496_vm1, %v1557_v57, %v5734_v5  ;;  %vm8502_vm1 = vmmov %vm8500_vm0 }
 0x445   : > { %v1599_v61 = vpop.permute.xlu1 %1598  ;;  %1883 = vmatpush1.bf16.msra.mxu1 %v1520_v60  ;;  %v5999_v60 = vld [vmem:[%s8434_s5 + $0x4c] ss:$12 sps:$4 sm:$0xff]  }
 0x446   : > { %v1555_v0 = vpop.permute.xlu0 %1554  ;;  %1884 = vmatprep.subr.bf16.mxu1 %v1523_v63  ;;  %v6001_v63 = vld [vmem:[%s8434_s5 + $0x48] ss:$12 sps:$4 sm:$0xff]  }
 0x447   : > { %v1566_v16 = vsel %vm8497_vm6, %v1555_v0, %v1557_v57  ;;  %vm8503_vm6 = vmmov %vm8501_vm2  ;;  %v5994_v57 = vld [vmem:[%s8434_s5 + $0x20] ss:$12 sps:$4 sm:$0xff]   ;;  %v6002_v0 = vld [vmem:[%s8434_s5 + $0x50] ss:$12 sps:$4 sm:$0xff]  }
 0x449   : > { %v1597_v3 = vpop.permute.xlu1 %1596  ;;  %1885 = vmatpush1.bf16.msra.mxu1 %v1522_v2 }
 0x44a   : > { %v1561_v4 = vpop.permute.xlu0 %1560  ;;  %1886 = vmatprep.subr.bf16.mxu1 %v6547_v62  ;;  %v1608_v17 = vsel %vm8502_vm1, %v1597_v3, %v1599_v61 }
 0x44d   : > { %v1603_v6 = vpop.permute.xlu1 %1602  ;;  %1887 = vmatpush1.bf16.msra.mxu1 %v6545_v59 }
 0x44e   : > { %v5738_v7 = vpop.permute.xlu0 %5737  ;;  %1888 = vmatprep.subr.bf16.mxu1 %v6563_v20 }
 0x44f   : > { %v5739_v12 = vunpack.i.l.bf16 %v5738_v7  ;;  %v5740_v23 = vunpack.i.h.bf16 %v5738_v7 }
 0x451   : > { %v1563_v8 = vpop.permute.xlu1 %1562  ;;  %1889 = vmatpush1.bf16.msra.mxu1 %v6561_v14  ;;  %v1609_v14 = vsel %vm8500_vm0, %v1599_v61, %v5739_v12  ;;  %v5998_v61 = vld [vmem:[%s8434_s5 + $0x38] ss:$12 sps:$4 sm:$0xff]  }
 0x452   : > { %v1635_v10 = vpop.permute.xlu0 %1634  ;;  %1890 = vmatprep.subr.bf16.mxu1 %v1567_v9  ;;  %v1569_v62 = vsel %vm8498_vm10, %v1563_v8, %v5735_v11  ;;  %v1568_v59 = vsel %vm8499_vm12, %v1561_v4, %v1563_v8  ;;  %vm8504_vm10 = vmmov %vm8500_vm0 }
 0x453   : > { %vm8505_vm12 = vmmov %vm8500_vm0  ;;  %vm8506_vm0 = vcmask 916480  }
 0x454   : > { %vm8508_vm1 = vmmov %vm8506_vm0 }
 0x455   : > { %v5743_v15 = vpop.permute.xlu1 %5742  ;;  %1891 = vmatpush1.bf16.msra.mxu1 %v1566_v16 }
 0x456   : > { %v1633_v13 = vpop.permute.xlu0 %1632  ;;  %1892 = vmatprep.subr.bf16.mxu1 %v1569_v62  ;;  %v5744_v24 = vunpack.i.l.bf16 %v5743_v15  ;;  %v5745_v38 = vunpack.i.h.bf16 %v5743_v15 }
 0x458   : > { %v1645_v34 = vsel %vm8506_vm0, %v1635_v10, %v5744_v24 }
 0x459   : > { %v1677_v20 = vpop.permute.xlu1 %1676  ;;  %1893 = vmatpush1.bf16.msra.mxu1 %v1568_v59 }
 0x45a   : > { %v1679_v18 = vpop.permute.xlu0 %1678  ;;  %1894 = vmatprep.subr.bf16.mxu1 %v1609_v14 }
 0x45b   : > { %v1687_v19 = vsel %vm8501_vm2, %v1677_v20, %v1679_v18  ;;  %vm8507_vm2 = vmmov %vm8506_vm0 }
 0x45c   : > { %1943 = vmatprep.subr.bf16.mxu0 %v1687_v19  ;;  %v1644_v39 = vsel %vm8507_vm2, %v1633_v13, %v1635_v10 }
 0x45d   : > { %v1675_v26 = vpop.permute.xlu1 %1674  ;;  %1895 = vmatpush1.bf16.msra.mxu1 %v1608_v17 }
 0x45e   : > { %v1686_v27 = vsel %vm8503_vm6, %v1675_v26, %v1677_v20  ;;  %v1605_v28 = vpop.permute.xlu0 %1604 }
 0x45f   : > { %1944 = vmatpush1.bf16.msra.mxu0 %v1686_v27  ;;  %v1611_v30 = vsel %vm8504_vm10, %v1605_v28, %v5740_v23  ;;  %v1610_v31 = vsel %vm8505_vm12, %v1603_v6, %v1605_v28  ;;  %vm8509_vm10 = vmmov %vm8506_vm0  ;;  %vm8511_vm0 = vcmask 261120  }
 0x460   : > { %1896 = vmatprep.subr.bf16.mxu1 %v1611_v30  ;;  %vm8510_vm12 = vmmov %vm8503_vm6 }
 0x461   : > { %v1639_v33 = vpop.permute.xlu1 %1638  ;;  %1897 = vmatpush1.bf16.msra.mxu1 %v1610_v31  ;;  %vm8512_vm2 = vmmov %vm8511_vm0 }
 0x462   : > { %v1641_v37 = vpop.permute.xlu0 %1640  ;;  %1898 = vmatprep.subr.bf16.mxu1 %v1645_v34 }
 0x463   : > { %v1647_v42 = vsel %vm8508_vm1, %v1641_v37, %v5745_v38  ;;  %v1646_v45 = vsel %vm8509_vm10, %v1639_v33, %v1641_v37  ;;  %vm8513_vm1 = vmmov %vm8511_vm0 }
 0x465   : > { %1899 = vmatpush1.bf16.msra.mxu1 %v1644_v39  ;;  %v1685_v40 = vpop.permute.xlu1 %1684 }
 0x466   : > { %v1683_v43 = vpop.permute.xlu0 %1682  ;;  %1900 = vmatprep.subr.bf16.mxu1 %v1647_v42 }
 0x467   : > { %v1689_v44 = vsel %vm8503_vm6, %v1683_v43, %v1685_v40  ;;  %vm8514_vm6 = vmmov %vm8511_vm0 }
 0x468   : > { %1945 = vmatprep.subr.bf16.mxu0 %v1689_v44 }
 0x469   : > { %1901 = vmatpush1.bf16.msra.mxu1 %v1646_v45 }
 0x46a   : > { %v1681_v50 = vpop.permute.xlu0 %1680 }
 0x46b   : > { %v1688_v51 = vsel %vm8510_vm12, %v1681_v50, %v1683_v43 }
 0x46c   : > { %1903 = vmatmul.mubr.bf16.vlgmr.msra.gmra.mrb[12].mxu1 %v5987_v46  ;;  %1946 = vmatpush1.bf16.msra.mxu0 %v1688_v51 }
 0x46d   : > { %1912 = vmatprep.mubr.bf16.mxu1 %v5991_v48 }
 0x46f   : > { %5440 = vmatmul.mubr.msk.bf16.vlgmr.msra.gmra.mrb[4].mxu0 %vm8511_vm0, %v5990_v53 }
 0x470   : > { %1985 = vmatprep.mubr.bf16.mxu0 %v8457_v1 }
 0x474   : > { %1913 = vmatmul.mubr.bf16.gmra.mrb[16].mxu1 %v5993_v54 }
 0x475   : > { %1922 = vmatprep.mubr.bf16.mxu1 %v5995_v55 }
 0x476   : > { %v1761_v2 = vpop.permute.xlu1 %1760 }
 0x477   : > { %5441 = vmatmul.mubr.msk.bf16.gmra.mrb[8].mxu0 %vm8512_vm2, %v5994_v57 }
 0x478   : > { %1995 = vmatprep.mubr.bf16.mxu0 %v8457_v1 }
 0x47a   : > { %v1771_v17 = vpop.permute.xlu1 %1770 }
 0x47b   : > { %v1766_v6 = vpop.permute.xlu0 %1765 }
 0x47c   : > { %1923 = vmatmul.mubr.bf16.gmra.mrb[20].mxu1 %v5997_v58 }
 0x47d   : > { %1932 = vmatprep.mubr.bf16.mxu1 %v5999_v60 }
 0x47f   : > { %5442 = vmatmul.mubr.msk.bf16.gmra.mrb[12].mxu0 %vm8513_vm1, %v5998_v61  ;;  %v1776_v30 = vpop.permute.xlu0 %1775  ;;  %v1781_v61 = vpop.permute.xlu1 %1780 }
 0x480   : > { %2005 = vmatprep.mubr.bf16.mxu0 %v8457_v1 }
 0x484   : > { %1933 = vmatmul.mubr.bf16.gmra.mrb[24].mxu1 %v6001_v63 }
 0x487   : > { %5443 = vmatmul.mubr.msk.bf16.gmra.mrb[16].mxu0 %vm8514_vm6, %v6002_v0 }
 0x53f   : > { %v1904_v3 = vpop.f32.mrb[12].mxu1 }
 0x540   : > { %v1905_v4 = vadd.f32 %v1904_v3, %v1761_v2  ;;  %v1906_v5 = vpop.f32.mrb[13].mxu1 }
 0x541   : > { %v1907_v7 = vadd.f32 %v1906_v5, %v1761_v2  ;;  %v1908_v8 = vpop.f32.mrb[14].mxu1 }
 0x542   : > { %v1909_v9 = vadd.f32 %v1908_v8, %v1766_v6  ;;  %v1910_v10 = vpop.f32.mrb[15].mxu1  ;;  %v1977_v11 = vpop.f32.mrb[4].mxu0 }
 0x543   : > { %v1911_v16 = vadd.f32 %v1910_v10, %v1766_v6  ;;  %v1978_v12 = vadd.f32 %v1977_v11, %v1905_v4  ;;  %v1979_v15 = vpop.f32.mrb[5].mxu0 }
 0x544   : > { %v1980_v62 = vadd.f32 %v1979_v15, %v1907_v7  ;;  %v1981_v13 = vpop.f32.mrb[6].mxu0  ;;  %v1786_v7 = vpop.permute.xlu0 %1785 }
 0x545   : > { %v2032_v59 = vmul.f32 0.2, %v1978_v12  ;;  %v1982_v20 = vadd.f32 %v1981_v13, %v1909_v9  ;;  %v1983_v14 = vpop.f32.mrb[7].mxu0  ;;  %vm2016_vm10 = vcmp.ge.f32.partialorder %v1978_v12, 0.0 }
 0x546   : > { %v2033_v18 = vmul.f32 0.2, %v1980_v62  ;;  %v1984_v19 = vadd.f32 %v1983_v14, %v1911_v16  ;;  %vm2017_vm12 = vcmp.ge.f32.partialorder %v1980_v62, 0.0 }
 0x547   : > { %vm2018_vm0 = vcmp.ge.f32.partialorder %v1982_v20, 0.0  ;;  %v2034_v23 = vmul.f32 0.2, %v1982_v20  ;;  %v1914_v24 = vpop.f32.mrb[16].mxu1  ;;  %v2048_v31 = vsel %vm2016_vm10, %v1978_v12, %v2032_v59 }
 0x548   : > { %vm2019_vm2 = vcmp.ge.f32.partialorder %v1984_v19, 0.0  ;;  %v2035_v26 = vmul.f32 0.2, %v1984_v19  ;;  %v1915_v27 = vadd.f32 %v1914_v24, %v1771_v17  ;;  %v1916_v28 = vpop.f32.mrb[17].mxu1  ;;  %v2049_v38 = vsel %vm2017_vm12, %v1980_v62, %v2033_v18 }
 0x549   : > { %v2050_v33 = vsel %vm2018_vm0, %v1982_v20, %v2034_v23  ;;  %v1917_v34 = vadd.f32 %v1916_v28, %v1771_v17  ;;  %v1918_v37 = vpop.f32.mrb[18].mxu1 }
 0x54a   : > { %v6788_v39 = vpack.c.bf16 %v2050_v33, %v2048_v31  ;;  %v2051_v40 = vsel %vm2019_vm2, %v1984_v19, %v2035_v26  ;;  %v1919_v42 = vadd.f32 %v1918_v37, %v1776_v30  ;;  %v1920_v43 = vpop.f32.mrb[19].mxu1  ;;  %v1987_v44 = vpop.f32.mrb[8].mxu0 }
 0x54b   : > { %v6790_v45 = vpack.c.bf16 %v2051_v40, %v2049_v38  ;;  %v1921_v46 = vadd.f32 %v1920_v43, %v1776_v30  ;;  %v1988_v48 = vadd.f32 %v1987_v44, %v1915_v27  ;;  %v1989_v50 = vpop.f32.mrb[9].mxu0  ;;  %v1791_v31 = vpop.permute.xlu1 %1790 }
 0x54c   : > { %v1990_v51 = vadd.f32 %v1989_v50, %v1917_v34  ;;  %v1991_v53 = vpop.f32.mrb[10].mxu0  ;;  %2190 = vrot.lane.b32.xlu1 %v6788_v39, %s8454_s29  ;;  %v2093_v2 = vsel %vm492_vm8, %v6788_v39, 0  ;;  %v1796_v44 = vpop.permute.xlu0 %1795 }
 0x54d   : > { %v2036_v54 = vmul.f32 0.2, %v1988_v48  ;;  %v1992_v55 = vadd.f32 %v1991_v53, %v1919_v42  ;;  %v1993_v57 = vpop.f32.mrb[11].mxu0  ;;  %2192 = vrot.lane.b32.xlu0 %v6790_v45, %s8454_s29  ;;  %vm2020_vm1 = vcmp.ge.f32.partialorder %v1988_v48, 0.0  ;;  %v2094_v6 = vsel %vm493_vm7, %v6790_v45, 0 }
 0x54e   : > { %v2037_v58 = vmul.f32 0.2, %v1990_v51  ;;  %v1994_v60 = vadd.f32 %v1993_v57, %v1921_v46  ;;  %vm2021_vm6 = vcmp.ge.f32.partialorder %v1990_v51, 0.0 }
 0x54f   : > { %vm2022_vm10 = vcmp.ge.f32.partialorder %v1992_v55, 0.0  ;;  %v2038_v63 = vmul.f32 0.2, %v1992_v55  ;;  %v1924_v0 = vpop.f32.mrb[20].mxu1  ;;  %v2052_v8 = vsel %vm2020_vm1, %v1988_v48, %v2036_v54 }
 0x550   : > { %vm2023_vm12 = vcmp.ge.f32.partialorder %v1994_v60, 0.0  ;;  %v2039_v3 = vmul.f32 0.2, %v1994_v60  ;;  %v1925_v4 = vadd.f32 %v1924_v0, %v1781_v61  ;;  %v1926_v5 = vpop.f32.mrb[21].mxu1  ;;  %2118 = vrot.lane.b32.xlu1 %v2093_v2, %s6082_s28  ;;  %v2053_v16 = vsel %vm2021_vm6, %v1990_v51, %v2037_v58 }
 0x551   : > { %v2054_v9 = vsel %vm2022_vm10, %v1992_v55, %v2038_v63  ;;  %v1927_v10 = vadd.f32 %v1926_v5, %v1781_v61  ;;  %v1928_v11 = vpop.f32.mrb[22].mxu1  ;;  %2120 = vrot.lane.b32.xlu0 %v2094_v6, %s6082_s28 }
 0x552   : > { %v6806_v12 = vpack.c.bf16 %v2054_v9, %v2052_v8  ;;  %v2055_v15 = vsel %vm2023_vm12, %v1994_v60, %v2039_v3  ;;  %v1929_v62 = vadd.f32 %v1928_v11, %v1786_v7  ;;  %v1930_v13 = vpop.f32.mrb[23].mxu1  ;;  %v1997_v59 = vpop.f32.mrb[12].mxu0 }
 0x553   : > { %v6808_v20 = vpack.c.bf16 %v2055_v15, %v2053_v16  ;;  %v1931_v14 = vadd.f32 %v1930_v13, %v1786_v7  ;;  %v1998_v18 = vadd.f32 %v1997_v59, %v1925_v4  ;;  %v1999_v19 = vpop.f32.mrb[13].mxu0 }
 0x554   : > { %v2000_v17 = vadd.f32 %v1999_v19, %v1927_v10  ;;  %v2001_v23 = vpop.f32.mrb[14].mxu0  ;;  %v2096_v37 = vsel %vm492_vm8, %v6806_v12, 0 }
 0x555   : > { %v2040_v24 = vmul.f32 0.2, %v1998_v18  ;;  %v2002_v26 = vadd.f32 %v2001_v23, %v1929_v62  ;;  %v2003_v27 = vpop.f32.mrb[15].mxu0  ;;  %2196 = vrot.lane.b32.xlu0 %v6806_v12, %s8454_s29  ;;  %2198 = vrot.lane.b32.xlu1 %v6808_v20, %s8454_s29  ;;  %vm2024_vm0 = vcmp.ge.f32.partialorder %v1998_v18, 0.0  ;;  %v2097_v43 = vsel %vm493_vm7, %v6808_v20, 0 }
 0x556   : > { %v2041_v28 = vmul.f32 0.2, %v2000_v17  ;;  %v2004_v30 = vadd.f32 %v2003_v27, %v1931_v14  ;;  %vm2025_vm2 = vcmp.ge.f32.partialorder %v2000_v17, 0.0  ;;  %v2252_v27 = vsel %vm595_vm13, %v6806_v12, 0 }
 0x557   : > { %vm2026_vm1 = vcmp.ge.f32.partialorder %v2002_v26, 0.0  ;;  %v2042_v33 = vmul.f32 0.2, %v2002_v26  ;;  %v1934_v34 = vpop.f32.mrb[24].mxu1  ;;  %v2056_v46 = vsel %vm2024_vm0, %v1998_v18, %v2040_v24  ;;  %v2249_v24 = vsel %vm595_vm13, %v6788_v39, 0 }
 0x558   : > { %vm2027_vm6 = vcmp.ge.f32.partialorder %v2004_v30, 0.0  ;;  %v2043_v38 = vmul.f32 0.2, %v2004_v30  ;;  %v1935_v40 = vadd.f32 %v1934_v34, %v1791_v31  ;;  %v1936_v42 = vpop.f32.mrb[25].mxu1  ;;  %v2057_v53 = vsel %vm2025_vm2, %v2000_v17, %v2041_v28 }
 0x559   : > { %v2058_v48 = vsel %vm2026_vm1, %v2002_v26, %v2042_v33  ;;  %v1937_v50 = vadd.f32 %v1936_v42, %v1791_v31  ;;  %v1938_v51 = vpop.f32.mrb[26].mxu1  ;;  %2124 = vrot.lane.b32.xlu0 %v2096_v37, %s6082_s28  ;;  %2126 = vrot.lane.b32.xlu1 %v2097_v43, %s6082_s28  ;;  %v2250_v26 = vsel %vm596_vm9, %v6790_v45, 0  ;;  %v2253_v28 = vsel %vm596_vm9, %v6808_v20, 0 }
 0x55a   : > { %v6823_v54 = vpack.c.bf16 %v2058_v48, %v2056_v46  ;;  %v2059_v55 = vsel %vm2027_vm6, %v2004_v30, %v2043_v38  ;;  %v1939_v57 = vadd.f32 %v1938_v51, %v1796_v44  ;;  %v1940_v58 = vpop.f32.mrb[27].mxu1  ;;  %v2007_v60 = vpop.f32.mrb[16].mxu0  ;;  %v2334_v34 = vsel %vm648_vm11, %v6790_v45, 0 }
 0x55b   : > { %v6825_v61 = vpack.c.bf16 %v2059_v55, %v2057_v53  ;;  %v1941_v63 = vadd.f32 %v1940_v58, %v1796_v44  ;;  %v2008_v0 = vadd.f32 %v2007_v60, %v1935_v40  ;;  %v2009_v2 = vpop.f32.mrb[17].mxu0  ;;  %v2333_v37 = vsel %vm647_vm15, %v6788_v39, 0  ;;  %v6005_v44 = vld [vmem:[%s8436_s7 + $0x4] ss:$20 sps:$4 sm:$0xff]  }
 0x55c   : > { %v2010_v3 = vadd.f32 %v2009_v2, %v1937_v50  ;;  %v2011_v4 = vpop.f32.mrb[18].mxu0  ;;  %v2099_v15 = vsel %vm492_vm8, %v6823_v54, 0  ;;  %v2255_v30 = vsel %vm595_vm13, %v6823_v54, 0  ;;  %v2336_v40 = vsel %vm647_vm15, %v6806_v12, 0  ;;  %3209 = vmatprep.mubr.bf16.mxu0 %v6005_v44 }
 0x55d   : > { %v2044_v5 = vmul.f32 0.2, %v2008_v0  ;;  %v2012_v6 = vadd.f32 %v2011_v4, %v1939_v57  ;;  %v2013_v7 = vpop.f32.mrb[19].mxu0  ;;  %2202 = vrot.lane.b32.xlu0 %v6823_v54, %s8454_s29  ;;  %v2100_v8 = vsel %vm493_vm7, %v6825_v61, 0  ;;  %vm2028_vm10 = vcmp.ge.f32.partialorder %v2008_v0, 0.0 }
 0x55e   : > { %v2045_v9 = vmul.f32 0.2, %v2010_v3  ;;  %v2014_v10 = vadd.f32 %v2013_v7, %v1941_v63  ;;  %2132 = vrot.lane.b32.xlu1 %v2100_v8, %s6082_s28  ;;  %vm2029_vm12 = vcmp.ge.f32.partialorder %v2010_v3, 0.0  ;;  %v2256_v31 = vsel %vm596_vm9, %v6825_v61, 0 }
 0x55f   : > { %vm2030_vm0 = vcmp.ge.f32.partialorder %v2012_v6, 0.0  ;;  %v2046_v11 = vmul.f32 0.2, %v2012_v6  ;;  %v2060_v62 = vsel %vm2028_vm10, %v2008_v0, %v2044_v5  ;;  %v2337_v42 = vsel %vm648_vm11, %v6808_v20, 0  ;;  %v5748_v5 = vpop.permute.xlu1 %5747 }
 0x560   : > { %vm2031_vm2 = vcmp.ge.f32.partialorder %v2014_v10, 0.0  ;;  %v2047_v16 = vmul.f32 0.2, %v2014_v10  ;;  %v2061_v59 = vsel %vm2029_vm12, %v2010_v3, %v2045_v9  ;;  %v2339_v43 = vsel %vm647_vm15, %v6823_v54, 0 }
 0x561   : > { %v2062_v13 = vsel %vm2030_vm0, %v2012_v6, %v2046_v11  ;;  %2130 = vrot.lane.b32.xlu0 %v2099_v15, %s6082_s28  ;;  %v2340_v46 = vsel %vm648_vm11, %v6825_v61, 0  ;;  %vm8515_vm1 = vcmp.ne.s16.totalorder %v6306_v47, 0  ;;  %v2424_v53 = vsel %vm701_vm14, %v6788_v39, 0 }
 0x562   : > { %v6837_v14 = vpack.c.bf16 %v2062_v13, %v2060_v62  ;;  %v2063_v18 = vsel %vm2031_vm2, %v2014_v10, %v2047_v16  ;;  %v2425_v51 = vsel %vm8515_vm1, %v6790_v45, 0  ;;  %vm8516_vm6 = vmmov %vm8515_vm1  ;;  %v2427_v57 = vsel %vm701_vm14, %v6806_v12, 0  ;;  %v5753_v10 = vpop.permute.xlu0 %5752 }
 0x563   : > { %v6839_v19 = vpack.c.bf16 %v2063_v18, %v2061_v59  ;;  %v2428_v55 = vsel %vm8516_vm6, %v6808_v20, 0  ;;  %vm8517_vm10 = vmmov %vm8515_vm1  ;;  %v2430_v60 = vsel %vm701_vm14, %v6823_v54, 0  ;;  %v2509_v63 = vsel %vm752_vm4, %v6790_v45, 0  ;;  %v6990_v8 = vpop.permute.xlu1 %5757 }
 0x564   : > { %v2102_v17 = vsel %vm492_vm8, %v6837_v14, 0  ;;  %v2258_v33 = vsel %vm595_vm13, %v6837_v14, 0  ;;  %v2342_v48 = vsel %vm647_vm15, %v6837_v14, 0  ;;  %v2431_v58 = vsel %vm8517_vm10, %v6825_v61, 0  ;;  %vm8519_vm0 = vmmov %vm8515_vm1 }
 0x565   : > { %2136 = vrot.lane.b32.xlu1 %v2102_v17, %s6082_s28  ;;  %v2103_v23 = vsel %vm493_vm7, %v6839_v19, 0  ;;  %v2259_v38 = vsel %vm596_vm9, %v6839_v19, 0  ;;  %v2343_v50 = vsel %vm648_vm11, %v6839_v19, 0  ;;  %v2433_v0 = vsel %vm701_vm14, %v6837_v14, 0 }
 0x566   : > { %2138 = vrot.lane.b32.xlu0 %v2103_v23, %s6082_s28  ;;  %vm8518_vm12 = vcmp.ne.s16.totalorder %v6279_v41, 0  ;;  %v2434_v3 = vsel %vm8519_vm0, %v6839_v19, 0  ;;  %v2512_v4 = vsel %vm752_vm4, %v6808_v20, 0  ;;  %v2515_v7 = vsel %vm752_vm4, %v6825_v61, 0 }
 0x567   : > { %v2508_v2 = vsel %vm8518_vm12, %v6788_v39, 0  ;;  %vm8520_vm2 = vmmov %vm8518_vm12  ;;  %v2518_v62 = vsel %vm752_vm4, %v6839_v19, 0  ;;  %v5749_v59 = vunpack.i.l.bf16 %v5748_v5  ;;  %vm8523_vm10 = vcmask 138240  }
 0x568   : > { %v2511_v6 = vsel %vm8520_vm2, %v6806_v12, 0  ;;  %vm8521_vm1 = vmmov %vm8520_vm2  ;;  %v2665_v44 = vsel %vm839_vm3, %v6790_v45, 0 }
 0x569   : > { %2204 = vrot.lane.b32.xlu1 %v6825_v61, %s8454_s29  ;;  %v2514_v9 = vsel %vm8521_vm1, %v6823_v54, 0  ;;  %vm8522_vm6 = vmmov %vm8521_vm1 }
 0x56a   : > { %5762 = vrot.lane.b32.xlu0 %v8457_v1, %s8454_s29  ;;  %v2517_v11 = vsel %vm8522_vm6, %v6837_v14, 0  ;;  %vm8524_vm12 = vmmov %vm8523_vm10 }
 0x56b   : > { %vm8525_vm0 = vmmov %vm8523_vm10 }
 0x56c   : > { %vm8526_vm2 = vmmov %vm8525_vm0 }
 0x56d   : > { %2208 = vrot.lane.b32.xlu1 %v6837_v14, %s8454_s29  ;;  %vm8527_vm1 = vmmov %vm8525_vm0 }
 0x56e   : > { %2210 = vrot.lane.b32.xlu0 %v6839_v19, %s8454_s29  ;;  %vm8528_vm6 = vmmov %vm8525_vm0 }
 0x571   : > { %2274 = vrot.lane.b32.xlu1 %v2249_v24, %s6081_s27 }
 0x572   : > { %2276 = vrot.lane.b32.xlu0 %v2250_v26, %s6081_s27 }
 0x575   : > { %5767 = vrot.lane.b32.xlu1 %v8457_v1, %s6081_s27 }
 0x576   : > { %2280 = vrot.lane.b32.xlu0 %v2252_v27, %s6081_s27  ;;  %v5750_v27 = vunpack.i.h.bf16 %v5748_v5 }
 0x579   : > { %2282 = vrot.lane.b32.xlu1 %v2253_v28, %s6081_s27 }
 0x57a   : > { %2286 = vrot.lane.b32.xlu0 %v2255_v30, %s6081_s27 }
 0x57d   : > { %2288 = vrot.lane.b32.xlu1 %v2256_v31, %s6081_s27 }
 0x57e   : > { %5772 = vrot.lane.b32.xlu0 %v8457_v1, %s6081_s27 }
 0x581   : > { %2292 = vrot.lane.b32.xlu1 %v2258_v33, %s6081_s27 }
 0x582   : > { %2360 = vrot.lane.b32.xlu0 %v2334_v34, %s6080_s26 }
 0x585   : > { %2358 = vrot.lane.b32.xlu1 %v2333_v37, %s6080_s26  ;;  %v5754_v37 = vunpack.i.l.bf16 %v5753_v10 }
 0x586   : > { %2294 = vrot.lane.b32.xlu0 %v2259_v38, %s6081_s27 }
 0x589   : > { %5777 = vrot.lane.b32.xlu1 %v8457_v1, %s6080_s26 }
 0x58a   : > { %2364 = vrot.lane.b32.xlu0 %v2336_v40, %s6080_s26 }
 0x58d   : > { %2366 = vrot.lane.b32.xlu1 %v2337_v42, %s6080_s26 }
 0x58e   : > { %2370 = vrot.lane.b32.xlu0 %v2339_v43, %s6080_s26 }
 0x591   : > { %2372 = vrot.lane.b32.xlu1 %v2340_v46, %s6080_s26 }
 0x592   : > { %5782 = vrot.lane.b32.xlu0 %v8457_v1, %s6080_s26 }
 0x595   : > { %2376 = vrot.lane.b32.xlu1 %v2342_v48, %s6080_s26  ;;  %v5755_v48 = vunpack.i.h.bf16 %v5753_v10 }
 0x596   : > { %2378 = vrot.lane.b32.xlu0 %v2343_v50, %s6080_s26 }
 0x599   : > { %2450 = vrot.lane.b32.xlu1 %v2425_v51, %s6079_s25 }
 0x59a   : > { %5787 = vrot.lane.b32.xlu0 %v8457_v1, %s6079_s25 }
 0x59d   : > { %2448 = vrot.lane.b32.xlu1 %v2424_v53, %s6079_s25 }
 0x59e   : > { %2456 = vrot.lane.b32.xlu0 %v2428_v55, %s6079_s25  ;;  %v5759_v55 = vunpack.i.l.bf16 %v6990_v8 }
 0x5a1   : > { %2454 = vrot.lane.b32.xlu1 %v2427_v57, %s6079_s25 }
 0x5a2   : > { %2462 = vrot.lane.b32.xlu0 %v2431_v58, %s6079_s25 }
 0x5a5   : > { %5792 = vrot.lane.b32.xlu1 %v8457_v1, %s6079_s25 }
 0x5a6   : > { %2460 = vrot.lane.b32.xlu0 %v2430_v60, %s6079_s25 }
 0x5a9   : > { %2534 = vrot.lane.b32.xlu1 %v2509_v63, %s6078_s24 }
 0x5aa   : > { %2466 = vrot.lane.b32.xlu0 %v2433_v0, %s6079_s25  ;;  %v2668_v0 = vsel %vm839_vm3, %v6808_v20, 0 }
 0x5ad   : > { %2532 = vrot.lane.b32.xlu1 %v2508_v2, %s6078_s24 }
 0x5ae   : > { %5797 = vrot.lane.b32.xlu0 %v8457_v1, %s6078_s24 }
 0x5b1   : > { %2468 = vrot.lane.b32.xlu1 %v2434_v3, %s6079_s25 }
 0x5b2   : > { %2540 = vrot.lane.b32.xlu0 %v2512_v4, %s6078_s24 }
 0x5b5   : > { %2538 = vrot.lane.b32.xlu1 %v2511_v6, %s6078_s24  ;;  %v5760_v6 = vunpack.i.h.bf16 %v6990_v8 }
 0x5b6   : > { %2546 = vrot.lane.b32.xlu0 %v2515_v7, %s6078_s24 }
 0x5b9   : > { %5802 = vrot.lane.b32.xlu1 %v8457_v1, %s6078_s24 }
 0x5ba   : > { %2544 = vrot.lane.b32.xlu0 %v2514_v9, %s6078_s24  ;;  %v2671_v9 = vsel %vm839_vm3, %v6825_v61, 0 }
 0x5bd   : > { %2606 = vrot.lane.b32.xlu1 %v6790_v45, %s6084_s30 }
 0x5be   : > { %2550 = vrot.lane.b32.xlu0 %v2517_v11, %s6078_s24  ;;  %v2191_v16 = vpop.permute.xlu1 %2190 }
 0x5bf   : > { %v2193_v15 = vpop.permute.xlu0 %2192  ;;  %v2212_v3 = vsel %vm555_vm5, %v5759_v55, %v2191_v16 }
 0x5c0   : > { %v2213_v60 = vsel %vm555_vm5, %v2191_v16, %v2193_v15 }
 0x5c1   : > { %2552 = vrot.lane.b32.xlu1 %v2518_v62, %s6078_s24 }
 0x5c2   : > { %5807 = vrot.lane.b32.xlu0 %v8457_v1, %s6084_s30  ;;  %v2119_v13 = vpop.permute.xlu1 %2118 }
 0x5c3   : > { %v2121_v18 = vpop.permute.xlu0 %2120  ;;  %v2140_v23 = vsel %vm8524_vm12, %v5749_v59, %v2119_v13  ;;  %vm8531_vm12 = vmmov %vm8525_vm0 }
 0x5c4   : > { %v2141_v17 = vsel %vm8523_vm10, %v2119_v13, %v2121_v18  ;;  %vm8530_vm10 = vcmp.ne.s16.totalorder %v6323_v52, 0  ;;  %v2674_v13 = vsel %vm839_vm3, %v6839_v19, 0 }
 0x5c5   : > { %2604 = vrot.lane.b32.xlu1 %v6788_v39, %s6084_s30  ;;  %3177 = vmatprep.subr.bf16.mxu0 %v2141_v17  ;;  %v2664_v51 = vsel %vm8530_vm10, %v6788_v39, 0 }
 0x5c6   : > { %2612 = vrot.lane.b32.xlu0 %v6808_v20, %s6084_s30  ;;  %3178 = vmatpush1.bf16.msra.mxu0 %v2140_v23 }
 0x5c7   : > { %v2197_v24 = vpop.permute.xlu0 %2196  ;;  %v2199_v26 = vpop.permute.xlu1 %2198 }
 0x5c8   : > { %v2215_v5 = vsel %vm555_vm5, %v2197_v24, %v2199_v26  ;;  %v2214_v11 = vsel %vm555_vm5, %v5760_v6, %v2197_v24 }
 0x5c9   : > { %2610 = vrot.lane.b32.xlu1 %v6806_v12, %s6084_s30 }
 0x5ca   : > { %2618 = vrot.lane.b32.xlu0 %v6825_v61, %s6084_s30 }
 0x5cb   : > { %v2125_v28 = vpop.permute.xlu0 %2124  ;;  %v2127_v30 = vpop.permute.xlu1 %2126 }
 0x5cc   : > { %v2143_v31 = vsel %vm8525_vm0, %v2125_v28, %v2127_v30  ;;  %v2142_v33 = vsel %vm8526_vm2, %v5750_v27, %v2125_v28  ;;  %vm8532_vm2 = vmmov %vm8530_vm10  ;;  %v2856_v30 = vld [vmem:[%s8437_s8] sm:$0xff]  ;;  %vm8535_vm10 = vcmask 121856  }
 0x5cd   : > { %2620 = vrot.lane.b32.xlu1 %v8457_v1, %s6084_s30  ;;  %3179 = vmatprep.subr.bf16.mxu0 %v2143_v31  ;;  %v2667_v2 = vsel %vm8532_vm2, %v6806_v12, 0 }
 0x5ce   : > { %2616 = vrot.lane.b32.xlu0 %v6823_v54, %s6084_s30  ;;  %3180 = vmatpush1.bf16.msra.mxu0 %v2142_v33 }
 0x5cf   : > { %v2203_v34 = vpop.permute.xlu0 %2202 }
 0x5d0   : > { %v2133_v38 = vpop.permute.xlu1 %2132 }
 0x5d1   : > { %2624 = vrot.lane.b32.xlu1 %v6839_v19, %s6084_s30 }
 0x5d2   : > { %2626 = vrot.lane.b32.xlu0 %v8457_v1, %s6084_s30 }
 0x5d3   : > { %v2131_v40 = vpop.permute.xlu0 %2130 }
 0x5d4   : > { %v2145_v42 = vsel %vm8527_vm1, %v2131_v40, %v2133_v38  ;;  %v2144_v43 = vsel %vm8528_vm6, %v5754_v37, %v2131_v40  ;;  %vm8533_vm1 = vmmov %vm8532_vm2 }
 0x5d5   : > { %2622 = vrot.lane.b32.xlu1 %v6837_v14, %s6084_s30  ;;  %3181 = vmatprep.subr.bf16.mxu0 %v2145_v42  ;;  %v2670_v8 = vsel %vm8533_vm1, %v6823_v54, 0  ;;  %vm8534_vm6 = vmmov %vm8533_vm1  ;;  %v2858_v42 = vld [vmem:[%s8437_s8 + $0x10] sm:$0xff] }
 0x5d6   : > { %2690 = vrot.lane.b32.xlu0 %v2665_v44, %s8529_s13  ;;  %3182 = vmatpush1.bf16.msra.mxu0 %v2144_v43  ;;  %v2673_v26 = vsel %vm8534_vm6, %v6837_v14, 0 }
 0x5d7   : > { %v2137_v46 = vpop.permute.xlu1 %2136 }
 0x5d8   : > { %v2139_v50 = vpop.permute.xlu0 %2138  ;;  %v2146_v57 = vsel %vm8525_vm0, %v5755_v48, %v2137_v46  ;;  %vm8537_vm0 = vmmov %vm8535_vm10 }
 0x5d9   : > { %5812 = vrot.lane.b32.xlu1 %v8457_v1, %s8529_s13  ;;  %v2147_v53 = vsel %vm8531_vm12, %v2137_v46, %v2139_v50  ;;  %vm8536_vm12 = vmmov %vm8535_vm10  ;;  %v2859_v46 = vld [vmem:[%s8437_s8 + $0x18] sm:$0xff] }
 0x5da   : > { %2688 = vrot.lane.b32.xlu0 %v2664_v51, %s8529_s13  ;;  %3183 = vmatprep.subr.bf16.mxu0 %v2147_v53  ;;  %vm8538_vm2 = vmmov %vm8537_vm0  ;;  %v2860_v53 = vld [vmem:[%s8437_s8 + $0x20] sm:$0xff] }
 0x5db   : > { %3184 = vmatpush1.bf16.msra.mxu0 %v2146_v57  ;;  %v2205_v58 = vpop.permute.xlu1 %2204  ;;  %vm8539_vm1 = vmmov %vm8537_vm0 }
 0x5dc   : > { %v5763_v63 = vpop.permute.xlu0 %5762  ;;  %3185 = vmatprep.subr.bf16.mxu0 %v2213_v60  ;;  %v2217_v15 = vsel %vm555_vm5, %v2203_v34, %v2205_v58  ;;  %v2861_v58 = vld [vmem:[%s8437_s8 + $0x28] sm:$0xff]  ;;  %vm8540_vm6 = vmmov %vm8537_vm0 }
 0x5dd   : > { %2696 = vrot.lane.b32.xlu1 %v2668_v0, %s8529_s13  ;;  %v5764_v10 = vunpack.i.l.bf16 %v5763_v63  ;;  %v5765_v59 = vunpack.i.h.bf16 %v5763_v63 }
 0x5de   : > { %2694 = vrot.lane.b32.xlu0 %v2667_v2, %s8529_s13  ;;  %v2862_v2 = vld [vmem:[%s8437_s8 + $0x30] sm:$0xff] }
 0x5df   : > { %3186 = vmatpush1.bf16.msra.mxu0 %v2212_v3  ;;  %v2209_v4 = vpop.permute.xlu1 %2208  ;;  %v2216_v18 = vsel %vm555_vm5, %v5764_v10, %v2203_v34  ;;  %v2857_v34 = vld [vmem:[%s8437_s8 + $0x8] sm:$0xff] }
 0x5e0   : > { %v2211_v7 = vpop.permute.xlu0 %2210  ;;  %3187 = vmatprep.subr.bf16.mxu0 %v2215_v5  ;;  %v2218_v28 = vsel %vm555_vm5, %v5765_v59, %v2209_v4  ;;  %v2866_v59 = vld [vmem:[%s8437_s8 + $0x50] sm:$0xff] }
 0x5e1   : > { %2702 = vrot.lane.b32.xlu1 %v2671_v9, %s8529_s13  ;;  %v2219_v23 = vsel %vm555_vm5, %v2209_v4, %v2211_v7  ;;  %v2863_v4 = vld [vmem:[%s8437_s8 + $0x38] sm:$0xff]  ;;  %v2864_v9 = vld [vmem:[%s8437_s8 + $0x40] sm:$0xff] }
 0x5e2   : > { %2704 = vrot.lane.b32.xlu0 %v8457_v1, %s8529_s13 }
 0x5e3   : > { %3188 = vmatpush1.bf16.msra.mxu0 %v2214_v11  ;;  %v2275_v16 = vpop.permute.xlu1 %2274 }
 0x5e4   : > { %v2277_v62 = vpop.permute.xlu0 %2276  ;;  %3189 = vmatprep.subr.bf16.mxu0 %v2217_v15 }
 0x5e5   : > { %2700 = vrot.lane.b32.xlu1 %v2670_v8, %s8529_s13  ;;  %v2297_v33 = vsel %vm8535_vm10, %v2275_v16, %v2277_v62  ;;  %vm8541_vm10 = vmmov %vm8537_vm0 }
 0x5e6   : > { %2708 = vrot.lane.b32.xlu0 %v2674_v13, %s8529_s13 }
 0x5e7   : > { %3190 = vmatpush1.bf16.msra.mxu0 %v2216_v18  ;;  %v5768_v17 = vpop.permute.xlu1 %5767 }
 0x5e8   : > { %v2281_v24 = vpop.permute.xlu0 %2280  ;;  %3191 = vmatprep.subr.bf16.mxu0 %v2219_v23  ;;  %v5769_v27 = vunpack.i.l.bf16 %v5768_v17  ;;  %v5770_v38 = vunpack.i.h.bf16 %v5768_v17  ;;  %v2867_v17 = vld [vmem:[%s8437_s8 + $0x58] sm:$0xff] }
 0x5e9   : > { %2710 = vrot.lane.b32.xlu1 %v8457_v1, %s8529_s13 }
 0x5ea   : > { %2706 = vrot.lane.b32.xlu0 %v2673_v26, %s8529_s13  ;;  %v2296_v40 = vsel %vm8536_vm12, %v5769_v27, %v2275_v16  ;;  %v2298_v51 = vsel %vm8538_vm2, %v5770_v38, %v2281_v24  ;;  %vm8542_vm12 = vmmov %vm8537_vm0  ;;  %v2865_v16 = vld [vmem:[%s8437_s8 + $0x48] sm:$0xff]  ;;  %v2868_v27 = vld [vmem:[%s8437_s8 + $0x60] sm:$0xff] }
 0x5eb   : > { %3192 = vmatpush1.bf16.msra.mxu0 %v2218_v28  ;;  %v2283_v31 = vpop.permute.xlu1 %2282 }
 0x5ec   : > { %v2287_v37 = vpop.permute.xlu0 %2286  ;;  %3193 = vmatprep.subr.bf16.mxu0 %v2297_v33  ;;  %v2299_v44 = vsel %vm8537_vm0, %v2281_v24, %v2283_v31  ;;  %vm8543_vm0 = vcmask 7168  }
 0x5ed   : > { %2874 = vperm.xlu1 %5709, %v2856_v30   ;;  %vm8544_vm2 = vmmov %vm8543_vm0  ;;  %v2869_v30 = vld [vmem:[%s8437_s8 + $0x68] sm:$0xff] }
 0x5ee   : > { %2879 = vperm.xlu0 %5710, %v2857_v34  }
 0x5ef   : > { %v2289_v43 = vpop.permute.xlu1 %2288  ;;  %3194 = vmatpush1.bf16.msra.mxu0 %v2296_v40 }
 0x5f0   : > { %v5773_v48 = vpop.permute.xlu0 %5772  ;;  %3195 = vmatprep.subr.bf16.mxu0 %v2299_v44  ;;  %v2301_v57 = vsel %vm8539_vm1, %v2287_v37, %v2289_v43  ;;  %vm8545_vm1 = vmmov %vm8543_vm0  ;;  %v2871_v43 = vld [vmem:[%s8437_s8 + $0x78] sm:$0xff] }
 0x5f1   : > { %2884 = vperm.xlu1 %5709, %v2858_v42   ;;  %v5774_v50 = vunpack.i.l.bf16 %v5773_v48  ;;  %v5775_v63 = vunpack.i.h.bf16 %v5773_v48 }
 0x5f2   : > { %2889 = vperm.xlu0 %5710, %v2859_v46  }
 0x5f3   : > { %v2293_v55 = vpop.permute.xlu1 %2292  ;;  %3196 = vmatpush1.bf16.msra.mxu0 %v2298_v51  ;;  %v2300_v0 = vsel %vm8540_vm6, %v5774_v50, %v2287_v37  ;;  %vm8546_vm6 = vmmov %vm8543_vm0  ;;  %v2870_v37 = vld [vmem:[%s8437_s8 + $0x70] sm:$0xff] }
 0x5f4   : > { %v2361_v60 = vpop.permute.xlu0 %2360  ;;  %3197 = vmatprep.subr.bf16.mxu0 %v2301_v57  ;;  %v2302_v7 = vsel %vm8542_vm12, %v5775_v63, %v2293_v55  ;;  %vm8548_vm12 = vmmov %vm8543_vm0  ;;  %v6003_v51 = vld [vmem:[%s8436_s7] ss:$20 sps:$4 sm:$0xff]   ;;  %v6008_v63 = vld [vmem:[%s8436_s7 + $0x28] ss:$20 sps:$4 sm:$0xff]  }
 0x5f5   : > { %2894 = vperm.xlu1 %5709, %v2860_v53  }
 0x5f6   : > { %2899 = vperm.xlu0 %5710, %v2861_v58  }
 0x5f7   : > { %v2359_v3 = vpop.permute.xlu1 %2358  ;;  %3198 = vmatpush1.bf16.msra.mxu0 %v2300_v0 }
 0x5f8   : > { %v2295_v5 = vpop.permute.xlu0 %2294  ;;  %v2381_v11 = vsel %vm8543_vm0, %v2359_v3, %v2361_v60 }
 0x5f9   : > { %2904 = vperm.xlu1 %5709, %v2862_v2   ;;  %v2303_v6 = vsel %vm8541_vm10, %v2293_v55, %v2295_v5  ;;  %vm8547_vm10 = vmmov %vm8543_vm0  ;;  %v6006_v55 = vld [vmem:[%s8436_s7 + $0x2c] ss:$20 sps:$4 sm:$0xff]  }
 0x5fa   : > { %2909 = vperm.xlu0 %5710, %v2863_v4   ;;  %3199 = vmatprep.subr.bf16.mxu0 %v2303_v6  ;;  %v6012_v6 = vld [vmem:[%s8436_s7 + $0x7c] ss:$20 sps:$4 sm:$0xff]  }
 0x5fb   : > { %v5778_v10 = vpop.permute.xlu1 %5777  ;;  %3200 = vmatpush1.bf16.msra.mxu0 %v2302_v7 }
 0x5fc   : > { %v5779_v15 = vunpack.i.l.bf16 %v5778_v10  ;;  %v2365_v62 = vpop.permute.xlu0 %2364  ;;  %3201 = vmatprep.subr.bf16.mxu0 %v2381_v11  ;;  %v5780_v8 = vunpack.i.h.bf16 %v5778_v10 }
 0x5fd   : > { %2914 = vperm.xlu1 %5709, %v2864_v9  }
 0x5fe   : > { %2919 = vperm.xlu0 %5710, %v2865_v16   ;;  %v2380_v13 = vsel %vm8544_vm2, %v5779_v15, %v2359_v3  ;;  %v2382_v26 = vsel %vm8546_vm6, %v5780_v8, %v2365_v62  ;;  %vm8549_vm2 = vmmov %vm8543_vm0  ;;  %v6014_v16 = vld [vmem:[%s8436_s7 + $0x78] ss:$20 sps:$4 sm:$0xff]  }
 0x5ff   : > { %v2367_v18 = vpop.permute.xlu1 %2366  ;;  %3202 = vmatpush1.bf16.msra.mxu0 %v2380_v13  ;;  %v6015_v8 = vld [vmem:[%s8436_s7 + $0xa4] ss:$20 sps:$4 sm:$0xff]  }
 0x600   : > { %v2371_v23 = vpop.permute.xlu0 %2370  ;;  %v2383_v24 = vsel %vm8545_vm1, %v2365_v62, %v2367_v18  ;;  %vm8550_vm1 = vcmask 1039360  }
 0x601   : > { %2924 = vperm.xlu1 %5709, %v2866_v59   ;;  %3203 = vmatprep.subr.bf16.mxu0 %v2383_v24  ;;  %vm8551_vm6 = vmmov %vm8550_vm1 }
 0x602   : > { %2929 = vperm.xlu0 %5710, %v2867_v17  }
 0x603   : > { %v2373_v28 = vpop.permute.xlu1 %2372  ;;  %3204 = vmatpush1.bf16.msra.mxu0 %v2382_v26 }
 0x604   : > { %v5783_v31 = vpop.permute.xlu0 %5782  ;;  %v2385_v33 = vsel %vm8547_vm10, %v2371_v23, %v2373_v28  ;;  %vm8552_vm10 = vmmov %vm8550_vm1  ;;  %v6017_v28 = vld [vmem:[%s8436_s7 + $0xa0] ss:$20 sps:$4 sm:$0xff]  }
 0x605   : > { %v5784_v34 = vunpack.i.l.bf16 %v5783_v31  ;;  %2934 = vperm.xlu1 %5709, %v2868_v27   ;;  %3205 = vmatprep.subr.bf16.mxu0 %v2385_v33  ;;  %v5785_v38 = vunpack.i.h.bf16 %v5783_v31 }
 0x606   : > { %2939 = vperm.xlu0 %5710, %v2869_v30  }
 0x607   : > { %v2377_v40 = vpop.permute.xlu1 %2376  ;;  %v2384_v42 = vsel %vm8548_vm12, %v5784_v34, %v2371_v23  ;;  %vm8553_vm12 = vmmov %vm8550_vm1  ;;  %v6018_v34 = vld [vmem:[%s8436_s7 + $0xcc] ss:$20 sps:$4 sm:$0xff]  }
 0x608   : > { %v2379_v44 = vpop.permute.xlu0 %2378  ;;  %3206 = vmatpush1.bf16.msra.mxu0 %v2384_v42  ;;  %v2386_v50 = vsel %vm8549_vm2, %v5785_v38, %v2377_v40 }
 0x609   : > { %2944 = vperm.xlu1 %5709, %v2870_v37   ;;  %v2387_v46 = vsel %vm8543_vm0, %v2377_v40, %v2379_v44  ;;  %vm8554_vm0 = vmmov %vm8550_vm1 }
 0x60a   : > { %2949 = vperm.xlu0 %5710, %v2871_v43   ;;  %3207 = vmatprep.subr.bf16.mxu0 %v2387_v46  ;;  %vm8555_vm2 = vmmov %vm8554_vm0 }
 0x60b   : > { %v2451_v48 = vpop.permute.xlu1 %2450 }
 0x60c   : > { %v5788_v53 = vpop.permute.xlu0 %5787  ;;  %3208 = vmatpush1.bf16.msra.mxu0 %v2386_v50 }
 0x60d   : > { %3290 = vmatprep.subr.bf16.mxu0 %v6790_v45  ;;  %v6009_v45 = vld [vmem:[%s8436_s7 + $0x54] ss:$20 sps:$4 sm:$0xff]   ;;  %v5790_v4 = vunpack.i.h.bf16 %v5788_v53  ;;  %5817 = vrot.lane.b32.xlu1 %v8457_v1, %s6081_s27 }
 0x60e   : > { %5822 = vrot.lane.b32.xlu0 %v8457_v1, %s6081_s27 }
 0x60f   : > { %v2449_v57 = vpop.permute.xlu1 %2448  ;;  %3210 = vmatmul.mubr.bf16.vlgmr.msra.gmra.mrb[20].mxu0 %v6003_v51 }
 0x610   : > { %v2457_v58 = vpop.permute.xlu0 %2456  ;;  %3291 = vmatpush1.bf16.msra.mxu0 %v6788_v39  ;;  %3219 = vmatprep.mubr.bf16.mxu0 %v6006_v55  ;;  %v5789_v39 = vunpack.i.l.bf16 %v5788_v53  ;;  %v6021_v53 = vld [vmem:[%s8436_s7 + $0xf4] ss:$20 sps:$4 sm:$0xff]  }
 0x611   : > { %3292 = vmatprep.subr.bf16.mxu0 %v6808_v20  ;;  %v2475_v10 = vsel %vm8552_vm10, %v2457_v58, %v5790_v4  ;;  %vm8558_vm10 = vcmask 924672   ;;  %v6024_v4 = vld [vmem:[%s8436_s7 + $0x11c] ss:$20 sps:$4 sm:$0xff]   ;;  %5827 = vrot.lane.b32.xlu1 %v8457_v1, %s6081_s27 }
 0x612   : > { %5832 = vrot.lane.b32.xlu0 %v8457_v1, %s6081_s27 }
 0x613   : > { %v2455_v60 = vpop.permute.xlu1 %2454 }
 0x614   : > { %v2463_v0 = vpop.permute.xlu0 %2462  ;;  %3293 = vmatpush1.bf16.msra.mxu0 %v6806_v12  ;;  %v6011_v12 = vld [vmem:[%s8436_s7 + $0x50] ss:$20 sps:$4 sm:$0xff]  }
 0x615   : > { %3294 = vmatprep.subr.bf16.mxu0 %v6825_v61  ;;  %v2473_v61 = vsel %vm8550_vm1, %v2451_v48, %v5789_v39  ;;  %vm8556_vm1 = vmmov %vm8554_vm0  ;;  %v6023_v39 = vld [vmem:[%s8436_s7 + $0xf0] ss:$20 sps:$4 sm:$0xff]   ;;  %5837 = vrot.lane.b32.xlu1 %v8457_v1, %s6080_s26 }
 0x616   : > { %5842 = vrot.lane.b32.xlu0 %v8457_v1, %s6080_s26 }
 0x617   : > { %v5793_v2 = vpop.permute.xlu1 %5792  ;;  %3220 = vmatmul.mubr.bf16.gmra.mrb[24].mxu0 %v6008_v63 }
 0x618   : > { %v2461_v3 = vpop.permute.xlu0 %2460  ;;  %3295 = vmatpush1.bf16.msra.mxu0 %v6823_v54  ;;  %3229 = vmatprep.mubr.bf16.mxu0 %v6009_v45  ;;  %v2472_v54 = vsel %vm8551_vm6, %v2449_v57, %v2451_v48  ;;  %v5795_v13 = vunpack.i.h.bf16 %v5793_v2  ;;  %vm8557_vm6 = vmmov %vm8554_vm0  ;;  %v6020_v48 = vld [vmem:[%s8436_s7 + $0xc8] ss:$20 sps:$4 sm:$0xff]  }
 0x619   : > { %3296 = vmatprep.subr.bf16.mxu0 %v6839_v19  ;;  %v5794_v19 = vunpack.i.l.bf16 %v5793_v2  ;;  %v2476_v59 = vsel %vm8555_vm2, %v2461_v3, %v2463_v0  ;;  %5847 = vrot.lane.b32.xlu1 %v8457_v1, %s6080_s26 }
 0x61a   : > { %5852 = vrot.lane.b32.xlu0 %v8457_v1, %s6080_s26 }
 0x61b   : > { %v2535_v20 = vpop.permute.xlu1 %2534  ;;  %v2477_v62 = vsel %vm8554_vm0, %v2463_v0, %v5794_v19  ;;  %vm8560_vm0 = vmmov %vm8558_vm10 }
 0x61c   : > { %v2467_v5 = vpop.permute.xlu0 %2466  ;;  %3297 = vmatpush1.bf16.msra.mxu0 %v6837_v14  ;;  %v2474_v14 = vsel %vm8553_vm12, %v2455_v60, %v2457_v58  ;;  %vm8559_vm12 = vmmov %vm8558_vm10 }
 0x61d   : > { %3298 = vmatprep.subr.bf16.mxu0 %v2473_v61  ;;  %vm8561_vm2 = vmmov %vm8560_vm0  ;;  %5862 = vrot.lane.b32.xlu1 %v8457_v1, %s6079_s25 }
 0x61e   : > { %5857 = vrot.lane.b32.xlu0 %v8457_v1, %s6079_s25 }
 0x61f   : > { %v2533_v7 = vpop.permute.xlu1 %2532  ;;  %3230 = vmatmul.mubr.bf16.gmra.mrb[28].mxu0 %v6011_v12 }
 0x620   : > { %v5798_v9 = vpop.permute.xlu0 %5797  ;;  %3299 = vmatpush1.bf16.msra.mxu0 %v2472_v54  ;;  %3239 = vmatprep.mubr.bf16.mxu0 %v6012_v6  ;;  %v2556_v37 = vsel %vm8559_vm12, %v2533_v7, %v2535_v20  ;;  %vm8565_vm12 = vmmov %vm8560_vm0 }
 0x621   : > { %3300 = vmatprep.subr.bf16.mxu0 %v2475_v10  ;;  %v5799_v17 = vunpack.i.l.bf16 %v5798_v9  ;;  %v5800_v30 = vunpack.i.h.bf16 %v5798_v9  ;;  %v6026_v9 = vld [vmem:[%s8436_s7 + $0x118] ss:$20 sps:$4 sm:$0xff]   ;;  %5872 = vrot.lane.b32.xlu1 %v8457_v1, %s6079_s25 }
 0x622   : > { %5867 = vrot.lane.b32.xlu0 %v8457_v1, %s6079_s25 }
 0x623   : > { %v2469_v11 = vpop.permute.xlu1 %2468  ;;  %v2557_v33 = vsel %vm8558_vm10, %v2535_v20, %v5799_v17  ;;  %vm8564_vm10 = vmmov %vm8560_vm0 }
 0x624   : > { %v2541_v15 = vpop.permute.xlu0 %2540  ;;  %3301 = vmatpush1.bf16.msra.mxu0 %v2474_v14  ;;  %v2479_v24 = vsel %vm8556_vm1, %v2469_v11, %v5795_v13  ;;  %v2478_v27 = vsel %vm8557_vm6, %v2467_v5, %v2469_v11  ;;  %vm8562_vm1 = vmmov %vm8560_vm0  ;;  %v6029_v11 = vld [vmem:[%s8436_s7 + $0xc] ss:$20 sps:$4 sm:$0xff]  }
 0x625   : > { %3302 = vmatprep.subr.bf16.mxu0 %v2477_v62  ;;  %v2559_v43 = vsel %vm8560_vm0, %v2541_v15, %v5800_v30  ;;  %vm8563_vm6 = vmmov %vm8560_vm0  ;;  %vm8566_vm0 = vcmask 916480   ;;  %5882 = vrot.lane.b32.xlu1 %v8457_v1, %s6078_s24 }
 0x626   : > { %5877 = vrot.lane.b32.xlu0 %v8457_v1, %s6078_s24 }
 0x627   : > { %v2539_v18 = vpop.permute.xlu1 %2538  ;;  %3240 = vmatmul.mubr.bf16.gmra.mrb[32].mxu0 %v6014_v16 }
 0x628   : > { %v2547_v23 = vpop.permute.xlu0 %2546  ;;  %3303 = vmatpush1.bf16.msra.mxu0 %v2476_v59  ;;  %3249 = vmatprep.mubr.bf16.mxu0 %v6015_v8  ;;  %v2558_v44 = vsel %vm8561_vm2, %v2539_v18, %v2541_v15  ;;  %vm8567_vm2 = vmmov %vm8566_vm0  ;;  %v6027_v18 = vld [vmem:[%s8436_s7 + $0x8] ss:$20 sps:$4 sm:$0xff]  }
 0x629   : > { %3304 = vmatprep.subr.bf16.mxu0 %v2479_v24 }
 0x62b   : > { %v5803_v26 = vpop.permute.xlu1 %5802 }
 0x62c   : > { %v2545_v31 = vpop.permute.xlu0 %2544  ;;  %3305 = vmatpush1.bf16.msra.mxu0 %v2478_v27  ;;  %v5804_v40 = vunpack.i.l.bf16 %v5803_v26  ;;  %v5805_v55 = vunpack.i.h.bf16 %v5803_v26  ;;  %v6030_v26 = vld [vmem:[%s8436_s7 + $0x34] ss:$20 sps:$4 sm:$0xff]  }
 0x62d   : > { %3306 = vmatprep.subr.bf16.mxu0 %v2557_v33  ;;  %v2560_v57 = vsel %vm8563_vm6, %v2545_v31, %v2547_v23  ;;  %vm8569_vm6 = vmmov %vm8566_vm0 }
 0x62e   : > { %v2561_v51 = vsel %vm8562_vm1, %v2547_v23, %v5804_v40  ;;  %vm8568_vm1 = vmmov %vm8566_vm0 }
 0x62f   : > { %v2607_v38 = vpop.permute.xlu1 %2606  ;;  %3250 = vmatmul.mubr.bf16.gmra.mrb[36].mxu0 %v6017_v28 }
 0x630   : > { %v2551_v42 = vpop.permute.xlu0 %2550  ;;  %3307 = vmatpush1.bf16.msra.mxu0 %v2556_v37  ;;  %3259 = vmatprep.mubr.bf16.mxu0 %v6018_v34 }
 0x631   : > { %3308 = vmatprep.subr.bf16.mxu0 %v2559_v43 }
 0x633   : > { %v2553_v46 = vpop.permute.xlu1 %2552 }
 0x634   : > { %v5808_v50 = vpop.permute.xlu0 %5807  ;;  %3309 = vmatpush1.bf16.msra.mxu0 %v2558_v44  ;;  %v2563_v0 = vsel %vm8564_vm10, %v2553_v46, %v5805_v55  ;;  %v2562_v2 = vsel %vm8565_vm12, %v2551_v42, %v2553_v46  ;;  %vm8570_vm10 = vmmov %vm8566_vm0  ;;  %v6033_v42 = vld [vmem:[%s8436_s7 + $0x5c] ss:$20 sps:$4 sm:$0xff]  }
 0x635   : > { %3310 = vmatprep.subr.bf16.mxu0 %v2561_v51  ;;  %v5809_v60 = vunpack.i.l.bf16 %v5808_v50  ;;  %v5810_v3 = vunpack.i.h.bf16 %v5808_v50  ;;  %vm8571_vm12 = vmmov %vm8566_vm0  ;;  %v6035_v51 = vld [vmem:[%s8436_s7 + $0x58] ss:$20 sps:$4 sm:$0xff]  }
 0x637   : > { %v2605_v58 = vpop.permute.xlu1 %2604  ;;  %3260 = vmatmul.mubr.bf16.gmra.mrb[40].mxu0 %v6020_v48  ;;  %v2629_v12 = vsel %vm8566_vm0, %v2607_v38, %v5809_v60  ;;  %v6038_v60 = vld [vmem:[%s8436_s7 + $0x80] ss:$20 sps:$4 sm:$0xff]  }
 0x638   : > { %v2613_v63 = vpop.permute.xlu0 %2612  ;;  %3311 = vmatpush1.bf16.msra.mxu0 %v2560_v57  ;;  %3269 = vmatprep.mubr.bf16.mxu0 %v6021_v53  ;;  %v2628_v5 = vsel %vm8567_vm2, %v2605_v58, %v2607_v38  ;;  %vm8572_vm2 = vmmov %vm8566_vm0  ;;  %v6032_v38 = vld [vmem:[%s8436_s7 + $0x30] ss:$20 sps:$4 sm:$0xff]  }
 0x639   : > { %3312 = vmatprep.subr.bf16.mxu0 %v2563_v0  ;;  %v2631_v54 = vsel %vm8568_vm1, %v2613_v63, %v5810_v3  ;;  %vm8573_vm1 = vcmask 908288   ;;  %v6036_v57 = vld [vmem:[%s8436_s7 + $0x84] ss:$20 sps:$4 sm:$0xff]   ;;  %v6041_v0 = vld [vmem:[%s8436_s7 + $0xa8] ss:$20 sps:$4 sm:$0xff]  }
 0x63a   : > { %v6047_v3 = vld [vmem:[%s8436_s7 + $0xf8] ss:$20 sps:$4 sm:$0xff]  }
 0x63b   : > { %v2611_v45 = vpop.permute.xlu1 %2610 }
 0x63c   : > { %v2619_v20 = vpop.permute.xlu0 %2618  ;;  %3313 = vmatpush1.bf16.msra.mxu0 %v2562_v2  ;;  %v2630_v7 = vsel %vm8569_vm6, %v2611_v45, %v2613_v63  ;;  %vm8574_vm6 = vmmov %vm8573_vm1  ;;  %v6039_v63 = vld [vmem:[%s8436_s7 + $0xac] ss:$20 sps:$4 sm:$0xff]   ;;  %v6042_v45 = vld [vmem:[%s8436_s7 + $0xd4] ss:$20 sps:$4 sm:$0xff]  }
 0x63d   : > { %3314 = vmatprep.subr.bf16.mxu0 %v2629_v12  ;;  %v6044_v2 = vld [vmem:[%s8436_s7 + $0xd0] ss:$20 sps:$4 sm:$0xff]   ;;  %v6050_v12 = vld [vmem:[%s8436_s7 + $0x120] ss:$20 sps:$4 sm:$0xff]  }
 0x63f   : > { %v2621_v61 = vpop.permute.xlu1 %2620  ;;  %3270 = vmatmul.mubr.bf16.gmra.mrb[44].mxu0 %v6023_v39  ;;  %v6045_v39 = vld [vmem:[%s8436_s7 + $0xfc] ss:$20 sps:$4 sm:$0xff]  }
 0x640   : > { %v2617_v6 = vpop.permute.xlu0 %2616  ;;  %3315 = vmatpush1.bf16.msra.mxu0 %v2628_v5  ;;  %3279 = vmatprep.mubr.bf16.mxu0 %v6024_v4  ;;  %v2633_v14 = vsel %vm8570_vm10, %v2619_v20, %v2621_v61  ;;  %vm8575_vm10 = vmmov %vm8573_vm1  ;;  %v6051_v4 = vld [vmem:[%s8436_s7 + $0x10] ss:$20 sps:$4 sm:$0xff]   ;;  %v6052_v5 = vld [vmem:[%s8436_s7 + $0x38] ss:$20 sps:$4 sm:$0xff]  }
 0x641   : > { %3316 = vmatprep.subr.bf16.mxu0 %v2631_v54  ;;  %v2632_v16 = vsel %vm8571_vm12, %v2617_v6, %v2619_v20  ;;  %vm8576_vm12 = vmmov %vm8573_vm1  ;;  %v6048_v20 = vld [vmem:[%s8436_s7 + $0x124] ss:$20 sps:$4 sm:$0xff]   ;;  %v6053_v61 = vld [vmem:[%s8436_s7 + $0x60] ss:$20 sps:$4 sm:$0xff]  }
 0x642   : > { %v6054_v6 = vld [vmem:[%s8436_s7 + $0x88] ss:$20 sps:$4 sm:$0xff]   ;;  %v6055_v54 = vld [vmem:[%s8436_s7 + $0xb0] ss:$20 sps:$4 sm:$0xff]  }
 0x643   : > { %v2625_v19 = vpop.permute.xlu1 %2624 }
 0x644   : > { %v2627_v10 = vpop.permute.xlu0 %2626  ;;  %3317 = vmatpush1.bf16.msra.mxu0 %v2630_v7  ;;  %v6056_v7 = vld [vmem:[%s8436_s7 + $0xd8] ss:$20 sps:$4 sm:$0xff]  }
 0x645   : > { %3318 = vmatprep.subr.bf16.mxu0 %v2633_v14  ;;  %v2635_v8 = vsel %vm8566_vm0, %v2625_v19, %v2627_v10  ;;  %vm8577_vm0 = vmmov %vm8573_vm1 }
 0x647   : > { %v2623_v15 = vpop.permute.xlu1 %2622  ;;  %3280 = vmatmul.mubr.bf16.gmra.mrb[48].mxu0 %v6026_v9  ;;  %v6058_v9 = vld [vmem:[%s8436_s7 + $0x128] ss:$20 sps:$4 sm:$0xff]  }
 0x648   : > { %v2691_v62 = vpop.permute.xlu0 %2690  ;;  %3319 = vmatpush1.bf16.msra.mxu0 %v2632_v16  ;;  %3322 = vmatprep.mubr.bf16.mxu0 %v6029_v11  ;;  %v2634_v13 = vsel %vm8572_vm2, %v2623_v15, %v2625_v19  ;;  %vm8578_vm2 = vmmov %vm8577_vm0  ;;  %v6057_v19 = vld [vmem:[%s8436_s7 + $0x100] ss:$20 sps:$4 sm:$0xff]  }
 0x649   : > { %3320 = vmatprep.subr.bf16.mxu0 %v2635_v8 }
 0x64b   : > { %v5813_v59 = vpop.permute.xlu1 %5812 }
 0x64c   : > { %v5815_v17 = vunpack.i.h.bf16 %v5813_v59  ;;  %v5814_v23 = vunpack.i.l.bf16 %v5813_v59  ;;  %v2689_v24 = vpop.permute.xlu0 %2688  ;;  %3321 = vmatpush1.bf16.msra.mxu0 %v2634_v13 }
 0x64d   : > { %v2712_v28 = vsel %vm8574_vm6, %v2689_v24, %v2691_v62  ;;  %vm8580_vm6 = vmmov %vm8577_vm0 }
 0x64e   : > { %v2713_v27 = vsel %vm8573_vm1, %v2691_v62, %v5814_v23  ;;  %vm8579_vm1 = vmmov %vm8577_vm0 }
 0x64f   : > { %v2697_v30 = vpop.permute.xlu1 %2696  ;;  %3323 = vmatmul.mubr.bf16.vlgmr.msra.gmra.mrb[20].mxu0 %v6027_v18  ;;  %3403 = vmatprep.subr.bf16.mxu0 %v2713_v27 }
 0x650   : > { %v2695_v31 = vpop.permute.xlu0 %2694  ;;  %3404 = vmatpush1.bf16.msra.mxu0 %v2712_v28  ;;  %v2715_v33 = vsel %vm8575_vm10, %v2697_v30, %v5815_v17  ;;  %3332 = vmatprep.mubr.bf16.mxu0 %v6030_v26  ;;  %vm3152_vm10 = vcmask 523264  }
 0x651   : > { %3405 = vmatprep.subr.bf16.mxu0 %v2715_v33  ;;  %v2714_v34 = vsel %vm8576_vm12, %v2695_v31, %v2697_v30 }
 0x653   : > { %v2703_v37 = vpop.permute.xlu1 %2702 }
 0x654   : > { %v2705_v40 = vpop.permute.xlu0 %2704  ;;  %3406 = vmatpush1.bf16.msra.mxu0 %v2714_v34 }
 0x655   : > { %v2717_v43 = vsel %vm8577_vm0, %v2703_v37, %v2705_v40 }
 0x656   : > { %3407 = vmatprep.subr.bf16.mxu0 %v2717_v43 }
 0x657   : > { %v2701_v44 = vpop.permute.xlu1 %2700  ;;  %3333 = vmatmul.mubr.bf16.gmra.mrb[24].mxu0 %v6032_v38 }
 0x658   : > { %v2716_v46 = vsel %vm8578_vm2, %v2701_v44, %v2703_v37  ;;  %v2709_v48 = vpop.permute.xlu0 %2708  ;;  %3342 = vmatprep.mubr.bf16.mxu0 %v6033_v42 }
 0x659   : > { %3408 = vmatpush1.bf16.msra.mxu0 %v2716_v46 }
 0x65b   : > { %v2711_v50 = vpop.permute.xlu1 %2710 }
 0x65c   : > { %v2707_v53 = vpop.permute.xlu0 %2706  ;;  %v2719_v55 = vsel %vm8579_vm1, %v2709_v48, %v2711_v50 }
 0x65d   : > { %v2718_v58 = vsel %vm8580_vm6, %v2707_v53, %v2709_v48  ;;  %3409 = vmatprep.subr.bf16.mxu0 %v2719_v55 }
 0x65e   : > { %3410 = vmatpush1.bf16.msra.mxu0 %v2718_v58 }
 0x65f   : > { %3343 = vmatmul.mubr.bf16.gmra.mrb[28].mxu0 %v6035_v51 }
 0x660   : > { %3352 = vmatprep.mubr.bf16.mxu0 %v6036_v57 }
 0x667   : > { %3353 = vmatmul.mubr.bf16.gmra.mrb[32].mxu0 %v6038_v60 }
 0x668   : > { %3362 = vmatprep.mubr.bf16.mxu0 %v6039_v63 }
 0x66c   : > { %v2875_v10 = vpop.permute.xlu1 %2874 }
 0x66d   : > { %v2880_v15 = vpop.permute.xlu0 %2879 }
 0x66f   : > { %3363 = vmatmul.mubr.bf16.gmra.mrb[36].mxu0 %v6041_v0 }
 0x670   : > { %3372 = vmatprep.mubr.bf16.mxu0 %v6042_v45  ;;  %v2885_v30 = vpop.permute.xlu1 %2884 }
 0x671   : > { %v2890_v43 = vpop.permute.xlu0 %2889 }
 0x677   : > { %3373 = vmatmul.mubr.bf16.gmra.mrb[40].mxu0 %v6044_v2 }
 0x678   : > { %3382 = vmatprep.mubr.bf16.mxu0 %v6045_v39 }
 0x67f   : > { %3383 = vmatmul.mubr.bf16.gmra.mrb[44].mxu0 %v6047_v3  ;;  %v2895_v3 = vpop.permute.xlu1 %2894 }
 0x680   : > { %3392 = vmatprep.mubr.bf16.mxu0 %v6048_v20 }
 0x687   : > { %3393 = vmatmul.mubr.bf16.gmra.mrb[48].mxu0 %v6050_v12 }
 0x688   : > { %3435 = vmatprep.mubr.bf16.mxu0 %v8457_v1 }
 0x68f   : > { %5484 = vmatmul.mubr.msk.bf16.vlgmr.msra.gmra.mrb[20].mxu0 %vm3152_vm10, %v6051_v4 }
 0x690   : > { %3445 = vmatprep.mubr.bf16.mxu0 %v8457_v1 }
 0x697   : > { %5485 = vmatmul.mubr.msk.bf16.gmra.mrb[24].mxu0 %vm3152_vm10, %v6052_v5 }
 0x698   : > { %3455 = vmatprep.mubr.bf16.mxu0 %v8457_v1 }
 0x69f   : > { %5486 = vmatmul.mubr.msk.bf16.gmra.mrb[28].mxu0 %vm3152_vm10, %v6053_v61 }
 0x6a0   : > { %3465 = vmatprep.mubr.bf16.mxu0 %v8457_v1 }
 0x6a7   : > { %5487 = vmatmul.mubr.msk.bf16.gmra.mrb[32].mxu0 %vm3152_vm10, %v6054_v6 }
 0x6a8   : > { %3475 = vmatprep.mubr.bf16.mxu0 %v8457_v1 }
 0x6af   : > { %5488 = vmatmul.mubr.msk.bf16.gmra.mrb[36].mxu0 %vm3152_vm10, %v6055_v54 }
 0x6b0   : > { %3485 = vmatprep.mubr.bf16.mxu0 %v8457_v1 }
 0x6b7   : > { %5489 = vmatmul.mubr.msk.bf16.gmra.mrb[40].mxu0 %vm3152_vm10, %v6056_v7  ;;  %v2900_v7 = vpop.permute.xlu0 %2899 }
 0x6b8   : > { %3495 = vmatprep.mubr.bf16.mxu0 %v8457_v1 }
 0x6bf   : > { %5490 = vmatmul.mubr.msk.bf16.gmra.mrb[44].mxu0 %vm3152_vm10, %v6057_v19 }
 0x6c0   : > { %3505 = vmatprep.mubr.bf16.mxu0 %v8457_v1 }
 0x6c7   : > { %5491 = vmatmul.mubr.msk.bf16.gmra.mrb[48].mxu0 %vm3152_vm10, %v6058_v9 }
 0x762   : > { %v3437_v14 = vpop.f32.mrb[20].mxu0 }
 0x763   : > { %v5545_v11 = vadd.f32 %v3437_v14, %v2875_v10  ;;  %v3439_v16 = vpop.f32.mrb[21].mxu0 }
 0x764   : > { %v5546_v62 = vadd.f32 %v3439_v16, %v2875_v10  ;;  %v3441_v8 = vpop.f32.mrb[22].mxu0 }
 0x765   : > { %v3548_v13 = vmul.f32 0.2, %v5545_v11  ;;  %v5547_v59 = vadd.f32 %v3441_v8, %v2880_v15  ;;  %v3443_v18 = vpop.f32.mrb[23].mxu0  ;;  %vm3516_vm12 = vcmp.ge.f32.partialorder %v5545_v11, 0.0 }
 0x766   : > { %v3549_v17 = vmul.f32 0.2, %v5546_v62  ;;  %v5548_v23 = vadd.f32 %v3443_v18, %v2880_v15  ;;  %vm3517_vm0 = vcmp.ge.f32.partialorder %v5546_v62, 0.0 }
 0x767   : > { %vm3518_vm2 = vcmp.ge.f32.partialorder %v5547_v59, 0.0  ;;  %v3550_v24 = vmul.f32 0.2, %v5547_v59  ;;  %v3580_v27 = vsel %vm3516_vm12, %v5545_v11, %v3548_v13 }
 0x768   : > { %vm3519_vm1 = vcmp.ge.f32.partialorder %v5548_v23, 0.0  ;;  %v3551_v26 = vmul.f32 0.2, %v5548_v23  ;;  %v3581_v31 = vsel %vm3517_vm0, %v5546_v62, %v3549_v17 }
 0x769   : > { %v3582_v28 = vsel %vm3518_vm2, %v5547_v59, %v3550_v24 }
 0x76a   : > { %v7349_v33 = vpack.c.bf16 %v3582_v28, %v3580_v27  ;;  %v3583_v34 = vsel %vm3519_vm1, %v5548_v23, %v3551_v26  ;;  %v3447_v37 = vpop.f32.mrb[24].mxu0  ;;  %v2905_v26 = vpop.permute.xlu1 %2904 }
 0x76b   : > { %v7351_v38 = vpack.c.bf16 %v3583_v34, %v3581_v31  ;;  %v5549_v40 = vadd.f32 %v3447_v37, %v2885_v30  ;;  %v3449_v42 = vpop.f32.mrb[25].mxu0 }
 0x76c   : > { %v5550_v44 = vadd.f32 %v3449_v42, %v2885_v30  ;;  %v3451_v46 = vpop.f32.mrb[26].mxu0  ;;  %v3981_v48 = vsel %vm595_vm13, %v7349_v33, 0  ;;  %v4149_v0 = vsel %vm647_vm15, %v7349_v33, 0  ;;  %v4332_v10 = vsel %vm701_vm14, %v7349_v33, 0  ;;  %v2910_v42 = vpop.permute.xlu0 %2909 }
 0x76d   : > { %v3552_v50 = vmul.f32 0.2, %v5549_v40  ;;  %v5551_v51 = vadd.f32 %v3451_v46, %v2890_v43  ;;  %v3453_v53 = vpop.f32.mrb[27].mxu0  ;;  %4030 = vrot.lane.b32.xlu1 %v3981_v48, %s6081_s27  ;;  %v3982_v55 = vsel %vm596_vm9, %v7351_v38, 0  ;;  %vm3520_vm6 = vcmp.ge.f32.partialorder %v5549_v40, 0.0 }
 0x76e   : > { %v3553_v57 = vmul.f32 0.2, %v5550_v44  ;;  %v5552_v58 = vadd.f32 %v3453_v53, %v2890_v43  ;;  %4032 = vrot.lane.b32.xlu0 %v3982_v55, %s6081_s27  ;;  %vm3521_vm10 = vcmp.ge.f32.partialorder %v5550_v44, 0.0  ;;  %v4150_v39 = vsel %vm648_vm11, %v7351_v38, 0 }
 0x76f   : > { %vm3522_vm12 = vcmp.ge.f32.partialorder %v5551_v51, 0.0  ;;  %v3554_v60 = vmul.f32 0.2, %v5551_v51  ;;  %v3584_v45 = vsel %vm3520_vm6, %v5549_v40, %v3552_v50 }
 0x770   : > { %vm3523_vm0 = vcmp.ge.f32.partialorder %v5552_v58, 0.0  ;;  %v3555_v63 = vmul.f32 0.2, %v5552_v58  ;;  %v3585_v20 = vsel %vm3521_vm10, %v5550_v44, %v3553_v57 }
 0x771   : > { %v3586_v2 = vsel %vm3522_vm12, %v5551_v51, %v3554_v60  ;;  %4198 = vrot.lane.b32.xlu1 %v4149_v0, %s6080_s26  ;;  %vm8581_vm12 = vcmp.ne.s16.totalorder %v6279_v41, 0 }
 0x772   : > { %v7368_v12 = vpack.c.bf16 %v3586_v2, %v3584_v45  ;;  %v3587_v4 = vsel %vm3523_vm0, %v5552_v58, %v3555_v63  ;;  %v3457_v5 = vpop.f32.mrb[28].mxu0  ;;  %4200 = vrot.lane.b32.xlu0 %v4150_v39, %s6080_s26  ;;  %v4500_v18 = vsel %vm8581_vm12, %v7349_v33, 0  ;;  %vm8582_vm0 = vcmp.ne.s16.totalorder %v6306_v47, 0  ;;  %v2915_v39 = vpop.permute.xlu1 %2914 }
 0x773   : > { %v7371_v61 = vpack.c.bf16 %v3587_v4, %v3585_v20  ;;  %v5553_v6 = vadd.f32 %v3457_v5, %v2895_v3  ;;  %v3459_v54 = vpop.f32.mrb[29].mxu0  ;;  %v4333_v46 = vsel %vm8582_vm0, %v7351_v38, 0  ;;  %v4501_v63 = vsel %vm752_vm4, %v7351_v38, 0 }
 0x774   : > { %v5554_v19 = vadd.f32 %v3459_v54, %v2895_v3  ;;  %v3461_v9 = vpop.f32.mrb[30].mxu0  ;;  %v3984_v14 = vsel %vm595_vm13, %v7368_v12, 0  ;;  %v4152_v24 = vsel %vm647_vm15, %v7368_v12, 0  ;;  %v3672_v29 = vsel %vm492_vm8, %v7368_v12, 0 }
 0x775   : > { %v3556_v11 = vmul.f32 0.2, %v5553_v6  ;;  %v5555_v16 = vadd.f32 %v3461_v9, %v2900_v7  ;;  %v3463_v15 = vpop.f32.mrb[31].mxu0  ;;  %4380 = vrot.lane.b32.xlu1 %v4332_v10, %s6079_s25  ;;  %vm3524_vm2 = vcmp.ge.f32.partialorder %v5553_v6, 0.0  ;;  %v4504_v2 = vsel %vm752_vm4, %v7371_v61, 0 }
 0x776   : > { %v3557_v62 = vmul.f32 0.2, %v5554_v19  ;;  %v5556_v8 = vadd.f32 %v3463_v15, %v2900_v7  ;;  %4036 = vrot.lane.b32.xlu0 %v3984_v14, %s6081_s27  ;;  %vm3525_vm1 = vcmp.ge.f32.partialorder %v5554_v19, 0.0  ;;  %v4335_v14 = vsel %vm701_vm14, %v7368_v12, 0 }
 0x777   : > { %vm3526_vm6 = vcmp.ge.f32.partialorder %v5555_v16, 0.0  ;;  %v3558_v13 = vmul.f32 0.2, %v5555_v16  ;;  %v3588_v17 = vsel %vm3524_vm2, %v5553_v6, %v3556_v11  ;;  %vm8583_vm2 = vmmov %vm8582_vm0 }
 0x778   : > { %vm3527_vm10 = vcmp.ge.f32.partialorder %v5556_v8, 0.0  ;;  %v3559_v59 = vmul.f32 0.2, %v5556_v8  ;;  %v3589_v27 = vsel %vm3525_vm1, %v5554_v19, %v3557_v62  ;;  %v4336_v53 = vsel %vm8583_vm2, %v7371_v61, 0  ;;  %v2920_v19 = vpop.permute.xlu0 %2919 }
 0x779   : > { %v3590_v23 = vsel %vm3526_vm6, %v5555_v16, %v3558_v13  ;;  %4548 = vrot.lane.b32.xlu1 %v4500_v18, %s6078_s24 }
 0x77a   : > { %v7388_v28 = vpack.c.bf16 %v3590_v23, %v3588_v17  ;;  %v3591_v30 = vsel %vm3527_vm10, %v5556_v8, %v3559_v59  ;;  %v3467_v31 = vpop.f32.mrb[32].mxu0  ;;  %4204 = vrot.lane.b32.xlu0 %v4152_v24, %s6080_s26 }
 0x77b   : > { %v7391_v34 = vpack.c.bf16 %v3591_v30, %v3589_v27  ;;  %v5557_v37 = vadd.f32 %v3467_v31, %v2905_v26  ;;  %v3469_v40 = vpop.f32.mrb[33].mxu0  ;;  %v2925_v27 = vpop.permute.xlu1 %2924 }
 0x77c   : > { %v5558_v43 = vadd.f32 %v3469_v40, %v2905_v26  ;;  %v3471_v44 = vpop.f32.mrb[34].mxu0  ;;  %v3987_v62 = vsel %vm595_vm13, %v7388_v28, 0  ;;  %v4155_v26 = vsel %vm647_vm15, %v7388_v28, 0 }
 0x77d   : > { %v3560_v48 = vmul.f32 0.2, %v5557_v37  ;;  %v5559_v50 = vadd.f32 %v3471_v44, %v2910_v42  ;;  %v3473_v51 = vpop.f32.mrb[35].mxu0  ;;  %4382 = vrot.lane.b32.xlu1 %v4333_v46, %s6079_s25  ;;  %vm3528_vm1 = vcmp.ge.f32.partialorder %v5557_v37, 0.0  ;;  %v2930_v46 = vpop.permute.xlu0 %2929 }
 0x77e   : > { %v3561_v55 = vmul.f32 0.2, %v5558_v43  ;;  %v5560_v57 = vadd.f32 %v3473_v51, %v2910_v42  ;;  %4388 = vrot.lane.b32.xlu0 %v4336_v53, %s6079_s25  ;;  %vm3529_vm6 = vcmp.ge.f32.partialorder %v5558_v43, 0.0  ;;  %v3985_v51 = vsel %vm596_vm9, %v7371_v61, 0 }
 0x77f   : > { %vm3530_vm10 = vcmp.ge.f32.partialorder %v5559_v50, 0.0  ;;  %v3562_v58 = vmul.f32 0.2, %v5559_v50  ;;  %v3592_v0 = vsel %vm3528_vm1, %v5557_v37, %v3560_v48 }
 0x780   : > { %vm3531_vm12 = vcmp.ge.f32.partialorder %v5560_v57, 0.0  ;;  %v3563_v60 = vmul.f32 0.2, %v5560_v57  ;;  %v3593_v3 = vsel %vm3529_vm6, %v5558_v43, %v3561_v55 }
 0x781   : > { %v3594_v45 = vsel %vm3530_vm10, %v5559_v50, %v3562_v58  ;;  %4550 = vrot.lane.b32.xlu1 %v4501_v63, %s6078_s24  ;;  %vm8584_vm10 = vcmp.ne.s16.totalorder %v6279_v41, 0  ;;  %v4338_v58 = vsel %vm701_vm14, %v7388_v28, 0 }
 0x782   : > { %v7408_v20 = vpack.c.bf16 %v3594_v45, %v3592_v0  ;;  %v3595_v4 = vsel %vm3531_vm12, %v5560_v57, %v3563_v60  ;;  %v3477_v5 = vpop.f32.mrb[36].mxu0  ;;  %4556 = vrot.lane.b32.xlu0 %v4504_v2, %s6078_s24  ;;  %v4503_v17 = vsel %vm8584_vm10, %v7368_v12, 0  ;;  %v4153_v2 = vsel %vm648_vm11, %v7371_v61, 0 }
 0x783   : > { %v7411_v6 = vpack.c.bf16 %v3595_v4, %v3593_v3  ;;  %v5561_v54 = vadd.f32 %v3477_v5, %v2915_v39  ;;  %v3479_v7 = vpop.f32.mrb[37].mxu0  ;;  %v2935_v5 = vpop.permute.xlu1 %2934 }
 0x784   : > { %v5562_v9 = vadd.f32 %v3479_v7, %v2915_v39  ;;  %v3481_v10 = vpop.f32.mrb[38].mxu0 }
 0x785   : > { %v3564_v11 = vmul.f32 0.2, %v5561_v54  ;;  %v5563_v16 = vadd.f32 %v3481_v10, %v2920_v19  ;;  %v3483_v15 = vpop.f32.mrb[39].mxu0  ;;  %4386 = vrot.lane.b32.xlu1 %v4335_v14, %s6079_s25  ;;  %vm3532_vm0 = vcmp.ge.f32.partialorder %v5561_v54, 0.0 }
 0x786   : > { %v3565_v8 = vmul.f32 0.2, %v5562_v9  ;;  %v5564_v13 = vadd.f32 %v3483_v15, %v2920_v19  ;;  %4042 = vrot.lane.b32.xlu0 %v3987_v62, %s6081_s27  ;;  %vm3533_vm2 = vcmp.ge.f32.partialorder %v5562_v9, 0.0 }
 0x787   : > { %vm3534_vm1 = vcmp.ge.f32.partialorder %v5563_v16, 0.0  ;;  %v3566_v59 = vmul.f32 0.2, %v5563_v16  ;;  %v3596_v23 = vsel %vm3532_vm0, %v5561_v54, %v3564_v11 }
 0x788   : > { %vm3535_vm6 = vcmp.ge.f32.partialorder %v5564_v13, 0.0  ;;  %v3567_v18 = vmul.f32 0.2, %v5564_v13  ;;  %v3597_v30 = vsel %vm3533_vm2, %v5562_v9, %v3565_v8  ;;  %v3988_v8 = vsel %vm596_vm9, %v7391_v34, 0 }
 0x789   : > { %v3598_v24 = vsel %vm3534_vm1, %v5563_v16, %v3566_v59  ;;  %4554 = vrot.lane.b32.xlu1 %v4503_v17, %s6078_s24  ;;  %v2940_v16 = vpop.permute.xlu0 %2939  ;;  %v4507_v17 = vsel %vm752_vm4, %v7391_v34, 0 }
 0x78a   : > { %v7428_v31 = vpack.c.bf16 %v3598_v24, %v3596_v23  ;;  %v3599_v37 = vsel %vm3535_vm6, %v5564_v13, %v3567_v18  ;;  %v3487_v40 = vpop.f32.mrb[40].mxu0  ;;  %4210 = vrot.lane.b32.xlu0 %v4155_v26, %s6080_s26  ;;  %vm8585_vm6 = vcmp.ne.s16.totalorder %v6306_v47, 0 }
 0x78b   : > { %v7431_v42 = vpack.c.bf16 %v3599_v37, %v3597_v30  ;;  %v5565_v43 = vadd.f32 %v3487_v40, %v2925_v27  ;;  %v3489_v44 = vpop.f32.mrb[41].mxu0  ;;  %v4339_v4 = vsel %vm8585_vm6, %v7391_v34, 0  ;;  %v4156_v30 = vsel %vm648_vm11, %v7391_v34, 0 }
 0x78c   : > { %v5566_v48 = vadd.f32 %v3489_v44, %v2925_v27  ;;  %v3491_v50 = vpop.f32.mrb[42].mxu0  ;;  %v2945_v44 = vpop.permute.xlu1 %2944 }
 0x78d   : > { %v3568_v53 = vmul.f32 0.2, %v5565_v43  ;;  %v5567_v55 = vadd.f32 %v3491_v50, %v2930_v46  ;;  %v3493_v57 = vpop.f32.mrb[43].mxu0  ;;  %4038 = vrot.lane.b32.xlu1 %v3985_v51, %s6081_s27  ;;  %vm3536_vm12 = vcmp.ge.f32.partialorder %v5565_v43, 0.0  ;;  %v4825_v21 = vsel %vm839_vm3, %v7431_v42, 0 }
 0x78e   : > { %v3569_v60 = vmul.f32 0.2, %v5566_v48  ;;  %v5568_v63 = vadd.f32 %v3493_v57, %v2930_v46  ;;  %4392 = vrot.lane.b32.xlu0 %v4338_v58, %s6079_s25  ;;  %vm3537_vm0 = vcmp.ge.f32.partialorder %v5566_v48, 0.0  ;;  %v2950_v58 = vpop.permute.xlu0 %2949 }
 0x78f   : > { %vm3538_vm2 = vcmp.ge.f32.partialorder %v5567_v55, 0.0  ;;  %v3570_v0 = vmul.f32 0.2, %v5567_v55  ;;  %v3600_v39 = vsel %vm3536_vm12, %v5565_v43, %v3568_v53  ;;  %v4341_v43 = vsel %vm701_vm14, %v7408_v20, 0 }
 0x790   : > { %vm3539_vm1 = vcmp.ge.f32.partialorder %v5568_v63, 0.0  ;;  %v3571_v45 = vmul.f32 0.2, %v5568_v63  ;;  %v3601_v54 = vsel %vm3537_vm0, %v5566_v48, %v3569_v60 }
 0x791   : > { %v3602_v3 = vsel %vm3538_vm2, %v5567_v55, %v3570_v0  ;;  %4206 = vrot.lane.b32.xlu1 %v4153_v2, %s6080_s26  ;;  %v3990_v0 = vsel %vm595_vm13, %v7408_v20, 0 }
 0x792   : > { %v7448_v7 = vpack.c.bf16 %v3602_v3, %v3600_v39  ;;  %v3603_v19 = vsel %vm3539_vm1, %v5568_v63, %v3571_v45  ;;  %v3497_v9 = vpop.f32.mrb[44].mxu0  ;;  %4394 = vrot.lane.b32.xlu0 %v4339_v4, %s6079_s25  ;;  %v3991_v3 = vsel %vm596_vm9, %v7411_v6, 0 }
 0x793   : > { %v7451_v10 = vpack.c.bf16 %v3603_v19, %v3601_v54  ;;  %v5569_v14 = vadd.f32 %v3497_v9, %v2935_v5  ;;  %v3499_v11 = vpop.f32.mrb[45].mxu0  ;;  %v4158_v9 = vsel %vm647_vm15, %v7408_v20, 0 }
 0x794   : > { %v5570_v15 = vadd.f32 %v3499_v11, %v2935_v5  ;;  %v3501_v62 = vpop.f32.mrb[46].mxu0 }
 0x795   : > { %v3572_v13 = vmul.f32 0.2, %v5569_v14  ;;  %v5571_v59 = vadd.f32 %v3501_v62, %v2940_v16  ;;  %v3503_v18 = vpop.f32.mrb[47].mxu0  ;;  %4044 = vrot.lane.b32.xlu1 %v3988_v8, %s6081_s27  ;;  %vm3540_vm10 = vcmp.ge.f32.partialorder %v5569_v14, 0.0 }
 0x796   : > { %v3573_v23 = vmul.f32 0.2, %v5570_v15  ;;  %v5572_v24 = vadd.f32 %v3503_v18, %v2940_v16  ;;  %4562 = vrot.lane.b32.xlu0 %v4507_v17, %s6078_s24  ;;  %vm3541_vm12 = vcmp.ge.f32.partialorder %v5570_v15, 0.0  ;;  %v4159_v16 = vsel %vm648_vm11, %v7411_v6, 0 }
 0x797   : > { %vm3542_vm0 = vcmp.ge.f32.partialorder %v5571_v59, 0.0  ;;  %v3574_v26 = vmul.f32 0.2, %v5571_v59  ;;  %v3604_v37 = vsel %vm3540_vm10, %v5569_v14, %v3572_v13  ;;  %v3994_v18 = vsel %vm596_vm9, %v7431_v42, 0 }
 0x798   : > { %vm3543_vm2 = vcmp.ge.f32.partialorder %v5572_v24, 0.0  ;;  %v3575_v27 = vmul.f32 0.2, %v5572_v24  ;;  %v3605_v46 = vsel %vm3541_vm12, %v5570_v15, %v3573_v23  ;;  %v3993_v17 = vsel %vm595_vm13, %v7428_v31, 0 }
 0x799   : > { %v3606_v40 = vsel %vm3542_vm0, %v5571_v59, %v3574_v26  ;;  %4212 = vrot.lane.b32.xlu1 %v4156_v30, %s6080_s26  ;;  %vm8586_vm0 = vcmp.ne.s16.totalorder %v6306_v47, 0  ;;  %v4162_v23 = vsel %vm648_vm11, %v7431_v42, 0  ;;  %v3996_v26 = vsel %vm595_vm13, %v7448_v7, 0 }
 0x79a   : > { %v7468_v48 = vpack.c.bf16 %v3606_v40, %v3604_v37  ;;  %v3607_v50 = vsel %vm3543_vm2, %v5572_v24, %v3575_v27  ;;  %v3507_v51 = vpop.f32.mrb[48].mxu0  ;;  %4398 = vrot.lane.b32.xlu0 %v4341_v43, %s6079_s25  ;;  %v4342_v59 = vsel %vm8586_vm0, %v7411_v6, 0  ;;  %v4161_v24 = vsel %vm647_vm15, %v7428_v31, 0  ;;  %vm8587_vm2 = vmmov %vm8586_vm0  ;;  %v7532_v43 = vpop.permute.xlu1 %5817 }
 0x79b   : > { %v7471_v53 = vpack.c.bf16 %v3607_v50, %v3605_v46  ;;  %v5573_v55 = vadd.f32 %v3507_v51, %v2945_v44  ;;  %v3509_v57 = vpop.f32.mrb[49].mxu0  ;;  %v4344_v27 = vsel %vm701_vm14, %v7428_v31, 0  ;;  %v4164_v30 = vsel %vm647_vm15, %v7448_v7, 0 }
 0x79c   : > { %v5574_v60 = vadd.f32 %v3509_v57, %v2945_v44  ;;  %v3511_v63 = vpop.f32.mrb[50].mxu0  ;;  %v4345_v37 = vsel %vm8587_vm2, %v7431_v42, 0  ;;  %v7535_v44 = vpop.permute.xlu0 %5822  ;;  %v4347_v46 = vsel %vm701_vm14, %v7448_v7, 0  ;;  %v3999_v50 = vsel %vm595_vm13, %v7468_v48, 0 }
 0x79d   : > { %v3576_v45 = vmul.f32 0.2, %v5573_v55  ;;  %v5575_v2 = vadd.f32 %v3511_v63, %v2950_v58  ;;  %v3513_v39 = vpop.f32.mrb[51].mxu0  ;;  %4048 = vrot.lane.b32.xlu1 %v3990_v0, %s6081_s27  ;;  %vm3544_vm1 = vcmp.ge.f32.partialorder %v5573_v55, 0.0  ;;  %v4350_v63 = vsel %vm701_vm14, %v7468_v48, 0 }
 0x79e   : > { %v3577_v4 = vmul.f32 0.2, %v5574_v60  ;;  %v5576_v5 = vadd.f32 %v3513_v39, %v2950_v58  ;;  %4050 = vrot.lane.b32.xlu0 %v3991_v3, %s6081_s27  ;;  %vm3545_vm6 = vcmp.ge.f32.partialorder %v5574_v60, 0.0  ;;  %v7545_v51 = vpop.permute.xlu1 %5827  ;;  %v4167_v58 = vsel %vm647_vm15, %v7468_v48, 0 }
 0x79f   : > { %vm3546_vm10 = vcmp.ge.f32.partialorder %v5575_v2, 0.0  ;;  %v3578_v54 = vmul.f32 0.2, %v5575_v2  ;;  %v3608_v14 = vsel %vm3544_vm1, %v5573_v55, %v3576_v45  ;;  %vm8588_vm1 = vmmov %vm8586_vm0  ;;  %v3997_v55 = vsel %vm596_vm9, %v7451_v10, 0 }
 0x7a0   : > { %vm3547_vm12 = vcmp.ge.f32.partialorder %v5576_v5, 0.0  ;;  %v3579_v19 = vmul.f32 0.2, %v5576_v5  ;;  %v3609_v15 = vsel %vm3545_vm6, %v5574_v60, %v3577_v4  ;;  %v4348_v40 = vsel %vm8588_vm1, %v7451_v10, 0  ;;  %v7550_v57 = vpop.permute.xlu0 %5832  ;;  %vm8589_vm6 = vmmov %vm8586_vm0 }
 0x7a1   : > { %v3610_v11 = vsel %vm3546_vm10, %v5575_v2, %v3578_v54  ;;  %4216 = vrot.lane.b32.xlu1 %v4158_v9, %s6080_s26  ;;  %v4165_v60 = vsel %vm648_vm11, %v7451_v10, 0  ;;  %v4000_v2 = vsel %vm596_vm9, %v7471_v53, 0  ;;  %v4351_v39 = vsel %vm8589_vm6, %v7471_v53, 0 }
 0x7a2   : > { %v7488_v62 = vpack.c.bf16 %v3610_v11, %v3608_v14  ;;  %v3611_v8 = vsel %vm3547_vm12, %v5576_v5, %v3579_v19  ;;  %4218 = vrot.lane.b32.xlu0 %v4159_v16, %s6080_s26  ;;  %v7564_v0 = vpop.permute.xlu1 %5837  ;;  %v4168_v4 = vsel %vm648_vm11, %v7471_v53, 0  ;;  %v4510_v16 = vsel %vm752_vm4, %v7411_v6, 0 }
 0x7a3   : > { %v7491_v13 = vpack.c.bf16 %v3611_v8, %v3609_v15  ;;  %v4513_v8 = vsel %vm752_vm4, %v7431_v42, 0  ;;  %vm8597_vm10 = vcmask 121856  }
 0x7a4   : > { %v7567_v45 = vpop.permute.xlu0 %5842  ;;  %v4353_v54 = vsel %vm701_vm14, %v7488_v62, 0  ;;  %v4002_v19 = vsel %vm595_vm13, %v7488_v62, 0  ;;  %v4170_v35 = vsel %vm647_vm15, %v7488_v62, 0  ;;  %vm8590_vm13 = vcmp.ne.s16.totalorder %v6279_v41, 0  ;;  %vm8598_vm12 = vmmov %vm8597_vm10 }
 0x7a5   : > { %4400 = vrot.lane.b32.xlu1 %v4342_v59, %s6079_s25  ;;  %v4003_v9 = vsel %vm596_vm9, %v7491_v13, 0  ;;  %v4506_v32 = vsel %vm8590_vm13, %v7388_v28, 0  ;;  %vm8592_vm9 = vmmov %vm8590_vm13  ;;  %v3670_v41 = vsel %vm493_vm7, %v7351_v38, 0 }
 0x7a6   : > { %4056 = vrot.lane.b32.xlu0 %v3994_v18, %s6081_s27  ;;  %v7577_v3 = vpop.permute.xlu1 %5847  ;;  %v4509_v36 = vsel %vm8592_vm9, %v7408_v20, 0  ;;  %vm8595_vm14 = vmmov %vm8592_vm9 }
 0x7a7   : > { %vm8596_vm15 = vmmov %vm8592_vm9 }
 0x7a8   : > { %v7582_v5 = vpop.permute.xlu0 %5852  ;;  %vm8599_vm0 = vmmov %vm8592_vm9 }
 0x7a9   : > { %4054 = vrot.lane.b32.xlu1 %v3993_v17, %s6081_s27  ;;  %v4512_v17 = vsel %vm8595_vm14, %v7428_v31, 0  ;;  %vm8600_vm2 = vmmov %vm8599_vm0 }
 0x7aa   : > { %4224 = vrot.lane.b32.xlu0 %v4162_v23, %s6080_s26  ;;  %v7596_v14 = vpop.permute.xlu1 %5862  ;;  %v4516_v23 = vsel %vm752_vm4, %v7451_v10, 0  ;;  %vm8606_vm1 = vmmov %vm8597_vm10 }
 0x7ab   : > { %vm8608_vm6 = vmmov %vm8606_vm1 }
 0x7ac   : > { %v7599_v11 = vpop.permute.xlu0 %5857  ;;  %vm8609_vm13 = vmmov %vm8606_vm1 }
 0x7ad   : > { %4222 = vrot.lane.b32.xlu1 %v4161_v24, %s6080_s26  ;;  %vm8610_vm9 = vmmov %vm8606_vm1 }
 0x7ae   : > { %4060 = vrot.lane.b32.xlu0 %v3996_v26, %s6081_s27  ;;  %v7609_v25 = vpop.permute.xlu1 %5872  ;;  %v5819_v26 = vunpack.i.l.bf16 %v7532_v43  ;;  %vm8611_vm14 = vmmov %vm8606_vm1 }
 0x7af   : > { %8591 = vst [vmem:[#allocation4_spill] sm:$0xff] %v7609_v25 }
 0x7b0   : > { %v7614_v15 = vpop.permute.xlu0 %5867 }
 0x7b1   : > { %4404 = vrot.lane.b32.xlu1 %v4344_v27, %s6079_s25 }
 0x7b2   : > { %4228 = vrot.lane.b32.xlu0 %v4164_v30, %s6080_s26  ;;  %v7625_v59 = vpop.permute.xlu1 %5882  ;;  %v4515_v30 = vsel %vm8596_vm15, %v7448_v7, 0  ;;  %vm8612_vm15 = vmmov %vm8606_vm1 }
 0x7b3   : > { %8593 = vst [vmem:[#allocation5_spill] sm:$0xff] %v7625_v59 }
 0x7b4   : > { %v7629_v18 = vpop.permute.xlu0 %5877 }
 0x7b5   : > { %4406 = vrot.lane.b32.xlu1 %v4345_v37, %s6079_s25  ;;  %8594 = vst [vmem:[#allocation6_spill] sm:$0xff] %v7629_v18  ;;  %v4519_v37 = vsel %vm752_vm4, %v7471_v53, 0 }
 0x7b6   : > { %4412 = vrot.lane.b32.xlu0 %v4348_v40, %s6079_s25 }
 0x7b9   : > { %4410 = vrot.lane.b32.xlu1 %v4347_v46, %s6079_s25 }
 0x7ba   : > { %4066 = vrot.lane.b32.xlu0 %v3999_v50, %s6081_s27 }
 0x7bd   : > { %4062 = vrot.lane.b32.xlu1 %v3997_v55, %s6081_s27 }
 0x7be   : > { %4234 = vrot.lane.b32.xlu0 %v4167_v58, %s6080_s26  ;;  %v4518_v58 = vsel %vm8599_vm0, %v7468_v48, 0  ;;  %vm8617_vm0 = vmmov %vm8606_vm1 }
 0x7c1   : > { %4230 = vrot.lane.b32.xlu1 %v4165_v60, %s6080_s26  ;;  %v7662_v60 = vld [vmem:[%s8438_s9 + $0x8] sm:$0xff] }
 0x7c2   : > { %4416 = vrot.lane.b32.xlu0 %v4350_v63, %s6079_s25  ;;  %v5495_v63 = vcombine.high %v7662_v60, %v7662_v60 }
 0x7c4   : > { %5216 = vmatprep.mubr.bf16.mxu1 %v5495_v63 }
 0x7c5   : > { %4068 = vrot.lane.b32.xlu1 %v4000_v2, %s6081_s27 }
 0x7c6   : > { %4418 = vrot.lane.b32.xlu0 %v4351_v39, %s6079_s25 }
 0x7c9   : > { %4236 = vrot.lane.b32.xlu1 %v4168_v4, %s6080_s26  ;;  %v3669_v4 = vsel %vm492_vm8, %v7349_v33, 0 }
 0x7ca   : > { %4422 = vrot.lane.b32.xlu0 %v4353_v54, %s6079_s25  ;;  %v4521_v54 = vsel %vm8600_vm2, %v7488_v62, 0  ;;  %vm8618_vm2 = vmmov %vm8617_vm0 }
 0x7cd   : > { %4072 = vrot.lane.b32.xlu1 %v4002_v19, %s6081_s27 }
 0x7ce   : > { %4074 = vrot.lane.b32.xlu0 %v4003_v9, %s6081_s27 }
 0x7d1   : > { %4240 = vrot.lane.b32.xlu1 %v4170_v35, %s6080_s26  ;;  %v4171_v35 = vsel %vm648_vm11, %v7491_v13, 0  ;;  %vm8605_vm11 = vmmov %vm8597_vm10 }
 0x7d2   : > { %4560 = vrot.lane.b32.xlu0 %v4506_v32, %s6078_s24 }
 0x7d5   : > { %4568 = vrot.lane.b32.xlu1 %v4510_v16, %s6078_s24 }
 0x7d6   : > { %4566 = vrot.lane.b32.xlu0 %v4509_v36, %s6078_s24 }
 0x7d9   : > { %4574 = vrot.lane.b32.xlu1 %v4513_v8, %s6078_s24 }
 0x7da   : > { %5887 = vrot.lane.b32.xlu0 %v8457_v1, %s6078_s24 }
 0x7dd   : > { %4572 = vrot.lane.b32.xlu1 %v4512_v17, %s6078_s24 }
 0x7de   : > { %4580 = vrot.lane.b32.xlu0 %v4516_v23, %s6078_s24 }
 0x7df   : > { %v4031_v24 = vpop.permute.xlu1 %4030 }
 0x7e0   : > { %v4033_v27 = vpop.permute.xlu0 %4032  ;;  %v4076_v46 = vsel %vm8598_vm12, %v5819_v26, %v4031_v24  ;;  %vm8616_vm12 = vcmp.ne.s16.totalorder %v6306_v47, 0 }
 0x7e1   : > { %4578 = vrot.lane.b32.xlu1 %v4515_v30, %s6078_s24  ;;  %v4077_v40 = vsel %vm8597_vm10, %v4031_v24, %v4033_v27  ;;  %v3675_v27 = vsel %vm492_vm8, %v7388_v28, 0  ;;  %v3673_v30 = vsel %vm493_vm7, %v7371_v61, 0  ;;  %vm8613_vm10 = vmmov %vm8606_vm1 }
 0x7e2   : > { %4586 = vrot.lane.b32.xlu0 %v4519_v37, %s6078_s24  ;;  %5184 = vmatprep.subr.bf16.mxu1 %v4077_v40  ;;  %v5820_v37 = vunpack.i.h.bf16 %v7532_v43  ;;  %v3676_v43 = vsel %vm493_vm7, %v7391_v34, 0 }
 0x7e3   : > { %5185 = vmatpush1.bf16.msra.mxu1 %v4076_v46  ;;  %v7650_v50 = vpop.permute.xlu1 %4198 }
 0x7e4   : > { %v7652_v55 = vpop.permute.xlu0 %4200 }
 0x7e5   : > { %5892 = vrot.lane.b32.xlu1 %v8457_v1, %s6078_s24 }
 0x7e6   : > { %4584 = vrot.lane.b32.xlu0 %v4518_v58, %s6078_s24 }
 0x7e7   : > { %v7667_v2 = vpop.permute.xlu1 %4380 }
 0x7e8   : > { %v4037_v39 = vpop.permute.xlu0 %4036 }
 0x7e9   : > { %3718 = vrot.lane.b32.xlu1 %v3669_v4, %s6082_s28  ;;  %v4078_v63 = vsel %vm8606_vm1, %v5820_v37, %v4037_v39  ;;  %vm8622_vm1 = vmmov %vm8617_vm0 }
 0x7ea   : > { %4590 = vrot.lane.b32.xlu0 %v4521_v54, %s6078_s24 }
 0x7eb   : > { %v7677_v19 = vpop.permute.xlu1 %4548 }
 0x7ec   : > { %8601 = vst [vmem:[#allocation7_spill] sm:$0xff] %v7677_v19  ;;  %v7679_v9 = vpop.permute.xlu0 %4204  ;;  %v5830_v19 = vunpack.i.h.bf16 %v7545_v51 }
 0x7ed   : > { %5897 = vrot.lane.b32.xlu1 %v8457_v1, %s6082_s28 }
 0x7ee   : > { %4242 = vrot.lane.b32.xlu0 %v4171_v35, %s6080_s26  ;;  %v5824_v35 = vunpack.i.l.bf16 %v7535_v44 }
 0x7ef   : > { %v7687_v32 = vpop.permute.xlu1 %4382 }
 0x7f0   : > { %v7689_v16 = vpop.permute.xlu0 %4388 }
 0x7f1   : > { %5902 = vrot.lane.b32.xlu1 %v8457_v1, %s6084_s30 }
 0x7f2   : > { %3720 = vrot.lane.b32.xlu0 %v3670_v41, %s6082_s28 }
 0x7f3   : > { %v7697_v36 = vpop.permute.xlu1 %4550 }
 0x7f4   : > { %8602 = vst [vmem:[#allocation8_spill] sm:$0xff] %v7697_v36  ;;  %v7699_v8 = vpop.permute.xlu0 %4556 }
 0x7f5   : > { %8603 = vst [vmem:[#allocation9_spill] sm:$0xff] %v7699_v8  ;;  %3724 = vrot.lane.b32.xlu1 %v3672_v29, %s6082_s28 }
 0x7f6   : > { %4694 = vrot.lane.b32.xlu0 %v7351_v38, %s6084_s30 }
 0x7f7   : > { %v7707_v17 = vpop.permute.xlu1 %4386 }
 0x7f8   : > { %v4043_v23 = vpop.permute.xlu0 %4042 }
 0x7f9   : > { %4700 = vrot.lane.b32.xlu1 %v7371_v61, %s6084_s30 }
 0x7fa   : > { %4692 = vrot.lane.b32.xlu0 %v7349_v33, %s6084_s30 }
 0x7fb   : > { %v7713_v24 = vpop.permute.xlu1 %4554 }
 0x7fc   : > { %8604 = vst [vmem:[#allocation10_spill] sm:$0xff] %v7713_v24  ;;  %v7715_v26 = vpop.permute.xlu0 %4210 }
 0x7fd   : > { %3730 = vrot.lane.b32.xlu1 %v3675_v27, %s6082_s28  ;;  %v3678_v27 = vsel %vm492_vm8, %v7408_v20, 0 }
 0x7fe   : > { %3726 = vrot.lane.b32.xlu0 %v3673_v30, %s6082_s28  ;;  %v4080_v30 = vsel %vm8609_vm13, %v5824_v35, %v4043_v23  ;;  %v3679_v35 = vsel %vm493_vm7, %v7411_v6, 0  ;;  %vm8627_vm13 = vcmask 7168  }
 0x7ff   : > { %v4039_v40 = vpop.permute.xlu1 %4038 }
 0x800   : > { %v7726_v46 = vpop.permute.xlu0 %4392  ;;  %v4079_v58 = vsel %vm8605_vm11, %v4037_v39, %v4039_v40  ;;  %vm8621_vm11 = vmmov %vm8617_vm0 }
 0x801   : > { %5186 = vmatprep.subr.bf16.mxu1 %v4079_v58  ;;  %5907 = vrot.lane.b32.xlu1 %v8457_v1, %s6082_s28 }
 0x802   : > { %4698 = vrot.lane.b32.xlu0 %v7368_v12, %s6084_s30  ;;  %5187 = vmatpush1.bf16.msra.mxu1 %v4078_v63  ;;  %v5825_v63 = vunpack.i.h.bf16 %v7535_v44 }
 0x803   : > { %v7734_v4 = vpop.permute.xlu1 %4206 }
 0x804   : > { %v7736_v54 = vpop.permute.xlu0 %4394 }
 0x805   : > { %5912 = vrot.lane.b32.xlu1 %v8457_v1, %s6084_s30 }
 0x806   : > { %3732 = vrot.lane.b32.xlu0 %v3676_v43, %s6082_s28 }
 0x807   : > { %v4045_v39 = vpop.permute.xlu1 %4044 }
 0x808   : > { %v7745_v41 = vpop.permute.xlu0 %4562  ;;  %v4081_v29 = vsel %vm8608_vm6, %v4043_v23, %v4045_v39  ;;  %v3681_v23 = vsel %vm492_vm8, %v7428_v31, 0  ;;  %vm8626_vm6 = vmmov %vm8617_vm0 }
 0x809   : > { %8607 = vst [vmem:[#allocation11_spill] sm:$0xff] %v7745_v41  ;;  %5188 = vmatprep.subr.bf16.mxu1 %v4081_v29  ;;  %3736 = vrot.lane.b32.xlu1 %v3678_v27, %s6082_s28 }
 0x80a   : > { %4706 = vrot.lane.b32.xlu0 %v7391_v34, %s6084_s30  ;;  %5189 = vmatpush1.bf16.msra.mxu1 %v4080_v30 }
 0x80b   : > { %v7755_v37 = vpop.permute.xlu1 %4212 }
 0x80c   : > { %v7757_v40 = vpop.permute.xlu0 %4398 }
 0x80d   : > { %4712 = vrot.lane.b32.xlu1 %v7411_v6, %s6084_s30 }
 0x80e   : > { %4704 = vrot.lane.b32.xlu0 %v7388_v28, %s6084_s30 }
 0x80f   : > { %v4049_v58 = vpop.permute.xlu1 %4048 }
 0x810   : > { %v4051_v43 = vpop.permute.xlu0 %4050  ;;  %v4082_v29 = vsel %vm8611_vm14, %v5825_v63, %v4049_v58  ;;  %v5829_v63 = vunpack.i.l.bf16 %v7545_v51  ;;  %v3690_v51 = vsel %vm492_vm8, %v7488_v62, 0  ;;  %vm8629_vm14 = vmmov %vm8627_vm13 }
 0x811   : > { %3742 = vrot.lane.b32.xlu1 %v3681_v23, %s6082_s28  ;;  %v4083_v39 = vsel %vm8610_vm9, %v4049_v58, %v4051_v43  ;;  %v3682_v58 = vsel %vm493_vm7, %v7431_v42, 0  ;;  %vm8628_vm9 = vcmp.ne.s16.totalorder %v6323_v52, 0 }
 0x812   : > { %3738 = vrot.lane.b32.xlu0 %v3679_v35, %s6082_s28  ;;  %5190 = vmatprep.subr.bf16.mxu1 %v4083_v39 }
 0x813   : > { %5191 = vmatpush1.bf16.msra.mxu1 %v4082_v29  ;;  %v7774_v44 = vpop.permute.xlu1 %4216  ;;  %v3684_v29 = vsel %vm492_vm8, %v7448_v7, 0 }
 0x814   : > { %v7776_v27 = vpop.permute.xlu0 %4218 }
 0x815   : > { %5917 = vrot.lane.b32.xlu1 %v8457_v1, %s6082_s28 }
 0x816   : > { %4710 = vrot.lane.b32.xlu0 %v7408_v20, %s6084_s30 }
 0x817   : > { %v7782_v30 = vpop.permute.xlu1 %4400 }
 0x818   : > { %v4057_v23 = vpop.permute.xlu0 %4056 }
 0x819   : > { %5922 = vrot.lane.b32.xlu1 %v8457_v1, %s6084_s30 }
 0x81a   : > { %3744 = vrot.lane.b32.xlu0 %v3682_v58, %s6082_s28 }
 0x81b   : > { %v4055_v43 = vpop.permute.xlu1 %4054 }
 0x81c   : > { %v7791_v35 = vpop.permute.xlu0 %4224  ;;  %v4085_v39 = vsel %vm8612_vm15, %v4055_v43, %v4057_v23  ;;  %v4084_v41 = vsel %vm8613_vm10, %v5829_v63, %v4055_v43  ;;  %v3687_v63 = vsel %vm492_vm8, %v7468_v48, 0  ;;  %vm8625_vm8 = vmmov %vm8617_vm0  ;;  %vm8631_vm10 = vcmask 924672  }
 0x81d   : > { %5192 = vmatprep.subr.bf16.mxu1 %v4085_v39  ;;  %3748 = vrot.lane.b32.xlu1 %v3684_v29, %s6082_s28  ;;  %v8614_v29 = vmov 0   ;;  %vm8630_vm15 = vmmov %vm8627_vm13 }
 0x81e   : > { %4718 = vrot.lane.b32.xlu0 %v7431_v42, %s6084_s30  ;;  %5193 = vmatpush1.bf16.msra.mxu1 %v4084_v41  ;;  %v3685_v41 = vsel %vm493_vm7, %v7451_v10, 0 }
 0x81f   : > { %v7801_v1 = vpop.permute.xlu1 %4222 }
 0x820   : > { %v4061_v58 = vpop.permute.xlu0 %4060 }
 0x821   : > { %4724 = vrot.lane.b32.xlu1 %v7451_v10, %s6084_s30  ;;  %v4086_v47 = vsel %vm8618_vm2, %v5830_v19, %v4061_v58  ;;  %vm8634_vm2 = vmmov %vm8628_vm9 }
 0x822   : > { %4716 = vrot.lane.b32.xlu0 %v7428_v31, %s6084_s30 }
 0x823   : > { %v7807_v23 = vpop.permute.xlu1 %4404 }
 0x824   : > { %v7809_v24 = vpop.permute.xlu0 %4228 }
 0x825   : > { %3754 = vrot.lane.b32.xlu1 %v3687_v63, %s6082_s28  ;;  %v4354_v63 = vsel %vm8616_vm12, %v7491_v13, 0  ;;  %vm8632_vm12 = vmmov %vm8627_vm13 }
 0x826   : > { %3750 = vrot.lane.b32.xlu0 %v3685_v41, %s6082_s28  ;;  %v3688_v41 = vsel %vm493_vm7, %v7471_v53, 0 }
 0x827   : > { %v7819_v43 = vpop.permute.xlu1 %4406 }
 0x828   : > { %v7821_v39 = vpop.permute.xlu0 %4412 }
 0x829   : > { %5927 = vrot.lane.b32.xlu1 %v8614_v29, %s6082_s28 }
 0x82a   : > { %4722 = vrot.lane.b32.xlu0 %v7448_v7, %s6084_s30 }
 0x82b   : > { %v7827_v59 = vpop.permute.xlu1 %4410 }
 0x82c   : > { %8615 = vst [vmem:[#allocation12_spill] sm:$0xff] %v7827_v59  ;;  %v4067_v8 = vpop.permute.xlu0 %4066 }
 0x82d   : > { %4424 = vrot.lane.b32.xlu1 %v4354_v63, %s6079_s25  ;;  %s8624_s25 = smov 16  }
 0x82e   : > { %3756 = vrot.lane.b32.xlu0 %v3688_v41, %s6082_s28 }
 0x82f   : > { %v4063_v36 = vpop.permute.xlu1 %4062 }
 0x830   : > { %v7838_v18 = vpop.permute.xlu0 %4234  ;;  %v4087_v59 = vsel %vm8617_vm0, %v4061_v58, %v4063_v36  ;;  %vm8633_vm0 = vmmov %vm8632_vm12 }
 0x831   : > { %5194 = vmatprep.subr.bf16.mxu1 %v4087_v59  ;;  %5932 = vrot.lane.b32.xlu1 %v8614_v29, %s6084_s30  ;;  %v5834_v59 = vunpack.i.l.bf16 %v7550_v57 }
 0x832   : > { %4730 = vrot.lane.b32.xlu0 %v7471_v53, %s6084_s30  ;;  %5195 = vmatpush1.bf16.msra.mxu1 %v4086_v47 }
 0x833   : > { %v7846_v63 = vpop.permute.xlu1 %4230  ;;  %v4088_v47 = vsel %vm8622_vm1, %v5834_v59, %v4067_v8  ;;  %vm8636_vm1 = vmmov %vm8633_vm0 }
 0x834   : > { %v7848_v41 = vpop.permute.xlu0 %4416  ;;  %v4251_v49 = vsel %vm8636_vm1, %v7774_v44, %v7776_v27 }
 0x835   : > { %8619 = vst [vmem:[#allocation13_spill] sm:$0xff] %v7848_v41  ;;  %3760 = vrot.lane.b32.xlu1 %v3690_v51, %s6082_s28 }
 0x836   : > { %4728 = vrot.lane.b32.xlu0 %v7468_v48, %s6084_s30 }
 0x837   : > { %v4069_v19 = vpop.permute.xlu1 %4068 }
 0x838   : > { %v7857_v36 = vpop.permute.xlu0 %4418  ;;  %v4089_v58 = vsel %vm8621_vm11, %v4067_v8, %v4069_v19  ;;  %v4813_v8 = vsel %vm839_vm3, %v7351_v38, 0  ;;  %vm8635_vm11 = vmmov %vm8633_vm0 }
 0x839   : > { %8620 = vst [vmem:[#allocation14_spill] sm:$0xff] %v7857_v36  ;;  %5196 = vmatprep.subr.bf16.mxu1 %v4089_v58  ;;  %4736 = vrot.lane.b32.xlu1 %v7491_v13, %s6084_s30  ;;  %v5835_v58 = vunpack.i.h.bf16 %v7550_v57  ;;  %v4245_v57 = vsel %vm8627_vm13, %v7650_v50, %v7652_v55  ;;  %v5839_v36 = vunpack.i.l.bf16 %v7564_v0  ;;  %v4247_v55 = vsel %vm8630_vm15, %v7679_v9, %v7734_v4  ;;  %vm8640_vm13 = vmmov %vm8633_vm0 }
 0x83a   : > { %4734 = vrot.lane.b32.xlu0 %v7488_v62, %s6084_s30  ;;  %5197 = vmatpush1.bf16.msra.mxu1 %v4088_v47  ;;  %v5844_v4 = vunpack.i.l.bf16 %v7567_v45  ;;  %vm8643_vm15 = vmmov %vm8633_vm0 }
 0x83b   : > { %v7865_v22 = vpop.permute.xlu1 %4236 }
 0x83c   : > { %v7867_v51 = vpop.permute.xlu0 %4422 }
 0x83d   : > { %8623 = vst [vmem:[#allocation15_spill] sm:$0xff] %v7867_v51  ;;  %3862 = vrot.lane.b32.xlu1 %v7349_v33, %s8624_s25 }
 0x83e   : > { %3864 = vrot.lane.b32.xlu0 %v7351_v38, %s8624_s25 }
 0x83f   : > { %v4073_v19 = vpop.permute.xlu1 %4072 }
 0x840   : > { %v4075_v41 = vpop.permute.xlu0 %4074  ;;  %v4090_v47 = vsel %vm8626_vm6, %v5835_v58, %v4073_v19 }
 0x841   : > { %5937 = vrot.lane.b32.xlu1 %v8614_v29, %s8624_s25  ;;  %v4091_v59 = vsel %vm8625_vm8, %v4073_v19, %v4075_v41  ;;  %v4812_v41 = vsel %vm8628_vm9, %v7349_v33, 0  ;;  %v4244_v19 = vsel %vm8629_vm14, %v5839_v36, %v7650_v50  ;;  %vm8641_vm9 = vmmov %vm8633_vm0 }
 0x842   : > { %4862 = vrot.lane.b32.xlu0 %v4813_v8, %s8529_s13  ;;  %5198 = vmatprep.subr.bf16.mxu1 %v4091_v59  ;;  %v5840_v8 = vunpack.i.h.bf16 %v7564_v0  ;;  %v4249_v0 = vsel %vm8633_vm0, %v7715_v26, %v7755_v37  ;;  %v4248_v37 = vsel %vm8635_vm11, %v5844_v4, %v7715_v26  ;;  %v4816_v26 = vsel %vm839_vm3, %v7371_v61, 0 }
 0x843   : > { %5199 = vmatpush1.bf16.msra.mxu1 %v4090_v47  ;;  %v7882_v51 = vpop.permute.xlu1 %4240 }
 0x844   : > { %v7888_v25 = vpop.permute.xlu0 %4560  ;;  %5200 = vmatprep.subr.bf16.mxu1 %v4245_v57  ;;  %v4246_v50 = vsel %vm8632_vm12, %v5840_v8, %v7679_v9  ;;  %v4815_v9 = vsel %vm8634_vm2, %v7368_v12, 0 }
 0x845   : > { %5942 = vrot.lane.b32.xlu1 %v8614_v29, %s8529_s13 }
 0x846   : > { %4860 = vrot.lane.b32.xlu0 %v4812_v41, %s8529_s13  ;;  %v4522_v41 = vsel %vm752_vm4, %v7491_v13, 0  ;;  %vm8637_vm4 = vmmov %vm8631_vm10 }
 0x847   : > { %5201 = vmatpush1.bf16.msra.mxu1 %v4244_v19  ;;  %v7898_v58 = vpop.permute.xlu1 %4568  ;;  %vm8638_vm8 = vmmov %vm8637_vm4 }
 0x848   : > { %v4567_v59 = vpop.permute.xlu0 %4566  ;;  %5202 = vmatprep.subr.bf16.mxu1 %v4247_v55  ;;  %vm8639_vm6 = vmmov %vm8637_vm4 }
 0x849   : > { %v7906_v47 = vsel %vm8631_vm10, %v4567_v59, %v7898_v58  ;;  %3868 = vrot.lane.b32.xlu1 %v7368_v12, %s8624_s25  ;;  %vm8642_vm14 = vmmov %vm8637_vm4 }
 0x84a   : > { %3870 = vrot.lane.b32.xlu0 %v7371_v61, %s8624_s25  ;;  %vm8644_vm10 = vmmov %vm8633_vm0 }
 0x84b   : > { %5203 = vmatpush1.bf16.msra.mxu1 %v4246_v50  ;;  %v4575_v36 = vpop.permute.xlu1 %4574  ;;  %v5845_v50 = vunpack.i.h.bf16 %v7567_v45  ;;  %vm8645_vm12 = vmmov %vm8637_vm4 }
 0x84c   : > { %v5888_v57 = vpop.permute.xlu0 %5887  ;;  %5204 = vmatprep.subr.bf16.mxu1 %v4249_v0  ;;  %vm8646_vm0 = vmmov %vm8634_vm2 }
 0x84d   : > { %v5890_v19 = vunpack.i.h.bf16 %v5888_v57  ;;  %v5889_v55 = vunpack.i.l.bf16 %v5888_v57  ;;  %4592 = vrot.lane.b32.xlu1 %v4522_v41, %s6078_s24  ;;  %v4250_v45 = vsel %vm8640_vm13, %v5845_v50, %v7774_v44  ;;  %v5849_v41 = vunpack.i.l.bf16 %v7577_v3  ;;  %vm8647_vm2 = vmmov %vm8636_vm1 }
 0x84e   : > { %4866 = vrot.lane.b32.xlu0 %v4815_v9, %s8529_s13  ;;  %v4819_v44 = vsel %vm839_vm3, %v7391_v34, 0  ;;  %vm8648_vm11 = vmmov %vm8637_vm4 }
 0x84f   : > { %5205 = vmatpush1.bf16.msra.mxu1 %v4248_v37  ;;  %v4573_v8 = vpop.permute.xlu1 %4572  ;;  %v7932_v59 = vsel %vm8637_vm4, %v4575_v36, %v5889_v55  ;;  %v4255_v37 = vsel %vm8644_vm10, %v7809_v24, %v7846_v63  ;;  %vm8649_vm4 = vmmov %vm8636_vm1 }
 0x850   : > { %v7936_v0 = vsel %vm8638_vm8, %v4573_v8, %v4575_v36  ;;  %v4581_v57 = vpop.permute.xlu0 %4580  ;;  %5206 = vmatprep.subr.bf16.mxu1 %v4251_v49  ;;  %v4253_v36 = vsel %vm8641_vm9, %v7801_v1, %v7791_v35  ;;  %v5850_v8 = vunpack.i.h.bf16 %v7577_v3  ;;  %vm8650_vm8 = vmmov %vm8646_vm0  ;;  %vm8653_vm9 = vcmask 138240  }
 0x851   : > { %4868 = vrot.lane.b32.xlu1 %v4816_v26, %s8529_s13  ;;  %v7943_v4 = vsel %vm8639_vm6, %v4581_v57, %v5890_v19  ;;  %v4252_v19 = vsel %vm8643_vm15, %v5849_v41, %v7801_v1  ;;  %v4818_v1 = vsel %vm8646_vm0, %v7388_v28, 0  ;;  %vm8651_vm6 = vmmov %vm8636_vm1  ;;  %vm8655_vm15 = vcmask 916480  }
 0x852   : > { %3876 = vrot.lane.b32.xlu0 %v7391_v34, %s8624_s25  ;;  %v4254_v63 = vsel %vm8647_vm2, %v5850_v8, %v7809_v24  ;;  %vm8652_vm13 = vmmov %vm8636_vm1 }
 0x853   : > { %5207 = vmatpush1.bf16.msra.mxu1 %v4250_v45  ;;  %v4579_v27 = vpop.permute.xlu1 %4578  ;;  %v4257_v45 = vsel %vm8636_vm1, %v7838_v18, %v7865_v22  ;;  %v4821_v22 = vsel %vm8650_vm8, %v7408_v20, 0  ;;  %vm8656_vm10 = vmmov %vm8655_vm15 }
 0x854   : > { %v7954_v55 = vsel %vm8642_vm14, %v4579_v27, %v4581_v57  ;;  %v4587_v9 = vpop.permute.xlu0 %4586  ;;  %5208 = vmatprep.subr.bf16.mxu1 %v4253_v36  ;;  %v5854_v27 = vunpack.i.l.bf16 %v7582_v5  ;;  %vm8654_vm14 = vmmov %vm8653_vm9 }
 0x855   : > { %3874 = vrot.lane.b32.xlu1 %v7388_v28, %s8624_s25 }
 0x856   : > { %4874 = vrot.lane.b32.xlu0 %v4819_v44, %s8529_s13  ;;  %v4256_v24 = vsel %vm8649_vm4, %v5854_v27, %v7838_v18 }
 0x857   : > { %5209 = vmatpush1.bf16.msra.mxu1 %v4252_v19  ;;  %v7964_v35 = vpop.permute.xlu1 %5892 }
 0x858   : > { %v5894_v49 = vunpack.i.l.bf16 %v7964_v35  ;;  %v4585_v50 = vpop.permute.xlu0 %4584  ;;  %5210 = vmatprep.subr.bf16.mxu1 %v4255_v37  ;;  %v8008_v37 = vld [vmem:[%s8438_s9 + $0x10] sm:$0xff] }
 0x859   : > { %v7972_v57 = vsel %vm8645_vm12, %v4585_v50, %v4587_v9  ;;  %5947 = vrot.lane.b32.xlu1 %v8614_v29, %s8624_s25  ;;  %vm8657_vm12 = vmmov %vm8656_vm10 }
 0x85a   : > { %4872 = vrot.lane.b32.xlu0 %v4818_v1, %s8529_s13  ;;  %v7983_v3 = vsel %vm8648_vm11, %v4587_v9, %v5894_v49  ;;  %v5855_v9 = vunpack.i.h.bf16 %v7582_v5  ;;  %v5494_v49 = vcombine.low %v7662_v60, %v7662_v60  ;;  %v4822_v1 = vsel %vm839_vm3, %v7411_v6, 0  ;;  %vm8661_vm11 = vmmov %vm8656_vm10 }
 0x85b   : > { %5211 = vmatpush1.bf16.msra.mxu1 %v4254_v63  ;;  %v3719_v26 = vpop.permute.xlu1 %3718  ;;  %v5497_v63 = vcombine.high %v8008_v37, %v8008_v37 }
 0x85c   : > { %v7989_v36 = vpop.permute.xlu0 %4590  ;;  %5212 = vmatprep.subr.bf16.mxu1 %v4257_v45  ;;  %v4258_v18 = vsel %vm8652_vm13, %v5855_v9, %v7882_v51 }
 0x85d   : > { %5952 = vrot.lane.b32.xlu1 %v8614_v29, %s8529_s13 }
 0x85e   : > { %3882 = vrot.lane.b32.xlu0 %v7411_v6, %s8624_s25 }
 0x85f   : > { %5213 = vmatpush1.bf16.msra.mxu1 %v4256_v24  ;;  %v5898_v41 = vpop.permute.xlu1 %5897  ;;  %v3691_v24 = vsel %vm493_vm7, %v7491_v13, 0  ;;  %vm8658_vm7 = vmmov %vm8646_vm0 }
 0x860   : > { %v4243_v44 = vpop.permute.xlu0 %4242  ;;  %v5899_v5 = vunpack.i.l.bf16 %v5898_v41  ;;  %vm8659_vm0 = vmmov %vm8653_vm9 }
 0x861   : > { %3880 = vrot.lane.b32.xlu1 %v7408_v20, %s8624_s25  ;;  %v4259_v19 = vsel %vm8651_vm6, %v7882_v51, %v4243_v44  ;;  %vm8660_vm2 = vmmov %vm8659_vm0 }
 0x862   : > { %4878 = vrot.lane.b32.xlu0 %v4821_v22, %s8529_s13  ;;  %5214 = vmatprep.subr.bf16.mxu1 %v4259_v19  ;;  %v3764_v60 = vsel %vm8654_vm14, %v5899_v5, %v3719_v26  ;;  %vm8662_vm1 = vmmov %vm8658_vm7  ;;  %vm8668_vm14 = vcmask 1039360  }
 0x863   : > { %5215 = vmatpush1.bf16.msra.mxu1 %v4258_v18  ;;  %v5903_v8 = vpop.permute.xlu1 %5902  ;;  %vm8663_vm4 = vmmov %vm8659_vm0 }
 0x864   : > { %v3721_v50 = vpop.permute.xlu0 %3720  ;;  %5225 = vmatprep.subr.bf16.mxu1 %v7351_v38  ;;  %v5904_v45 = vunpack.i.l.bf16 %v5903_v8  ;;  %vm8664_vm8 = vmmov %vm8659_vm0 }
 0x865   : > { %4880 = vrot.lane.b32.xlu1 %v4822_v1, %s8529_s13  ;;  %v3765_v51 = vsel %vm8653_vm9, %v3719_v26, %v3721_v50  ;;  %v5905_v26 = vunpack.i.h.bf16 %v5903_v8  ;;  %vm8665_vm6 = vmmov %vm8656_vm10 }
 0x866   : > { %3888 = vrot.lane.b32.xlu0 %v7431_v42, %s8624_s25  ;;  %5143 = vmatprep.subr.bf16.mxu0 %v3765_v51  ;;  %vm8666_vm13 = vmmov %vm8665_vm6 }
 0x867   : > { %5217 = vmatmul.mubr.bf16.vlgmr.msra.gmra.mrb[28].mxu1 %v5494_v49  ;;  %v3725_v38 = vpop.permute.xlu1 %3724  ;;  %5144 = vmatpush1.bf16.msra.mxu0 %v3764_v60  ;;  %vm8667_vm9 = vmmov %vm8665_vm6 }
 0x868   : > { %5226 = vmatpush1.bf16.msra.mxu1 %v7349_v33  ;;  %v4695_v27 = vpop.permute.xlu0 %4694  ;;  %5257 = vmatprep.mubr.bf16.mxu1 %v5497_v63 }
 0x869   : > { %5227 = vmatprep.subr.bf16.mxu1 %v7371_v61  ;;  %3886 = vrot.lane.b32.xlu1 %v7428_v31, %s8624_s25  ;;  %v8034_v9 = vsel %vm8655_vm15, %v4695_v27, %v5904_v45  ;;  %vm8669_vm15 = vmmov %vm8662_vm1 }
 0x86a   : > { %3762 = vrot.lane.b32.xlu0 %v3691_v24, %s6082_s28 }
 0x86b   : > { %v4701_v44 = vpop.permute.xlu1 %4700 }
 0x86c   : > { %5228 = vmatpush1.bf16.msra.mxu1 %v7368_v12  ;;  %v4693_v33 = vpop.permute.xlu0 %4692  ;;  %v8039_v22 = vsel %vm8656_vm10, %v4701_v44, %v5905_v26  ;;  %v5900_v12 = vunpack.i.h.bf16 %v5898_v41  ;;  %vm8670_vm10 = vmmov %vm8659_vm0 }
 0x86d   : > { %v8042_v61 = vsel %vm8657_vm12, %v4693_v33, %v4695_v27  ;;  %5229 = vmatprep.subr.bf16.mxu1 %v7391_v34  ;;  %5957 = vrot.lane.b32.xlu1 %v8614_v29, %s8624_s25  ;;  %v4824_v34 = vsel %vm8658_vm7, %v7428_v31, 0  ;;  %v4831_v33 = vsel %vm839_vm3, %v7471_v53, 0  ;;  %vm8671_vm12 = vmmov %vm8659_vm0 }
 0x86e   : > { %4886 = vrot.lane.b32.xlu0 %v4825_v21, %s8529_s13  ;;  %v3766_v8 = vsel %vm8660_vm2, %v5900_v12, %v3725_v38  ;;  %vm8672_vm7 = vmmov %vm8668_vm14 }
 0x86f   : > { %v3731_v19 = vpop.permute.xlu1 %3730  ;;  %vm8674_vm2 = vmmov %vm8665_vm6 }
 0x870   : > { %5230 = vmatpush1.bf16.msra.mxu1 %v7388_v28  ;;  %v3727_v18 = vpop.permute.xlu0 %3726 }
 0x871   : > { %5231 = vmatprep.subr.bf16.mxu1 %v7411_v6  ;;  %5962 = vrot.lane.b32.xlu1 %v8614_v29, %s8529_s13  ;;  %v3767_v5 = vsel %vm8659_vm0, %v3725_v38, %v3727_v18  ;;  %vm8673_vm0 = vmmov %vm8672_vm7 }
 0x872   : > { %4884 = vrot.lane.b32.xlu0 %v4824_v34, %s8529_s13  ;;  %5145 = vmatprep.subr.bf16.mxu0 %v3767_v5 }
 0x873   : > { %v5908_v41 = vpop.permute.xlu1 %5907  ;;  %5146 = vmatpush1.bf16.msra.mxu0 %v3766_v8 }
 0x874   : > { %5232 = vmatpush1.bf16.msra.mxu1 %v7408_v20  ;;  %v4699_v28 = vpop.permute.xlu0 %4698  ;;  %v5909_v49 = vunpack.i.l.bf16 %v5908_v41  ;;  %v4828_v20 = vsel %vm839_vm3, %v7451_v10, 0  ;;  %v5910_v18 = vunpack.i.h.bf16 %v5908_v41 }
 0x875   : > { %v8063_v6 = vsel %vm8661_vm11, %v4699_v28, %v4701_v44  ;;  %5233 = vmatprep.subr.bf16.mxu1 %v7431_v42  ;;  %3892 = vrot.lane.b32.xlu1 %v7448_v7, %s8624_s25  ;;  %v4827_v42 = vsel %vm8662_vm1, %v7448_v7, 0  ;;  %v5860_v28 = vunpack.i.h.bf16 %v7599_v11  ;;  %vm8675_vm11 = vmmov %vm8673_vm0 }
 0x876   : > { %3894 = vrot.lane.b32.xlu0 %v7451_v10, %s8624_s25  ;;  %vm8676_vm1 = vmmov %vm8673_vm0 }
 0x877   : > { %v5913_v50 = vpop.permute.xlu1 %5912 }
 0x878   : > { %5234 = vmatpush1.bf16.msra.mxu1 %v7428_v31  ;;  %v3733_v1 = vpop.permute.xlu0 %3732  ;;  %v3768_v31 = vsel %vm8664_vm8, %v5909_v49, %v3731_v19  ;;  %v5914_v51 = vunpack.i.l.bf16 %v5913_v50  ;;  %v5915_v38 = vunpack.i.h.bf16 %v5913_v50  ;;  %v4428_v49 = vsel %vm8672_vm7, %v7667_v2, %v7687_v32  ;;  %vm8677_vm8 = vmmov %vm8663_vm4 }
 0x879   : > { %5235 = vmatprep.subr.bf16.mxu1 %v7451_v10  ;;  %4892 = vrot.lane.b32.xlu1 %v4828_v20, %s8529_s13  ;;  %v3769_v63 = vsel %vm8663_vm4, %v3731_v19, %v3733_v1  ;;  %v5859_v19 = vunpack.i.l.bf16 %v7599_v11  ;;  %v5864_v11 = vunpack.i.l.bf16 %v7596_v14  ;;  %v4430_v2 = vsel %vm8675_vm11, %v7707_v17, %v7689_v16  ;;  %vm8686_vm7 = vmmov %vm8673_vm0 }
 0x87a   : > { %4890 = vrot.lane.b32.xlu0 %v4827_v42, %s8529_s13  ;;  %5147 = vmatprep.subr.bf16.mxu0 %v3769_v63 }
 0x87b   : > { %v3737_v60 = vpop.permute.xlu1 %3736  ;;  %5148 = vmatpush1.bf16.msra.mxu0 %v3768_v31  ;;  %v4429_v5 = vsel %vm8668_vm14, %v7687_v32, %v5859_v19  ;;  %v4433_v31 = vsel %vm8676_vm1, %v7736_v54, %v5864_v11  ;;  %vm8682_vm14 = vmmov %vm8673_vm0 }
 0x87c   : > { %5236 = vmatpush1.bf16.msra.mxu1 %v7448_v7  ;;  %v4707_v45 = vpop.permute.xlu0 %4706  ;;  %v8098_v7 = vld [vmem:[%s8438_s9] sm:$0xff]  ;;  %v3770_v41 = vsel %vm8671_vm12, %v5910_v18, %v3737_v60  ;;  %vm8685_vm12 = vmmov %vm8674_vm2 }
 0x87d   : > { %5237 = vmatprep.subr.bf16.mxu1 %v7471_v53  ;;  %3898 = vrot.lane.b32.xlu1 %v7468_v48, %s8624_s25  ;;  %v8087_v10 = vsel %vm8665_vm6, %v4707_v45, %v5914_v51  ;;  %v5493_v21 = vcombine.high %v8098_v7, %v8098_v7  ;;  %v4834_v51 = vsel %vm839_vm3, %v7491_v13, 0  ;;  %vm8678_vm6 = vmmov %vm8673_vm0 }
 0x87e   : > { %3900 = vrot.lane.b32.xlu0 %v7471_v53, %s8624_s25  ;;  %v4830_v53 = vsel %vm8669_vm15, %v7468_v48, 0  ;;  %vm8679_vm3 = vmmov %vm8673_vm0 }
 0x87f   : > { %v4713_v27 = vpop.permute.xlu1 %4712  ;;  %5175 = vmatprep.mubr.bf16.mxu0 %v5493_v21  ;;  %v4434_v21 = vsel %vm8682_vm14, %v7757_v40, %v7782_v30  ;;  %v4436_v40 = vsel %vm8686_vm7, %v7807_v23, %v7819_v43  ;;  %vm8691_vm1 = vmmov %vm8673_vm0  ;;  %vm8703_vm14 = vcmask 924672  }
 0x880   : > { %5238 = vmatpush1.bf16.msra.mxu1 %v7468_v48  ;;  %v4705_v24 = vpop.permute.xlu0 %4704  ;;  %v8093_v26 = vsel %vm8666_vm13, %v4713_v27, %v5915_v38  ;;  %v4431_v48 = vsel %vm8673_vm0, %v7689_v16, %v5860_v28  ;;  %v4432_v38 = vsel %vm8678_vm6, %v7726_v46, %v7736_v54  ;;  %vm8680_vm13 = vmmov %vm8669_vm15  ;;  %v5869_v54 = vunpack.i.l.bf16 %v7614_v15 }
 0x881   : > { %v8101_v44 = vsel %vm8667_vm9, %v4705_v24, %v4707_v45  ;;  %5239 = vmatprep.subr.bf16.mxu1 %v7491_v13  ;;  %5967 = vrot.lane.b32.xlu1 %v8614_v29, %s8624_s25  ;;  %v5865_v45 = vunpack.i.h.bf16 %v7596_v14  ;;  %v4833_v24 = vsel %vm8680_vm13, %v7488_v62, 0  ;;  %vm8681_vm9 = vmmov %vm8674_vm2 }
 0x882   : > { %4898 = vrot.lane.b32.xlu0 %v4831_v33, %s8529_s13  ;;  %vm8683_vm15 = vmmov %vm8673_vm0 }
 0x883   : > { %v3743_v12 = vpop.permute.xlu1 %3742  ;;  %v4435_v14 = vsel %vm8679_vm3, %v7782_v30, %v5865_v45  ;;  %v4437_v52 = vsel %vm8683_vm15, %v7819_v43, %v5869_v54  ;;  %vm8696_vm6 = vmmov %vm8673_vm0  ;;  %v8210_v45 = vld [vmem:[%s8438_s9 + $0x18] sm:$0xff]  ;;  %v8702_v54 = vld [vmem:[#allocation8_spill] sm:$0xff] }
 0x884   : > { %5240 = vmatpush1.bf16.msra.mxu1 %v7488_v62  ;;  %v3739_v34 = vpop.permute.xlu0 %3738  ;;  %vm8705_vm15 = vmmov %vm8703_vm14 }
 0x885   : > { %5241 = vmatprep.subr.bf16.mxu1 %v4429_v5  ;;  %4900 = vrot.lane.b32.xlu1 %v8614_v29, %s8529_s13  ;;  %v3771_v8 = vsel %vm8670_vm10, %v3737_v60, %v3739_v34  ;;  %vm8684_vm10 = vmmov %vm8674_vm2  ;;  %v5870_v34 = vunpack.i.h.bf16 %v7614_v15  ;;  %v8690_v15 = vld [vmem:[#allocation12_spill] sm:$0xff] }
 0x886   : > { %4896 = vrot.lane.b32.xlu0 %v4830_v53, %s8529_s13  ;;  %5149 = vmatprep.subr.bf16.mxu0 %v3771_v8 }
 0x887   : > { %v5918_v50 = vpop.permute.xlu1 %5917  ;;  %5150 = vmatpush1.bf16.msra.mxu0 %v3770_v41  ;;  %v4439_v8 = vsel %vm8673_vm0, %v7821_v39, %v5870_v34  ;;  %v8688_v41 = vld [vmem:[#allocation4_spill] sm:$0xff] }
 0x888   : > { %5242 = vmatpush1.bf16.msra.mxu1 %v4428_v49  ;;  %v4711_v1 = vpop.permute.xlu0 %4710  ;;  %v5919_v42 = vunpack.i.l.bf16 %v5918_v50  ;;  %v5920_v5 = vunpack.i.h.bf16 %v5918_v50  ;;  %v5874_v49 = vunpack.i.l.bf16 %v8688_v41  ;;  %v8692_v50 = vld [vmem:[#allocation14_spill] sm:$0xff] }
 0x889   : > { %v8131_v20 = vsel %vm8674_vm2, %v4711_v1, %v4713_v27  ;;  %5243 = vmatprep.subr.bf16.mxu1 %v4431_v48  ;;  %3904 = vrot.lane.b32.xlu1 %v7488_v62, %s8624_s25  ;;  %vm8687_vm2 = vmmov %vm8663_vm4  ;;  %v4438_v48 = vsel %vm8691_vm1, %v8690_v15, %v7821_v39  ;;  %v8711_v15 = vld [vmem:[#allocation11_spill] sm:$0xff] }
 0x88a   : > { %3906 = vrot.lane.b32.xlu0 %v7491_v13, %s8624_s25  ;;  %v3772_v16 = vsel %vm8677_vm8, %v5919_v42, %v3743_v12  ;;  %v5105_v13 = vld [vmem:[%s8439_s10] sm:$0xff]  ;;  %vm8689_vm11 = vmmov %vm8687_vm2  ;;  %v5875_v42 = vunpack.i.h.bf16 %v8688_v41 }
 0x88b   : > { %v5923_v32 = vpop.permute.xlu1 %5922  ;;  %vm8695_vm8 = vmmov %vm8673_vm0 }
 0x88c   : > { %5244 = vmatpush1.bf16.msra.mxu1 %v4430_v2  ;;  %v3745_v63 = vpop.permute.xlu0 %3744  ;;  %v5924_v17 = vunpack.i.l.bf16 %v5923_v32  ;;  %v5925_v33 = vunpack.i.h.bf16 %v5923_v32  ;;  %v8694_v32 = vld [vmem:[#allocation13_spill] sm:$0xff]  ;;  %vm8697_vm3 = vmmov %vm8687_vm2 }
 0x88d   : > { %5245 = vmatprep.subr.bf16.mxu1 %v4433_v31  ;;  %4904 = vrot.lane.b32.xlu1 %v4834_v51, %s8529_s13  ;;  %v3773_v60 = vsel %vm8663_vm4, %v3743_v12, %v3745_v63  ;;  %vm8693_vm4 = vmmov %vm8673_vm0  ;;  %v4440_v63 = vsel %vm8695_vm8, %v8694_v32, %v8692_v50 }
 0x88e   : > { %4906 = vrot.lane.b32.xlu0 %v8614_v29, %s8529_s13  ;;  %5151 = vmatprep.subr.bf16.mxu0 %v3773_v60  ;;  %v4441_v11 = vsel %vm8693_vm4, %v8692_v50, %v5874_v49  ;;  %vm8699_vm13 = vmmov %vm8687_vm2  ;;  %vm8717_vm4 = vcmask 916480  }
 0x88f   : > { %v3749_v56 = vpop.permute.xlu1 %3748  ;;  %5152 = vmatpush1.bf16.msra.mxu0 %v3772_v16  ;;  %v8698_v16 = vld [vmem:[#allocation6_spill] sm:$0xff]  ;;  %vm8718_vm8 = vmmov %vm8717_vm4 }
 0x890   : > { %5246 = vmatpush1.bf16.msra.mxu1 %v4432_v38  ;;  %v4719_v27 = vpop.permute.xlu0 %4718  ;;  %v3774_v1 = vsel %vm8689_vm11, %v5920_v5, %v3749_v56 }
 0x891   : > { %5247 = vmatprep.subr.bf16.mxu1 %v4435_v14  ;;  %4902 = vrot.lane.b32.xlu1 %v4833_v24, %s8529_s13  ;;  %v8165_v46 = vsel %vm8681_vm9, %v4719_v27, %v5924_v17  ;;  %v5879_v17 = vunpack.i.l.bf16 %v8698_v16  ;;  %vm8701_vm9 = vmmov %vm8673_vm0  ;;  %v5496_v14 = vcombine.low %v8008_v37, %v8008_v37 }
 0x892   : > { %5108 = vperm.xlu0 %5710, %v5105_v13  }
 0x893   : > { %v8171_v19 = vpop.permute.xlu1 %4724 }
 0x894   : > { %5248 = vmatpush1.bf16.msra.mxu1 %v4434_v21  ;;  %v4717_v12 = vpop.permute.xlu0 %4716  ;;  %v8177_v62 = vsel %vm8684_vm10, %v8171_v19, %v5925_v33  ;;  %v4597_v33 = vsel %vm8703_vm14, %v8702_v54, %v5879_v17  ;;  %v5499_v21 = vcombine.high %v8210_v45, %v8210_v45  ;;  %vm8707_vm10 = vmmov %vm8703_vm14 }
 0x895   : > { %v8180_v18 = vsel %vm8685_vm12, %v4717_v12, %v4719_v27  ;;  %5249 = vmatprep.subr.bf16.mxu1 %v4437_v52  ;;  %v5880_v12 = vunpack.i.h.bf16 %v8698_v16  ;;  %v8704_v52 = vld [vmem:[#allocation7_spill] sm:$0xff]  ;;  %vm8710_vm12 = vmmov %vm8707_vm10 }
 0x896   : > { %v4596_v34 = vsel %vm8705_vm15, %v8704_v52, %v8702_v54  ;;  %vm8712_vm7 = vmmov %vm8707_vm10  ;;  %vm8723_vm15 = vcmask 908288  }
 0x897   : > { %v3755_v30 = vpop.permute.xlu1 %3754  ;;  %vm8713_vm0 = vmmov %vm8712_vm7 }
 0x898   : > { %5250 = vmatpush1.bf16.msra.mxu1 %v4436_v40  ;;  %v3751_v53 = vpop.permute.xlu0 %3750  ;;  %vm8715_vm11 = vmmov %vm8713_vm0 }
 0x899   : > { %5251 = vmatprep.subr.bf16.mxu1 %v4439_v8  ;;  %v3775_v28 = vsel %vm8687_vm2, %v3749_v56, %v3751_v53  ;;  %v8700_v56 = vld [vmem:[#allocation15_spill] sm:$0xff]  ;;  %v8708_v53 = vld [vmem:[#allocation5_spill] sm:$0xff]  ;;  %vm8714_vm2 = vmmov %vm8713_vm0 }
 0x89a   : > { %5153 = vmatprep.subr.bf16.mxu0 %v3775_v28  ;;  %v5884_v8 = vunpack.i.l.bf16 %v8708_v53  ;;  %v8709_v28 = vld [vmem:[#allocation10_spill] sm:$0xff]  ;;  %v5885_v50 = vunpack.i.h.bf16 %v8708_v53  ;;  %vm8716_vm1 = vmmov %vm8713_vm0 }
 0x89b   : > { %v8194_v23 = vpop.permute.xlu1 %5927  ;;  %5154 = vmatpush1.bf16.msra.mxu0 %v3774_v1  ;;  %vm8722_vm14 = vmmov %vm8717_vm4 }
 0x89c   : > { %5252 = vmatpush1.bf16.msra.mxu1 %v4438_v48  ;;  %v8196_v43 = vpop.permute.xlu0 %4722  ;;  %v5929_v2 = vunpack.i.l.bf16 %v8194_v23  ;;  %v4601_v48 = vsel %vm8712_vm7, %v8711_v15, %v5884_v8  ;;  %v4603_v32 = vsel %vm8714_vm2, %v7898_v58, %v5885_v50 }
 0x89d   : > { %5253 = vmatprep.subr.bf16.mxu1 %v4441_v11  ;;  %v4600_v11 = vsel %vm8713_vm0, %v7888_v25, %v8711_v15 }
 0x89e   : > { %v3776_v38 = vsel %vm8699_vm13, %v5929_v2, %v3755_v30  ;;  %vm8720_vm13 = vmmov %vm8717_vm4 }
 0x89f   : > { %v4425_v31 = vpop.permute.xlu1 %4424 }
 0x8a0   : > { %5254 = vmatpush1.bf16.msra.mxu1 %v4440_v63  ;;  %v3757_v39 = vpop.permute.xlu0 %3756  ;;  %v4443_v51 = vsel %vm8696_vm6, %v4425_v31, %v5875_v42  ;;  %v4442_v13 = vsel %vm8701_vm9, %v8700_v56, %v4425_v31  ;;  %vm8719_vm6 = vmmov %vm8697_vm3 }
 0x8a1   : > { %5255 = vmatprep.subr.bf16.mxu1 %v4443_v51  ;;  %v3777_v60 = vsel %vm8697_vm3, %v3755_v30, %v3757_v39  ;;  %v8706_v30 = vld [vmem:[#allocation9_spill] sm:$0xff]  ;;  %vm8721_vm9 = vmmov %vm8717_vm4 }
 0x8a2   : > { %5155 = vmatprep.subr.bf16.mxu0 %v3777_v60  ;;  %v4599_v5 = vsel %vm8707_vm10, %v8706_v30, %v5880_v12  ;;  %v4598_v41 = vsel %vm8710_vm12, %v8709_v28, %v8706_v30  ;;  %vm8724_vm10 = vmmov %vm8723_vm15 }
 0x8a3   : > { %v8216_v27 = vpop.permute.xlu1 %5932  ;;  %5156 = vmatpush1.bf16.msra.mxu0 %v3776_v38  ;;  %vm8725_vm12 = vmmov %vm8724_vm10 }
 0x8a4   : > { %5256 = vmatpush1.bf16.msra.mxu1 %v4442_v13  ;;  %v8220_v24 = vpop.permute.xlu0 %4730  ;;  %v5935_v13 = vunpack.i.h.bf16 %v8216_v27  ;;  %vm8726_vm7 = vmmov %vm8724_vm10 }
 0x8a5   : > { %5266 = vmatprep.subr.bf16.mxu1 %v4597_v33  ;;  %vm8727_vm0 = vmmov %vm8726_vm7 }
 0x8a6   : > { %vm8728_vm2 = vmmov %vm8727_vm0 }
 0x8a7   : > { %5258 = vmatmul.mubr.bf16.vlgmr.msra.gmra.mrb[28].mxu1 %v5496_v14  ;;  %v8230_v40 = vpop.permute.xlu1 %3760 }
 0x8a8   : > { %5267 = vmatpush1.bf16.msra.mxu1 %v4596_v34  ;;  %v8232_v37 = vpop.permute.xlu0 %4728  ;;  %5298 = vmatprep.mubr.bf16.mxu1 %v5499_v21  ;;  %v5498_v34 = vcombine.low %v8210_v45, %v8210_v45 }
 0x8a9   : > { %5268 = vmatprep.subr.bf16.mxu1 %v4599_v5 }
 0x8ab   : > { %v8240_v49 = vpop.permute.xlu1 %4736 }
 0x8ac   : > { %5269 = vmatpush1.bf16.msra.mxu1 %v4598_v41  ;;  %v8242_v1 = vpop.permute.xlu0 %4734  ;;  %v4755_v33 = vsel %vm8721_vm9, %v8240_v49, %v5935_v13  ;;  %vm8736_vm9 = vmmov %vm8727_vm0 }
 0x8ad   : > { %5270 = vmatprep.subr.bf16.mxu1 %v4601_v48  ;;  %v4754_v21 = vsel %vm8722_vm14, %v8242_v1, %v8240_v49  ;;  %vm8737_vm14 = vmmov %vm8727_vm0 }
 0x8af   : > { %v8250_v42 = vpop.permute.xlu1 %3862 }
 0x8b0   : > { %5271 = vmatpush1.bf16.msra.mxu1 %v4600_v11  ;;  %v8252_v2 = vpop.permute.xlu0 %3864 }
 0x8b1   : > { %5272 = vmatprep.subr.bf16.mxu1 %v4603_v32  ;;  %v3909_v14 = vsel %vm555_vm5, %v8250_v42, %v8252_v2 }
 0x8b3   : > { %v8256_v63 = vpop.permute.xlu1 %5937 }
 0x8b4   : > { %5273 = vmatpush1.bf16.msra.mxu1 %v7906_v47  ;;  %v8259_v31 = vpop.permute.xlu0 %4862  ;;  %v5895_v47 = vunpack.i.h.bf16 %v7964_v35 }
 0x8b5   : > { %5274 = vmatprep.subr.bf16.mxu1 %v7932_v59 }
 0x8b7   : > { %v8262_v39 = vpop.permute.xlu1 %5942 }
 0x8b8   : > { %5275 = vmatpush1.bf16.msra.mxu1 %v7936_v0  ;;  %v8265_v25 = vpop.permute.xlu0 %4860  ;;  %v5944_v54 = vunpack.i.l.bf16 %v8262_v39  ;;  %v5945_v5 = vunpack.i.h.bf16 %v8262_v39 }
 0x8b9   : > { %5276 = vmatprep.subr.bf16.mxu1 %v7943_v4  ;;  %v4908_v45 = vsel %vm8724_vm10, %v8265_v25, %v8259_v31 }
 0x8ba   : > { %v4909_v30 = vsel %vm8723_vm15, %v8259_v31, %v5944_v54  ;;  %vm8738_vm15 = vmmov %vm8727_vm0 }
 0x8bb   : > { %v8268_v51 = vpop.permute.xlu1 %3868 }
 0x8bc   : > { %5277 = vmatpush1.bf16.msra.mxu1 %v7954_v55  ;;  %v3871_v58 = vpop.permute.xlu0 %3870 }
 0x8bd   : > { %5278 = vmatprep.subr.bf16.mxu1 %v7983_v3  ;;  %v3911_v52 = vsel %vm555_vm5, %v8268_v51, %v3871_v58 }
 0x8bf   : > { %v4593_v60 = vpop.permute.xlu1 %4592 }
 0x8c0   : > { %5279 = vmatpush1.bf16.msra.mxu1 %v7972_v57  ;;  %v8274_v59 = vpop.permute.xlu0 %4866  ;;  %v4611_v0 = vsel %vm8715_vm11, %v4593_v60, %v5895_v47  ;;  %v4610_v4 = vsel %vm8716_vm1, %v7989_v36, %v4593_v60  ;;  %vm8729_vm11 = vmmov %vm8727_vm0 }
 0x8c1   : > { %5280 = vmatprep.subr.bf16.mxu1 %v4611_v0  ;;  %vm8730_vm1 = vmmov %vm8727_vm0 }
 0x8c3   : > { %v8279_v16 = vpop.permute.xlu1 %4868 }
 0x8c4   : > { %5281 = vmatpush1.bf16.msra.mxu1 %v4610_v4  ;;  %v8281_v55 = vpop.permute.xlu0 %3876  ;;  %v4911_v15 = vsel %vm8725_vm12, %v8279_v16, %v5945_v5  ;;  %v4910_v50 = vsel %vm8726_vm7, %v8274_v59, %v8279_v16 }
 0x8c5   : > { %5282 = vmatprep.subr.bf16.mxu1 %v8034_v9 }
 0x8c7   : > { %v8284_v3 = vpop.permute.xlu1 %3874 }
 0x8c8   : > { %5283 = vmatpush1.bf16.msra.mxu1 %v8042_v61  ;;  %v8287_v35 = vpop.permute.xlu0 %4874  ;;  %v3913_v41 = vsel %vm555_vm5, %v8284_v3, %v8281_v55 }
 0x8c9   : > { %5284 = vmatprep.subr.bf16.mxu1 %v8039_v22 }
 0x8cb   : > { %v8290_v57 = vpop.permute.xlu1 %5947 }
 0x8cc   : > { %5285 = vmatpush1.bf16.msra.mxu1 %v8063_v6  ;;  %v8293_v36 = vpop.permute.xlu0 %4872  ;;  %v5949_v8 = vunpack.i.l.bf16 %v8290_v57  ;;  %v5950_v2 = vunpack.i.h.bf16 %v8290_v57 }
 0x8cd   : > { %5286 = vmatprep.subr.bf16.mxu1 %v8087_v10  ;;  %v5934_v10 = vunpack.i.l.bf16 %v8216_v27  ;;  %v4912_v25 = vsel %vm8728_vm2, %v8293_v36, %v8287_v35 }
 0x8ce   : > { %v3912_v48 = vsel %vm555_vm5, %v5949_v8, %v8284_v3 }
 0x8cf   : > { %v8296_v17 = vpop.permute.xlu1 %5952  ;;  %v4753_v56 = vsel %vm8718_vm8, %v8220_v24, %v5934_v10  ;;  %vm8732_vm8 = vmmov %vm8727_vm0 }
 0x8d0   : > { %5287 = vmatpush1.bf16.msra.mxu1 %v8101_v44  ;;  %v8299_v9 = vpop.permute.xlu0 %3882  ;;  %v5954_v49 = vunpack.i.l.bf16 %v8296_v17 }
 0x8d1   : > { %5288 = vmatprep.subr.bf16.mxu1 %v8093_v26  ;;  %v4750_v26 = vsel %vm8717_vm4, %v8196_v43, %v8171_v19  ;;  %v5939_v19 = vunpack.i.l.bf16 %v8256_v63  ;;  %vm8731_vm4 = vmmov %vm8727_vm0 }
 0x8d3   : > { %v8302_v61 = vpop.permute.xlu1 %3880 }
 0x8d4   : > { %5289 = vmatpush1.bf16.msra.mxu1 %v8131_v20  ;;  %v8305_v22 = vpop.permute.xlu0 %4878  ;;  %v5930_v20 = vunpack.i.h.bf16 %v8194_v23  ;;  %v4752_v23 = vsel %vm8720_vm13, %v8232_v37, %v8220_v24  ;;  %v3908_v24 = vsel %vm555_vm5, %v5939_v19, %v8250_v42  ;;  %v3915_v42 = vsel %vm555_vm5, %v8302_v61, %v8299_v9  ;;  %vm8735_vm13 = vmmov %vm8727_vm0 }
 0x8d5   : > { %5290 = vmatprep.subr.bf16.mxu1 %v8165_v46  ;;  %v3914_v31 = vsel %vm555_vm5, %v5950_v2, %v8302_v61  ;;  %v5492_v19 = vcombine.low %v8098_v7, %v8098_v7 }
 0x8d7   : > { %v8308_v6 = vpop.permute.xlu1 %4880 }
 0x8d8   : > { %5291 = vmatpush1.bf16.msra.mxu1 %v8180_v18  ;;  %v8312_v38 = vpop.permute.xlu0 %3888  ;;  %v4914_v4 = vsel %vm8730_vm1, %v8305_v22, %v8308_v6 }
 0x8d9   : > { %5292 = vmatprep.subr.bf16.mxu1 %v8177_v62  ;;  %v3778_v62 = vsel %vm8697_vm3, %v5930_v20, %v8230_v40  ;;  %vm8734_vm3 = vmmov %vm8727_vm0 }
 0x8db   : > { %v8318_v44 = vpop.permute.xlu1 %3886 }
 0x8dc   : > { %5293 = vmatpush1.bf16.msra.mxu1 %v4750_v26  ;;  %v3763_v46 = vpop.permute.xlu0 %3762  ;;  %v3917_v58 = vsel %vm555_vm5, %v8318_v44, %v8312_v38 }
 0x8dd   : > { %5294 = vmatprep.subr.bf16.mxu1 %v4753_v56  ;;  %v3779_v18 = vsel %vm8719_vm6, %v8230_v40, %v3763_v46  ;;  %v5940_v40 = vunpack.i.h.bf16 %v8256_v63  ;;  %v5955_v63 = vunpack.i.h.bf16 %v8296_v17  ;;  %vm8733_vm6 = vmmov %vm8727_vm0 }
 0x8de   : > { %5157 = vmatprep.subr.bf16.mxu0 %v3779_v18 }
 0x8df   : > { %v8332_v43 = vpop.permute.xlu1 %5957  ;;  %5158 = vmatpush1.bf16.msra.mxu0 %v3778_v62  ;;  %v3910_v53 = vsel %vm555_vm5, %v5940_v40, %v8268_v51  ;;  %v4915_v59 = vsel %vm8729_vm11, %v8308_v6, %v5955_v63 }
 0x8e0   : > { %5295 = vmatpush1.bf16.msra.mxu1 %v4752_v23  ;;  %v8338_v27 = vpop.permute.xlu0 %4886  ;;  %5159 = vmatprep.subr.bf16.mxu0 %v3909_v14  ;;  %v5959_v39 = vunpack.i.l.bf16 %v8332_v43  ;;  %v5960_v3 = vunpack.i.h.bf16 %v8332_v43 }
 0x8e1   : > { %5296 = vmatprep.subr.bf16.mxu1 %v4755_v33 }
 0x8e2   : > { %v3916_v0 = vsel %vm555_vm5, %v5959_v39, %v8318_v44 }
 0x8e3   : > { %v8347_v12 = vpop.permute.xlu1 %5962  ;;  %5160 = vmatpush1.bf16.msra.mxu0 %v3908_v24  ;;  %v6067_v24 = vld [vmem:[%s8438_s9 + $0x20] ss:$0 sps:$4 sm:$0xff]  }
 0x8e4   : > { %5297 = vmatpush1.bf16.msra.mxu1 %v4754_v21  ;;  %v4885_v37 = vpop.permute.xlu0 %4884  ;;  %5161 = vmatprep.subr.bf16.mxu0 %v3911_v52  ;;  %v5964_v47 = vunpack.i.l.bf16 %v8347_v12  ;;  %v5965_v36 = vunpack.i.h.bf16 %v8347_v12 }
 0x8e5   : > { %5307 = vmatprep.subr.bf16.mxu1 %v4909_v30  ;;  %v4916_v61 = vsel %vm8732_vm8, %v4885_v37, %v8338_v27 }
 0x8e6   : > { %v4917_v57 = vsel %vm8731_vm4, %v8338_v27, %v5964_v47 }
 0x8e7   : > { %v3893_v28 = vpop.permute.xlu1 %3892  ;;  %5162 = vmatpush1.bf16.msra.mxu0 %v3910_v53  ;;  %5299 = vmatmul.mubr.bf16.vlgmr.msra.gmra.mrb[28].mxu1 %v5498_v34 }
 0x8e8   : > { %5308 = vmatpush1.bf16.msra.mxu1 %v4908_v45  ;;  %v3895_v1 = vpop.permute.xlu0 %3894  ;;  %5163 = vmatprep.subr.bf16.mxu0 %v3913_v41  ;;  %v3918_v17 = vsel %vm555_vm5, %v5960_v3, %v3893_v28 }
 0x8e9   : > { %5309 = vmatprep.subr.bf16.mxu1 %v4911_v15  ;;  %5339 = vmatprep.mubr.bf16.mxu1 %v8614_v29  ;;  %v4913_v29 = vsel %vm8727_vm0, %v8287_v35, %v5954_v49  ;;  %v3919_v55 = vsel %vm555_vm5, %v3893_v28, %v3895_v1 }
 0x8eb   : > { %v4893_v11 = vpop.permute.xlu1 %4892  ;;  %5164 = vmatpush1.bf16.msra.mxu0 %v3912_v48 }
 0x8ec   : > { %5310 = vmatpush1.bf16.msra.mxu1 %v4910_v50  ;;  %v4891_v32 = vpop.permute.xlu0 %4890  ;;  %5165 = vmatprep.subr.bf16.mxu0 %v3915_v42  ;;  %v4919_v38 = vsel %vm8733_vm6, %v4893_v11, %v5965_v36 }
 0x8ed   : > { %5311 = vmatprep.subr.bf16.mxu1 %v4913_v29  ;;  %v4918_v44 = vsel %vm8734_vm3, %v4891_v32, %v4893_v11 }
 0x8ef   : > { %v3899_v51 = vpop.permute.xlu1 %3898  ;;  %5166 = vmatpush1.bf16.msra.mxu0 %v3914_v31 }
 0x8f0   : > { %5312 = vmatpush1.bf16.msra.mxu1 %v4912_v25  ;;  %v3901_v60 = vpop.permute.xlu0 %3900  ;;  %5167 = vmatprep.subr.bf16.mxu0 %v3917_v58 }
 0x8f1   : > { %5313 = vmatprep.subr.bf16.mxu1 %v4915_v59  ;;  %v3921_v6 = vsel %vm555_vm5, %v3899_v51, %v3901_v60 }
 0x8f3   : > { %v5968_v16 = vpop.permute.xlu1 %5967  ;;  %5168 = vmatpush1.bf16.msra.mxu0 %v3916_v0 }
 0x8f4   : > { %5314 = vmatpush1.bf16.msra.mxu1 %v4914_v4  ;;  %v4899_v35 = vpop.permute.xlu0 %4898  ;;  %5169 = vmatprep.subr.bf16.mxu0 %v3919_v55  ;;  %v5969_v9 = vunpack.i.l.bf16 %v5968_v16  ;;  %v5970_v46 = vunpack.i.h.bf16 %v5968_v16 }
 0x8f5   : > { %5315 = vmatprep.subr.bf16.mxu1 %v4917_v57 }
 0x8f6   : > { %v3920_v26 = vsel %vm555_vm5, %v5969_v9, %v3899_v51 }
 0x8f7   : > { %v4901_v22 = vpop.permute.xlu1 %4900  ;;  %5170 = vmatpush1.bf16.msra.mxu0 %v3918_v17 }
 0x8f8   : > { %5316 = vmatpush1.bf16.msra.mxu1 %v4916_v61  ;;  %v4897_v10 = vpop.permute.xlu0 %4896  ;;  %5171 = vmatprep.subr.bf16.mxu0 %v3921_v6  ;;  %v4921_v18 = vsel %vm8735_vm13, %v4899_v35, %v4901_v22 }
 0x8f9   : > { %5317 = vmatprep.subr.bf16.mxu1 %v4919_v38  ;;  %v4920_v23 = vsel %vm8736_vm9, %v4897_v10, %v4899_v35 }
 0x8fb   : > { %v3905_v20 = vpop.permute.xlu1 %3904  ;;  %5172 = vmatpush1.bf16.msra.mxu0 %v3920_v26 }
 0x8fc   : > { %5318 = vmatpush1.bf16.msra.mxu1 %v4918_v44  ;;  %v3907_v56 = vpop.permute.xlu0 %3906  ;;  %v3922_v62 = vsel %vm555_vm5, %v5970_v46, %v3905_v20 }
 0x8fd   : > { %5319 = vmatprep.subr.bf16.mxu1 %v4921_v18  ;;  %v3923_v13 = vsel %vm555_vm5, %v3905_v20, %v3907_v56 }
 0x8fe   : > { %5173 = vmatprep.subr.bf16.mxu0 %v3923_v13 }
 0x8ff   : > { %v4905_v43 = vpop.permute.xlu1 %4904  ;;  %5174 = vmatpush1.bf16.msra.mxu0 %v3922_v62 }
 0x900   : > { %5320 = vmatpush1.bf16.msra.mxu1 %v4920_v23  ;;  %v4907_v14 = vpop.permute.xlu0 %4906 }
 0x901   : > { %v4923_v54 = vsel %vm8737_vm14, %v4905_v43, %v4907_v14 }
 0x902   : > { %5176 = vmatmul.mubr.bf16.vlgmr.msra.gmra.mrb[52].mxu0 %v5492_v19  ;;  %5321 = vmatprep.subr.bf16.mxu1 %v4923_v54 }
 0x903   : > { %v4903_v27 = vpop.permute.xlu1 %4902 }
 0x904   : > { %v4922_v33 = vsel %vm8738_vm15, %v4903_v27, %v4905_v43 }
 0x905   : > { %5322 = vmatpush1.bf16.msra.mxu1 %v4922_v33 }
 0x908   : > { %5340 = vmatmul.mubr.bf16.vlgmr.msra.gmra.mrb[28].mxu1 %v6067_v24 }
 0x911   : > { %v5109_v34 = vpop.permute.xlu0 %5108 }
 0x9d5   : > { %v5177_v7 = vpop.f32.mrb[52].mxu0 }
 0x9d6   : > { %v5179_v21 = vpop.f32.mrb[53].mxu0  ;;  %v5178_v40 = vadd.f32 %v5177_v7, %v5109_v34 }
 0x9d7   : > { %v5181_v12 = vpop.f32.mrb[54].mxu0  ;;  %v5180_v37 = vadd.f32 %v5179_v21, %v5109_v34 }
 0x9d8   : > { %v5182_v52 = vpop.f32.mrb[55].mxu0 }
 0x9db   : > { %v5341_v30 = vpop.f32.mrb[28].mxu1 }
 0x9dc   : > { %v5578_v5 = vadd.f32 %v5341_v30, %v5178_v40  ;;  %v5343_v53 = vpop.f32.mrb[29].mxu1 }
 0x9dd   : > { %v5580_v8 = vadd.f32 %v5343_v53, %v5180_v37  ;;  %v5345_v45 = vpop.f32.mrb[30].mxu1 }
 0x9de   : > { %5348 = vst [vmem:[%s386_s22] sm:$0xff] %v5578_v5  ;;  %v5346_v28 = vpop.f32.mrb[31].mxu1 }
 0x9df   : > { %5349 = vst [vmem:[%s386_s22 + $0x8] sm:$0xff] %v5580_v8 }
 0x9e0 PF: > { %s21_s17 = sadd.s32 1, %s6074_s17  }
 0x9e1   : > { %p18_p4 = scmp.ge.s32.totalorder %s21_s17, 4  }
 0x9e3   :  { %20 = sbr.rel (!%p18_p4) target bundleno = 1 (0x1), region = 94 }

</bundles_post_ra>
